<compile_context>
chip_gen: v6e
topology: v6e:2x2x1
jax: 0.10.0
libtpu: 0.0.40
codegen_flags: <defaults>
</compile_context>

<pallas_src>
import math

import jax
import jax.numpy as jnp
from jax.experimental import pallas as pl
from jax.experimental.pallas import tpu as pltpu

# Model hyper-parameters (small, consistent with the module's __init__).
D_MODEL = 32
NUM_HEADS = 4
DFF = 64
HEAD_DIM = D_MODEL // NUM_HEADS
LN_EPS = 1e-5
BLOCK_N = 16          # sequences per grid step -> M = L * BLOCK_N = 128 rows
NEG_INF = -1e30       # large finite negative for the block-diagonal mask


def _layernorm(x, gamma, beta):
    # One-pass variance: E[x^2] - mean^2 (one XLU reduction saved per call).
    mu = jnp.mean(x, axis=-1, keepdims=True)
    var = jnp.maximum(jnp.mean(x * x, axis=-1, keepdims=True) - mu * mu, 0.0)
    return (x - mu) * jax.lax.rsqrt(var + LN_EPS) * gamma + beta


def transformer_layer_kernel(
    x_ref,        # (L, BLOCK_N, D)   current batch of sequences
    wqkv_ref,     # (D, 3D)           fused q/k/v projection (scale folded in)
    wo_ref,       # (D, D)
    w1_ref,       # (D, DFF)
    w2_ref,       # (DFF, D)
    vec_ref,      # (8, 128)          packed biases / LayerNorm params
    o_ref,        # (L, BLOCK_N, D)
):
    seq, bn, d = x_ref.shape
    m = seq * bn
    # Row ordering after the flatten: row = l * bn + b.
    x = x_ref[...].astype(jnp.float32).reshape(m, d)             # (M, D)

    vec = vec_ref[...]                                           # (8, 128)
    b_qkv = vec[0:1, : 3 * d]                                    # (1, 3D)
    b_o   = vec[1:2, :d]
    g1    = vec[2:3, :d]
    be1   = vec[3:4, :d]
    b_f1  = vec[4:5, :DFF]
    b_f2  = vec[5:6, :d]
    g2    = vec[6:7, :d]
    be2   = vec[7:8, :d]

    # ---- fused QKV projection (one MXU push, N = 3*D) ---------------------
    qkv = jnp.dot(x, wqkv_ref[...], preferred_element_type=jnp.float32) + b_qkv
    q = qkv[:, 0:d]                  # 1/sqrt(head_dim) already folded into W/b
    k = qkv[:, d:2 * d]
    v = qkv[:, 2 * d:3 * d]

    # ---- block-diagonal additive mask (hoisted out of the head loop) ------
    # rows r and c belong to the same sequence iff r % bn == c % bn.
    rows = jax.lax.broadcasted_iota(jnp.int32, (m, m), 0)
    cols = jax.lax.broadcasted_iota(jnp.int32, (m, m), 1)
    mask = jnp.where((rows % bn) == (cols % bn), 0.0, NEG_INF)   # (M, M)

    wo = wo_ref[...]                                             # (D, D)

    # ---- multi-head self attention, W_O folded per head (no concat) -------
    attn = jnp.zeros((m, d), jnp.float32)
    for h in range(NUM_HEADS):
        lo = h * HEAD_DIM
        hi = lo + HEAD_DIM
        qh = q[:, lo:hi]                                         # (M, hd)
        kh = k[:, lo:hi]
        vh = v[:, lo:hi]
        # S = Q_h @ K_h^T as one full-width MXU matmul (contract dim 1 of both)
        s = jax.lax.dot_general(qh, kh, (((1,), (1,)), ((), ())),
                                preferred_element_type=jnp.float32)  # (M, M)
        s = s + mask                                             # before row-max
        s = s - jnp.max(s, axis=-1, keepdims=True)
        p = jnp.exp(s)
        p = p * pl.reciprocal(jnp.sum(p, axis=-1, keepdims=True), approx=True)
        oh = jnp.dot(p, vh, preferred_element_type=jnp.float32)  # (M, hd)
        # concat(head_0..head_H) @ W_O  ==  sum_h head_h @ W_O[h*hd:(h+1)*hd]
        attn = attn + jnp.dot(oh, wo[lo:hi, :],
                              preferred_element_type=jnp.float32)
    attn = attn + b_o

    # dropout1: identity (eval mode)
    y = _layernorm(x + attn, g1, be1)                            # (M, D)

    # ---- feed-forward ------------------------------------------------------
    h1 = jnp.dot(y, w1_ref[...], preferred_element_type=jnp.float32) + b_f1
    h1 = jnp.maximum(h1, 0.0)
    h2 = jnp.dot(h1, w2_ref[...], preferred_element_type=jnp.float32) + b_f2

    # dropout2: identity (eval mode)
    out = _layernorm(y + h2, g2, be2)                            # (M, D)

    # Rows are already ordered (l, b): reshape to (L, BLOCK_N, D) and store.
    o_ref[...] = out.reshape(seq, bn, d).astype(o_ref.dtype)


def make_params(key):
    """Deterministic synthetic parameters matching nn.MultiheadAttention /
    nn.LayerNorm / nn.Linear shapes (weights pre-transposed to (in, out))."""
    ks = jax.random.split(key, 8)
    s = 0.05
    # in_proj_weight is (3D, D) in PyTorch; split into q/k/v and transpose.
    in_proj_w = jax.random.normal(ks[0], (3 * D_MODEL, D_MODEL), jnp.float32) * s
    in_proj_b = jax.random.normal(ks[1], (3 * D_MODEL,), jnp.float32) * s
    wq = in_proj_w[0 * D_MODEL:1 * D_MODEL].T
    wk = in_proj_w[1 * D_MODEL:2 * D_MODEL].T
    wv = in_proj_w[2 * D_MODEL:3 * D_MODEL].T
    bq = in_proj_b[0 * D_MODEL:1 * D_MODEL].reshape(1, D_MODEL)
    bk = in_proj_b[1 * D_MODEL:2 * D_MODEL].reshape(1, D_MODEL)
    bv = in_proj_b[2 * D_MODEL:3 * D_MODEL].reshape(1, D_MODEL)
    wo = (jax.random.normal(ks[2], (D_MODEL, D_MODEL), jnp.float32) * s).T
    bo = (jax.random.normal(ks[3], (D_MODEL,), jnp.float32) * s).reshape(1, D_MODEL)
    g1 = jnp.ones((1, D_MODEL), jnp.float32)
    be1 = jnp.zeros((1, D_MODEL), jnp.float32)
    w1 = (jax.random.normal(ks[4], (DFF, D_MODEL), jnp.float32) * s).T     # (D, DFF)
    bf1 = (jax.random.normal(ks[5], (DFF,), jnp.float32) * s).reshape(1, DFF)
    w2 = (jax.random.normal(ks[6], (D_MODEL, DFF), jnp.float32) * s).T     # (DFF, D)
    bf2 = (jax.random.normal(ks[7], (D_MODEL,), jnp.float32) * s).reshape(1, D_MODEL)
    g2 = jnp.ones((1, D_MODEL), jnp.float32)
    be2 = jnp.zeros((1, D_MODEL), jnp.float32)
    return [wq, wk, wv, bq, bk, bv, wo, bo, g1, be1, w1, bf1, w2, bf2, g2, be2]


def pack_params(params):
    """Pack raw params into kernel form: fused QKV weight (with the attention
    scale folded into the Q columns) + one (8,128) slab holding all biases /
    LayerNorm vectors (row i = one zero-padded vector)."""
    (wq, wk, wv, bq, bk, bv, wo, bo, g1, be1, w1, bf1, w2, bf2, g2, be2) = params
    scale = 1.0 / math.sqrt(HEAD_DIM)
    wqkv = jnp.concatenate([wq * scale, wk, wv], axis=1)          # (D, 3D)
    bqkv = jnp.concatenate([bq * scale, bk, bv], axis=1)          # (1, 3D)

    def row(vv):
        vv = vv.reshape(-1).astype(jnp.float32)
        return jnp.pad(vv, (0, 128 - vv.shape[0]))

    vec = jnp.stack([row(bqkv), row(bo), row(g1), row(be1),
                     row(bf1), row(bf2), row(g2), row(be2)])      # (8, 128)
    return wqkv, wo, w1, w2, vec


def transformer_layer(inputs, params, *, block_n=BLOCK_N):
    """inputs: (L, d_model, N)  -- same tensor the PyTorch forward receives.
    Returns (L, N, d_model), matching the PyTorch module output."""
    L, D, N = inputs.shape
    assert D == D_MODEL
    wqkv, wo, w1, w2, vec = pack_params(params)

    # One wrapper input transpose remains: D must land on the lane axis.
    # TODO(synk): fold it into the kernel via an in-kernel lane relayout.
    x_lnd = jnp.transpose(inputs, (0, 2, 1))                      # (L, N, D)
    n_pad = pl.cdiv(N, block_n) * block_n
    if n_pad != N:
        x_lnd = jnp.pad(x_lnd, ((0, 0), (0, n_pad - N), (0, 0)))

    in_specs = [
        pl.BlockSpec((L, block_n, D), lambda b: (0, b, 0)),       # activations
        pl.BlockSpec((D, 3 * D), lambda b: (0, 0)),               # fused QKV
        pl.BlockSpec((D, D), lambda b: (0, 0)),                   # W_O
        pl.BlockSpec((D, DFF), lambda b: (0, 0)),                 # FFN W1
        pl.BlockSpec((DFF, D), lambda b: (0, 0)),                 # FFN W2
        pl.BlockSpec((8, 128), lambda b: (0, 0)),                 # packed vectors
    ]

    out = pl.pallas_call(
        transformer_layer_kernel,
        out_shape=jax.ShapeDtypeStruct((L, n_pad, D), jnp.float32),
        grid_spec=pltpu.PrefetchScalarGridSpec(
            num_scalar_prefetch=0,
            grid=(n_pad // block_n,),
            in_specs=in_specs,
            out_specs=pl.BlockSpec((L, block_n, D), lambda b: (0, b, 0)),
        ),
        compiler_params=pltpu.CompilerParams(
            dimension_semantics=("parallel",)),
    )(x_lnd, wqkv, wo, w1, w2, vec)

    # Output already in (L, N, D) layout -- no wrapper transpose needed.
    return out[:, :N, :]


def transformer_layer_ref(inputs, params):
    """Pure-JAX reference (mirrors the PyTorch forward in eval mode)."""
    (wq, wk, wv, bq, bk, bv, wo, bo, g1, be1, w1, bf1, w2, bf2, g2, be2) = params
    x = jnp.transpose(inputs, (2, 0, 1))                          # (N, L, D)
    q = x @ wq + bq
    k = x @ wk + bk
    v = x @ wv + bv
    N, L, D = x.shape
    qh = q.reshape(N, L, NUM_HEADS, HEAD_DIM).transpose(0, 2, 1, 3)
    kh = k.reshape(N, L, NUM_HEADS, HEAD_DIM).transpose(0, 2, 1, 3)
    vh = v.reshape(N, L, NUM_HEADS, HEAD_DIM).transpose(0, 2, 1, 3)
    s = jnp.einsum("nhqd,nhkd->nhqk", qh, kh) / math.sqrt(HEAD_DIM)
    p = jax.nn.softmax(s, axis=-1)
    a = jnp.einsum("nhqk,nhkd->nhqd", p, vh).transpose(0, 2, 1, 3).reshape(N, L, D)
    a = a @ wo + bo
    mu = jnp.mean(x + a, axis=-1, keepdims=True)
    var = jnp.mean(((x + a) - mu) ** 2, axis=-1, keepdims=True)
    y = ((x + a) - mu) * jax.lax.rsqrt(var + LN_EPS) * g1 + be1
    h = jnp.maximum(y @ w1 + bf1, 0.0)
    h = h @ w2 + bf2
    mu2 = jnp.mean(y + h, axis=-1, keepdims=True)
    var2 = jnp.mean(((y + h) - mu2) ** 2, axis=-1, keepdims=True)
    out = ((y + h) - mu2) * jax.lax.rsqrt(var2 + LN_EPS) * g2 + be2
    return jnp.transpose(out, (1, 0, 2))                          # (L, N, D)


if __name__ == "__main__":
    key = jax.random.PRNGKey(0)
    k_x, k_p = jax.random.split(key)

    # PyTorch-layout input: (seq L, d_model, batch N).  N=20 is not a multiple
    # of BLOCK_N, exercising the padding path and a 2-step grid (so the
    # "parallel" batch axis can shard across v7x's two TensorCores).
    L, N = 8, 20
    x = jax.random.normal(k_x, (L, D_MODEL, N), jnp.float32)
    params = make_params(k_p)

    out = jax.block_until_ready(transformer_layer(x, params))
    ref = transformer_layer_ref(x, params)

    assert out.shape == (L, N, D_MODEL)
    # Tolerance loosened slightly for pl.reciprocal(approx=True) in softmax.
    assert jnp.allclose(out, ref, atol=5e-3, rtol=5e-3), "mismatch vs reference"

    print("KERNEL_OK")
</pallas_src>

<mosaic_0001>
module attributes {stable_mosaic.version = 11 : i64} {
  func.func @transformer_layer_kernel(%arg0: i32, %arg1: memref<8x16x32xf32, #tpu.memory_space<vmem>>, %arg2: memref<32x96xf32, #tpu.memory_space<vmem>>, %arg3: memref<32x32xf32, #tpu.memory_space<vmem>>, %arg4: memref<32x64xf32, #tpu.memory_space<vmem>>, %arg5: memref<64x32xf32, #tpu.memory_space<vmem>>, %arg6: memref<8x128xf32, #tpu.memory_space<vmem>>, %arg7: memref<8x16x32xf32, #tpu.memory_space<vmem>>) attributes {dimension_semantics = [#tpu.dimension_semantics<parallel>], iteration_bounds = array<i64: 2>, scalar_prefetch = 0 : i64, scratch_operands = 0 : i64, tpu.core_type = #tpu.core_type<tc>, window_params = [{transform_indices = @transform_0, window_bounds = array<i64: 8, 16, 32>}, {pipeline_mode = #tpu.pipeline_mode<synchronous>, transform_indices = @transform_1, window_bounds = array<i64: 32, 96>}, {pipeline_mode = #tpu.pipeline_mode<synchronous>, transform_indices = @transform_2, window_bounds = array<i64: 32, 32>}, {pipeline_mode = #tpu.pipeline_mode<synchronous>, transform_indices = @transform_3, window_bounds = array<i64: 32, 64>}, {pipeline_mode = #tpu.pipeline_mode<synchronous>, transform_indices = @transform_4, window_bounds = array<i64: 64, 32>}, {pipeline_mode = #tpu.pipeline_mode<synchronous>, transform_indices = @transform_5, window_bounds = array<i64: 8, 128>}, {transform_indices = @transform_6, window_bounds = array<i64: 8, 16, 32>}]} {
    %c0 = arith.constant 0 : index
    %c0_0 = arith.constant 0 : index
    %c0_1 = arith.constant 0 : index
    %0 = vector.load %arg1[%c0, %c0_0, %c0_1] : memref<8x16x32xf32, #tpu.memory_space<vmem>>, vector<8x16x32xf32>
    %1 = vector.shape_cast %0 : vector<8x16x32xf32> to vector<128x32xf32>
    %c0_2 = arith.constant 0 : index
    %c0_3 = arith.constant 0 : index
    %2 = vector.load %arg6[%c0_2, %c0_3] : memref<8x128xf32, #tpu.memory_space<vmem>>, vector<8x128xf32>
    %3 = vector.extract_strided_slice %2 {offsets = [0, 0], sizes = [1, 96], strides = [1, 1]} : vector<8x128xf32> to vector<1x96xf32>
    %4 = vector.extract_strided_slice %2 {offsets = [1, 0], sizes = [1, 32], strides = [1, 1]} : vector<8x128xf32> to vector<1x32xf32>
    %5 = vector.extract_strided_slice %2 {offsets = [2, 0], sizes = [1, 32], strides = [1, 1]} : vector<8x128xf32> to vector<1x32xf32>
    %6 = vector.extract_strided_slice %2 {offsets = [3, 0], sizes = [1, 32], strides = [1, 1]} : vector<8x128xf32> to vector<1x32xf32>
    %7 = vector.extract_strided_slice %2 {offsets = [4, 0], sizes = [1, 64], strides = [1, 1]} : vector<8x128xf32> to vector<1x64xf32>
    %8 = vector.extract_strided_slice %2 {offsets = [5, 0], sizes = [1, 32], strides = [1, 1]} : vector<8x128xf32> to vector<1x32xf32>
    %9 = vector.extract_strided_slice %2 {offsets = [6, 0], sizes = [1, 32], strides = [1, 1]} : vector<8x128xf32> to vector<1x32xf32>
    %10 = vector.extract_strided_slice %2 {offsets = [7, 0], sizes = [1, 32], strides = [1, 1]} : vector<8x128xf32> to vector<1x32xf32>
    %c0_4 = arith.constant 0 : index
    %c0_5 = arith.constant 0 : index
    %11 = vector.load %arg2[%c0_4, %c0_5] : memref<32x96xf32, #tpu.memory_space<vmem>>, vector<32x96xf32>
    %cst = arith.constant dense<0.000000e+00> : vector<128x96xf32>
    %12 = tpu.matmul %1, %11, %cst {dimension_numbers = #tpu.dot_dimension_numbers<[1], [0], [0], [1], [0, 0, 1, 1], [], []>} : vector<128x32xf32>, vector<32x96xf32>, vector<128x96xf32> -> vector<128x96xf32>
    %13 = vector.broadcast %3 : vector<1x96xf32> to vector<128x96xf32>
    %14 = arith.addf %12, %13 : vector<128x96xf32>
    %15 = vector.extract_strided_slice %14 {offsets = [0, 0], sizes = [128, 32], strides = [1, 1]} : vector<128x96xf32> to vector<128x32xf32>
    %16 = vector.extract_strided_slice %14 {offsets = [0, 32], sizes = [128, 32], strides = [1, 1]} : vector<128x96xf32> to vector<128x32xf32>
    %17 = vector.extract_strided_slice %14 {offsets = [0, 64], sizes = [128, 32], strides = [1, 1]} : vector<128x96xf32> to vector<128x32xf32>
    %18 = tpu.iota {dimensions = array<i32: 0>} : vector<128x128xi32>
    %19 = tpu.iota {dimensions = array<i32: 1>} : vector<128x128xi32>
    %c16_i32 = arith.constant 16 : i32
    %c0_i32 = arith.constant 0 : i32
    %20 = arith.cmpi eq, %c16_i32, %c0_i32 : i32
    %c1_i32 = arith.constant 1 : i32
    %21 = arith.select %20, %c1_i32, %c16_i32 : i32
    %22 = vector.broadcast %21 : i32 to vector<128x128xi32>
    %23 = arith.remsi %18, %22 : vector<128x128xi32>
    %c0_i32_6 = arith.constant 0 : i32
    %24 = vector.broadcast %c0_i32_6 : i32 to vector<128x128xi32>
    %25 = arith.cmpi ne, %23, %24 : vector<128x128xi32>
    %c0_i32_7 = arith.constant 0 : i32
    %26 = vector.broadcast %c0_i32_7 : i32 to vector<128x128xi32>
    %27 = arith.cmpi slt, %23, %26 : vector<128x128xi32>
    %c0_i32_8 = arith.constant 0 : i32
    %28 = arith.cmpi slt, %21, %c0_i32_8 : i32
    %29 = vector.broadcast %28 : i1 to vector<128x128xi1>
    %30 = vector.broadcast %29 : vector<128x128xi1> to vector<128x128xi1>
    %31 = arith.xori %27, %30 : vector<128x128xi1>
    %32 = arith.andi %31, %25 : vector<128x128xi1>
    %33 = vector.broadcast %21 : i32 to vector<128x128xi32>
    %34 = arith.addi %23, %33 : vector<128x128xi32>
    %35 = arith.select %32, %34, %23 : vector<128x128xi1>, vector<128x128xi32>
    %c16_i32_9 = arith.constant 16 : i32
    %c0_i32_10 = arith.constant 0 : i32
    %36 = arith.cmpi eq, %c16_i32_9, %c0_i32_10 : i32
    %c1_i32_11 = arith.constant 1 : i32
    %37 = arith.select %36, %c1_i32_11, %c16_i32_9 : i32
    %38 = vector.broadcast %37 : i32 to vector<128x128xi32>
    %39 = arith.remsi %19, %38 : vector<128x128xi32>
    %c0_i32_12 = arith.constant 0 : i32
    %40 = vector.broadcast %c0_i32_12 : i32 to vector<128x128xi32>
    %41 = arith.cmpi ne, %39, %40 : vector<128x128xi32>
    %c0_i32_13 = arith.constant 0 : i32
    %42 = vector.broadcast %c0_i32_13 : i32 to vector<128x128xi32>
    %43 = arith.cmpi slt, %39, %42 : vector<128x128xi32>
    %c0_i32_14 = arith.constant 0 : i32
    %44 = arith.cmpi slt, %37, %c0_i32_14 : i32
    %45 = vector.broadcast %44 : i1 to vector<128x128xi1>
    %46 = vector.broadcast %45 : vector<128x128xi1> to vector<128x128xi1>
    %47 = arith.xori %43, %46 : vector<128x128xi1>
    %48 = arith.andi %47, %41 : vector<128x128xi1>
    %49 = vector.broadcast %37 : i32 to vector<128x128xi32>
    %50 = arith.addi %39, %49 : vector<128x128xi32>
    %51 = arith.select %48, %50, %39 : vector<128x128xi1>, vector<128x128xi32>
    %52 = arith.cmpi eq, %35, %51 : vector<128x128xi32>
    %cst_15 = arith.constant 0.000000e+00 : f32
    %cst_16 = arith.constant -1.000000e+30 : f32
    %53 = vector.broadcast %cst_15 : f32 to vector<128x128xf32>
    %54 = vector.broadcast %cst_16 : f32 to vector<128x128xf32>
    %55 = arith.select %52, %53, %54 : vector<128x128xi1>, vector<128x128xf32>
    %c0_17 = arith.constant 0 : index
    %c0_18 = arith.constant 0 : index
    %56 = vector.load %arg3[%c0_17, %c0_18] : memref<32x32xf32, #tpu.memory_space<vmem>>, vector<32x32xf32>
    %cst_19 = arith.constant 0.000000e+00 : f32
    %57 = vector.broadcast %cst_19 : f32 to vector<128x32xf32>
    %58 = vector.extract_strided_slice %15 {offsets = [0, 0], sizes = [128, 8], strides = [1, 1]} : vector<128x32xf32> to vector<128x8xf32>
    %59 = vector.extract_strided_slice %16 {offsets = [0, 0], sizes = [128, 8], strides = [1, 1]} : vector<128x32xf32> to vector<128x8xf32>
    %60 = vector.extract_strided_slice %17 {offsets = [0, 0], sizes = [128, 8], strides = [1, 1]} : vector<128x32xf32> to vector<128x8xf32>
    %cst_20 = arith.constant dense<0.000000e+00> : vector<128x128xf32>
    %61 = tpu.matmul %58, %59, %cst_20 {dimension_numbers = #tpu.dot_dimension_numbers<[1], [1], [0], [0], [0, 0, 1, 0], [], []>} : vector<128x8xf32>, vector<128x8xf32>, vector<128x128xf32> -> vector<128x128xf32>
    %62 = arith.addf %61, %55 : vector<128x128xf32>
    %cst_21 = arith.constant dense<0xFF800000> : vector<128xf32>
    %63 = vector.multi_reduction <maximumf>, %62, %cst_21 [1] : vector<128x128xf32> to vector<128xf32>
    %64 = vector.shape_cast %63 : vector<128xf32> to vector<128x1xf32>
    %65 = vector.broadcast %64 : vector<128x1xf32> to vector<128x128xf32>
    %66 = arith.subf %62, %65 : vector<128x128xf32>
    %67 = math.exp %66 : vector<128x128xf32>
    %cst_22 = arith.constant dense<0.000000e+00> : vector<128xf32>
    %68 = vector.multi_reduction <add>, %67, %cst_22 [1] : vector<128x128xf32> to vector<128xf32>
    %69 = vector.shape_cast %68 : vector<128xf32> to vector<128x1xf32>
    %70 = tpu.reciprocal %69 {approx = true} : vector<128x1xf32> -> vector<128x1xf32>
    %71 = vector.broadcast %70 : vector<128x1xf32> to vector<128x128xf32>
    %72 = arith.mulf %67, %71 : vector<128x128xf32>
    %cst_23 = arith.constant dense<0.000000e+00> : vector<128x8xf32>
    %73 = tpu.matmul %72, %60, %cst_23 {dimension_numbers = #tpu.dot_dimension_numbers<[1], [0], [0], [1], [0, 0, 1, 1], [], []>} : vector<128x128xf32>, vector<128x8xf32>, vector<128x8xf32> -> vector<128x8xf32>
    %74 = vector.extract_strided_slice %56 {offsets = [0, 0], sizes = [8, 32], strides = [1, 1]} : vector<32x32xf32> to vector<8x32xf32>
    %cst_24 = arith.constant dense<0.000000e+00> : vector<128x32xf32>
    %75 = tpu.matmul %73, %74, %cst_24 {dimension_numbers = #tpu.dot_dimension_numbers<[1], [0], [0], [1], [0, 0, 1, 1], [], []>} : vector<128x8xf32>, vector<8x32xf32>, vector<128x32xf32> -> vector<128x32xf32>
    %76 = arith.addf %57, %75 : vector<128x32xf32>
    %77 = vector.extract_strided_slice %15 {offsets = [0, 8], sizes = [128, 8], strides = [1, 1]} : vector<128x32xf32> to vector<128x8xf32>
    %78 = vector.extract_strided_slice %16 {offsets = [0, 8], sizes = [128, 8], strides = [1, 1]} : vector<128x32xf32> to vector<128x8xf32>
    %79 = vector.extract_strided_slice %17 {offsets = [0, 8], sizes = [128, 8], strides = [1, 1]} : vector<128x32xf32> to vector<128x8xf32>
    %cst_25 = arith.constant dense<0.000000e+00> : vector<128x128xf32>
    %80 = tpu.matmul %77, %78, %cst_25 {dimension_numbers = #tpu.dot_dimension_numbers<[1], [1], [0], [0], [0, 0, 1, 0], [], []>} : vector<128x8xf32>, vector<128x8xf32>, vector<128x128xf32> -> vector<128x128xf32>
    %81 = arith.addf %80, %55 : vector<128x128xf32>
    %cst_26 = arith.constant dense<0xFF800000> : vector<128xf32>
    %82 = vector.multi_reduction <maximumf>, %81, %cst_26 [1] : vector<128x128xf32> to vector<128xf32>
    %83 = vector.shape_cast %82 : vector<128xf32> to vector<128x1xf32>
    %84 = vector.broadcast %83 : vector<128x1xf32> to vector<128x128xf32>
    %85 = arith.subf %81, %84 : vector<128x128xf32>
    %86 = math.exp %85 : vector<128x128xf32>
    %cst_27 = arith.constant dense<0.000000e+00> : vector<128xf32>
    %87 = vector.multi_reduction <add>, %86, %cst_27 [1] : vector<128x128xf32> to vector<128xf32>
    %88 = vector.shape_cast %87 : vector<128xf32> to vector<128x1xf32>
    %89 = tpu.reciprocal %88 {approx = true} : vector<128x1xf32> -> vector<128x1xf32>
    %90 = vector.broadcast %89 : vector<128x1xf32> to vector<128x128xf32>
    %91 = arith.mulf %86, %90 : vector<128x128xf32>
    %cst_28 = arith.constant dense<0.000000e+00> : vector<128x8xf32>
    %92 = tpu.matmul %91, %79, %cst_28 {dimension_numbers = #tpu.dot_dimension_numbers<[1], [0], [0], [1], [0, 0, 1, 1], [], []>} : vector<128x128xf32>, vector<128x8xf32>, vector<128x8xf32> -> vector<128x8xf32>
    %93 = vector.extract_strided_slice %56 {offsets = [8, 0], sizes = [8, 32], strides = [1, 1]} : vector<32x32xf32> to vector<8x32xf32>
    %cst_29 = arith.constant dense<0.000000e+00> : vector<128x32xf32>
    %94 = tpu.matmul %92, %93, %cst_29 {dimension_numbers = #tpu.dot_dimension_numbers<[1], [0], [0], [1], [0, 0, 1, 1], [], []>} : vector<128x8xf32>, vector<8x32xf32>, vector<128x32xf32> -> vector<128x32xf32>
    %95 = arith.addf %76, %94 : vector<128x32xf32>
    %96 = vector.extract_strided_slice %15 {offsets = [0, 16], sizes = [128, 8], strides = [1, 1]} : vector<128x32xf32> to vector<128x8xf32>
    %97 = vector.extract_strided_slice %16 {offsets = [0, 16], sizes = [128, 8], strides = [1, 1]} : vector<128x32xf32> to vector<128x8xf32>
    %98 = vector.extract_strided_slice %17 {offsets = [0, 16], sizes = [128, 8], strides = [1, 1]} : vector<128x32xf32> to vector<128x8xf32>
    %cst_30 = arith.constant dense<0.000000e+00> : vector<128x128xf32>
    %99 = tpu.matmul %96, %97, %cst_30 {dimension_numbers = #tpu.dot_dimension_numbers<[1], [1], [0], [0], [0, 0, 1, 0], [], []>} : vector<128x8xf32>, vector<128x8xf32>, vector<128x128xf32> -> vector<128x128xf32>
    %100 = arith.addf %99, %55 : vector<128x128xf32>
    %cst_31 = arith.constant dense<0xFF800000> : vector<128xf32>
    %101 = vector.multi_reduction <maximumf>, %100, %cst_31 [1] : vector<128x128xf32> to vector<128xf32>
    %102 = vector.shape_cast %101 : vector<128xf32> to vector<128x1xf32>
    %103 = vector.broadcast %102 : vector<128x1xf32> to vector<128x128xf32>
    %104 = arith.subf %100, %103 : vector<128x128xf32>
    %105 = math.exp %104 : vector<128x128xf32>
    %cst_32 = arith.constant dense<0.000000e+00> : vector<128xf32>
    %106 = vector.multi_reduction <add>, %105, %cst_32 [1] : vector<128x128xf32> to vector<128xf32>
    %107 = vector.shape_cast %106 : vector<128xf32> to vector<128x1xf32>
    %108 = tpu.reciprocal %107 {approx = true} : vector<128x1xf32> -> vector<128x1xf32>
    %109 = vector.broadcast %108 : vector<128x1xf32> to vector<128x128xf32>
    %110 = arith.mulf %105, %109 : vector<128x128xf32>
    %cst_33 = arith.constant dense<0.000000e+00> : vector<128x8xf32>
    %111 = tpu.matmul %110, %98, %cst_33 {dimension_numbers = #tpu.dot_dimension_numbers<[1], [0], [0], [1], [0, 0, 1, 1], [], []>} : vector<128x128xf32>, vector<128x8xf32>, vector<128x8xf32> -> vector<128x8xf32>
    %112 = vector.extract_strided_slice %56 {offsets = [16, 0], sizes = [8, 32], strides = [1, 1]} : vector<32x32xf32> to vector<8x32xf32>
    %cst_34 = arith.constant dense<0.000000e+00> : vector<128x32xf32>
    %113 = tpu.matmul %111, %112, %cst_34 {dimension_numbers = #tpu.dot_dimension_numbers<[1], [0], [0], [1], [0, 0, 1, 1], [], []>} : vector<128x8xf32>, vector<8x32xf32>, vector<128x32xf32> -> vector<128x32xf32>
    %114 = arith.addf %95, %113 : vector<128x32xf32>
    %115 = vector.extract_strided_slice %15 {offsets = [0, 24], sizes = [128, 8], strides = [1, 1]} : vector<128x32xf32> to vector<128x8xf32>
    %116 = vector.extract_strided_slice %16 {offsets = [0, 24], sizes = [128, 8], strides = [1, 1]} : vector<128x32xf32> to vector<128x8xf32>
    %117 = vector.extract_strided_slice %17 {offsets = [0, 24], sizes = [128, 8], strides = [1, 1]} : vector<128x32xf32> to vector<128x8xf32>
    %cst_35 = arith.constant dense<0.000000e+00> : vector<128x128xf32>
    %118 = tpu.matmul %115, %116, %cst_35 {dimension_numbers = #tpu.dot_dimension_numbers<[1], [1], [0], [0], [0, 0, 1, 0], [], []>} : vector<128x8xf32>, vector<128x8xf32>, vector<128x128xf32> -> vector<128x128xf32>
    %119 = arith.addf %118, %55 : vector<128x128xf32>
    %cst_36 = arith.constant dense<0xFF800000> : vector<128xf32>
    %120 = vector.multi_reduction <maximumf>, %119, %cst_36 [1] : vector<128x128xf32> to vector<128xf32>
    %121 = vector.shape_cast %120 : vector<128xf32> to vector<128x1xf32>
    %122 = vector.broadcast %121 : vector<128x1xf32> to vector<128x128xf32>
    %123 = arith.subf %119, %122 : vector<128x128xf32>
    %124 = math.exp %123 : vector<128x128xf32>
    %cst_37 = arith.constant dense<0.000000e+00> : vector<128xf32>
    %125 = vector.multi_reduction <add>, %124, %cst_37 [1] : vector<128x128xf32> to vector<128xf32>
    %126 = vector.shape_cast %125 : vector<128xf32> to vector<128x1xf32>
    %127 = tpu.reciprocal %126 {approx = true} : vector<128x1xf32> -> vector<128x1xf32>
    %128 = vector.broadcast %127 : vector<128x1xf32> to vector<128x128xf32>
    %129 = arith.mulf %124, %128 : vector<128x128xf32>
    %cst_38 = arith.constant dense<0.000000e+00> : vector<128x8xf32>
    %130 = tpu.matmul %129, %117, %cst_38 {dimension_numbers = #tpu.dot_dimension_numbers<[1], [0], [0], [1], [0, 0, 1, 1], [], []>} : vector<128x128xf32>, vector<128x8xf32>, vector<128x8xf32> -> vector<128x8xf32>
    %131 = vector.extract_strided_slice %56 {offsets = [24, 0], sizes = [8, 32], strides = [1, 1]} : vector<32x32xf32> to vector<8x32xf32>
    %cst_39 = arith.constant dense<0.000000e+00> : vector<128x32xf32>
    %132 = tpu.matmul %130, %131, %cst_39 {dimension_numbers = #tpu.dot_dimension_numbers<[1], [0], [0], [1], [0, 0, 1, 1], [], []>} : vector<128x8xf32>, vector<8x32xf32>, vector<128x32xf32> -> vector<128x32xf32>
    %133 = arith.addf %114, %132 : vector<128x32xf32>
    %134 = vector.broadcast %4 : vector<1x32xf32> to vector<128x32xf32>
    %135 = arith.addf %133, %134 : vector<128x32xf32>
    %136 = arith.addf %1, %135 : vector<128x32xf32>
    %cst_40 = arith.constant dense<0.000000e+00> : vector<128xf32>
    %137 = vector.multi_reduction <add>, %136, %cst_40 [1] : vector<128x32xf32> to vector<128xf32>
    %138 = vector.shape_cast %137 : vector<128xf32> to vector<128x1xf32>
    %cst_41 = arith.constant 3.200000e+01 : f32
    %139 = vector.broadcast %cst_41 : f32 to vector<128x1xf32>
    %140 = arith.divf %138, %139 : vector<128x1xf32>
    %141 = arith.mulf %136, %136 : vector<128x32xf32>
    %cst_42 = arith.constant dense<0.000000e+00> : vector<128xf32>
    %142 = vector.multi_reduction <add>, %141, %cst_42 [1] : vector<128x32xf32> to vector<128xf32>
    %143 = vector.shape_cast %142 : vector<128xf32> to vector<128x1xf32>
    %cst_43 = arith.constant 3.200000e+01 : f32
    %144 = vector.broadcast %cst_43 : f32 to vector<128x1xf32>
    %145 = arith.divf %143, %144 : vector<128x1xf32>
    %146 = arith.mulf %140, %140 : vector<128x1xf32>
    %147 = arith.subf %145, %146 : vector<128x1xf32>
    %cst_44 = arith.constant 0.000000e+00 : f32
    %148 = vector.broadcast %cst_44 : f32 to vector<128x1xf32>
    %149 = arith.maximumf %147, %148 : vector<128x1xf32>
    %150 = vector.broadcast %140 : vector<128x1xf32> to vector<128x32xf32>
    %151 = arith.subf %136, %150 : vector<128x32xf32>
    %cst_45 = arith.constant 9.99999974E-6 : f32
    %152 = vector.broadcast %cst_45 : f32 to vector<128x1xf32>
    %153 = arith.addf %149, %152 : vector<128x1xf32>
    %154 = math.rsqrt %153 : vector<128x1xf32>
    %155 = vector.broadcast %154 : vector<128x1xf32> to vector<128x32xf32>
    %156 = arith.mulf %151, %155 : vector<128x32xf32>
    %157 = vector.broadcast %5 : vector<1x32xf32> to vector<128x32xf32>
    %158 = arith.mulf %156, %157 : vector<128x32xf32>
    %159 = vector.broadcast %6 : vector<1x32xf32> to vector<128x32xf32>
    %160 = arith.addf %158, %159 : vector<128x32xf32>
    %c0_46 = arith.constant 0 : index
    %c0_47 = arith.constant 0 : index
    %161 = vector.load %arg4[%c0_46, %c0_47] : memref<32x64xf32, #tpu.memory_space<vmem>>, vector<32x64xf32>
    %cst_48 = arith.constant dense<0.000000e+00> : vector<128x64xf32>
    %162 = tpu.matmul %160, %161, %cst_48 {dimension_numbers = #tpu.dot_dimension_numbers<[1], [0], [0], [1], [0, 0, 1, 1], [], []>} : vector<128x32xf32>, vector<32x64xf32>, vector<128x64xf32> -> vector<128x64xf32>
    %163 = vector.broadcast %7 : vector<1x64xf32> to vector<128x64xf32>
    %164 = arith.addf %162, %163 : vector<128x64xf32>
    %cst_49 = arith.constant 0.000000e+00 : f32
    %165 = vector.broadcast %cst_49 : f32 to vector<128x64xf32>
    %166 = arith.maximumf %164, %165 : vector<128x64xf32>
    %c0_50 = arith.constant 0 : index
    %c0_51 = arith.constant 0 : index
    %167 = vector.load %arg5[%c0_50, %c0_51] : memref<64x32xf32, #tpu.memory_space<vmem>>, vector<64x32xf32>
    %cst_52 = arith.constant dense<0.000000e+00> : vector<128x32xf32>
    %168 = tpu.matmul %166, %167, %cst_52 {dimension_numbers = #tpu.dot_dimension_numbers<[1], [0], [0], [1], [0, 0, 1, 1], [], []>} : vector<128x64xf32>, vector<64x32xf32>, vector<128x32xf32> -> vector<128x32xf32>
    %169 = vector.broadcast %8 : vector<1x32xf32> to vector<128x32xf32>
    %170 = arith.addf %168, %169 : vector<128x32xf32>
    %171 = arith.addf %160, %170 : vector<128x32xf32>
    %cst_53 = arith.constant dense<0.000000e+00> : vector<128xf32>
    %172 = vector.multi_reduction <add>, %171, %cst_53 [1] : vector<128x32xf32> to vector<128xf32>
    %173 = vector.shape_cast %172 : vector<128xf32> to vector<128x1xf32>
    %cst_54 = arith.constant 3.200000e+01 : f32
    %174 = vector.broadcast %cst_54 : f32 to vector<128x1xf32>
    %175 = arith.divf %173, %174 : vector<128x1xf32>
    %176 = arith.mulf %171, %171 : vector<128x32xf32>
    %cst_55 = arith.constant dense<0.000000e+00> : vector<128xf32>
    %177 = vector.multi_reduction <add>, %176, %cst_55 [1] : vector<128x32xf32> to vector<128xf32>
    %178 = vector.shape_cast %177 : vector<128xf32> to vector<128x1xf32>
    %cst_56 = arith.constant 3.200000e+01 : f32
    %179 = vector.broadcast %cst_56 : f32 to vector<128x1xf32>
    %180 = arith.divf %178, %179 : vector<128x1xf32>
    %181 = arith.mulf %175, %175 : vector<128x1xf32>
    %182 = arith.subf %180, %181 : vector<128x1xf32>
    %cst_57 = arith.constant 0.000000e+00 : f32
    %183 = vector.broadcast %cst_57 : f32 to vector<128x1xf32>
    %184 = arith.maximumf %182, %183 : vector<128x1xf32>
    %185 = vector.broadcast %175 : vector<128x1xf32> to vector<128x32xf32>
    %186 = arith.subf %171, %185 : vector<128x32xf32>
    %cst_58 = arith.constant 9.99999974E-6 : f32
    %187 = vector.broadcast %cst_58 : f32 to vector<128x1xf32>
    %188 = arith.addf %184, %187 : vector<128x1xf32>
    %189 = math.rsqrt %188 : vector<128x1xf32>
    %190 = vector.broadcast %189 : vector<128x1xf32> to vector<128x32xf32>
    %191 = arith.mulf %186, %190 : vector<128x32xf32>
    %192 = vector.broadcast %9 : vector<1x32xf32> to vector<128x32xf32>
    %193 = arith.mulf %191, %192 : vector<128x32xf32>
    %194 = vector.broadcast %10 : vector<1x32xf32> to vector<128x32xf32>
    %195 = arith.addf %193, %194 : vector<128x32xf32>
    %196 = vector.shape_cast %195 : vector<128x32xf32> to vector<8x16x32xf32>
    %c0_59 = arith.constant 0 : index
    %c0_60 = arith.constant 0 : index
    %c0_61 = arith.constant 0 : index
    %197 = vector.load %arg7[%c0_59, %c0_60, %c0_61] : memref<8x16x32xf32, #tpu.memory_space<vmem>>, vector<8x16x32xf32>
    tpu.vector_store %arg7[%c0_59, %c0_60, %c0_61], %196 {strides = array<i32>} : memref<8x16x32xf32, #tpu.memory_space<vmem>>, vector<8x16x32xf32>,
    return
  }
  func.func @transform_0(%arg0: i32) -> (i32, i32, i32) {
    %c0_i32 = arith.constant 0 : i32
    %c0_i32_0 = arith.constant 0 : i32
    %c0_i32_1 = arith.constant 0 : i32
    return %c0_i32, %arg0, %c0_i32_0 : i32, i32, i32
  }
  func.func @transform_1(%arg0: i32) -> (i32, i32) {
    %c0_i32 = arith.constant 0 : i32
    %c0_i32_0 = arith.constant 0 : i32
    %c0_i32_1 = arith.constant 0 : i32
    return %c0_i32, %c0_i32_0 : i32, i32
  }
  func.func @transform_2(%arg0: i32) -> (i32, i32) {
    %c0_i32 = arith.constant 0 : i32
    %c0_i32_0 = arith.constant 0 : i32
    %c0_i32_1 = arith.constant 0 : i32
    return %c0_i32, %c0_i32_0 : i32, i32
  }
  func.func @transform_3(%arg0: i32) -> (i32, i32) {
    %c0_i32 = arith.constant 0 : i32
    %c0_i32_0 = arith.constant 0 : i32
    %c0_i32_1 = arith.constant 0 : i32
    return %c0_i32, %c0_i32_0 : i32, i32
  }
  func.func @transform_4(%arg0: i32) -> (i32, i32) {
    %c0_i32 = arith.constant 0 : i32
    %c0_i32_0 = arith.constant 0 : i32
    %c0_i32_1 = arith.constant 0 : i32
    return %c0_i32, %c0_i32_0 : i32, i32
  }
  func.func @transform_5(%arg0: i32) -> (i32, i32) {
    %c0_i32 = arith.constant 0 : i32
    %c0_i32_0 = arith.constant 0 : i32
    %c0_i32_1 = arith.constant 0 : i32
    return %c0_i32, %c0_i32_0 : i32, i32
  }
  func.func @transform_6(%arg0: i32) -> (i32, i32, i32) {
    %c0_i32 = arith.constant 0 : i32
    %c0_i32_0 = arith.constant 0 : i32
    %c0_i32_1 = arith.constant 0 : i32
    return %c0_i32, %arg0, %c0_i32_0 : i32, i32, i32
  }
}

</mosaic_0001>

<bundles_post_ra>
// kernel: tpu_custom_call.1
= control target key start
LH: loop header
LB: loop body
LE: loop exit
PB: predicated region body
PF: predicated region fallthrough
CT: control target
= control target key end

     0   :  { %11 = vsyncpa [#allocation3], 0  ;;  %s9642_s0 = inlined_call_operand.hbm [shape: f32[8,32,32], index: 0, kind: input, shape index: {}]   ;;  %s9643_s1 = inlined_call_operand.vmem [shape: f32[32,96], index: 1, kind: input, shape index: {}]   ;;  %s9644_s2 = inlined_call_operand.vmem [shape: f32[32,32], index: 2, kind: input, shape index: {}]   ;;  %s9645_s3 = inlined_call_operand.vmem [shape: f32[32,64], index: 3, kind: input, shape index: {}]   ;;  %s9646_s4 = inlined_call_operand.vmem [shape: f32[64,32], index: 4, kind: input, shape index: {}]   ;;  %s9647_s5 = inlined_call_operand.vmem [shape: f32[8,128], index: 5, kind: input, shape index: {}]   ;;  %s9648_s6 = inlined_call_operand.hbm [shape: f32[8,32,32], index: 6, kind: output, shape index: {}]  }
   0x1   :  { %13 = vsyncpa [#allocation3 + $0x1], 0 }
   0x2   :  { %14 = vsyncpa [#allocation4], 0 }
   0x3   :  { %16 = vsyncpa [#allocation4 + $0x1], 0  ;;  %s7033_s21 = smov 0   ;;  %s7035_s22 = smov 0  }
   0x4   :  { %s7037_s23 = smov 0   ;;  %s7039_s24 = smov 0  }
   0x5 LB: > { %s7054_s25 = sadd.s32 4294967295, %s6971_s24   ;;  %s5198_s26 = sadd.s32 4294967294, %s6971_s24   ;;  %s6971_s24 = sphi %s7039_s24, %s9824_s24   ;;  %s6967_s23 = sphi %s7037_s23, %s9823_s23   ;;  %s6963_s22 = sphi %s7035_s22, %s9822_s22   ;;  %s6959_s21 = sphi %s7033_s21, %s9821_s21  }
   0x6   : > { %s7058_s27 = sadd.s32 1, %s6971_s24   ;;  %s29_s28 = sadd.s32 1, %s6967_s23 }
   0x7   : > { %s26_s29 = ssub.s32 %s6971_s24, %s7058_s27  ;;  %p36_p0 = scmp.ne.s32.totalorder %s6967_s23, %s6963_s22 }
   0x8   : > { %p27_p1 = scmp.eq.s32.totalorder %s26_s29, 0  ;;  %p37_p2 = scmp.eq.s32.totalorder %s6971_s24, 0 }
   0x9   : > { %p42_p3 = scmp.ne.s32.totalorder %s6963_s22, %s6959_s21  ;;  %p43_p4 = scmp.eq.s32.totalorder %s7054_s25, 0 }
   0xa   : > { %s7070_s30 = scalar_select %p27_p1, %s6967_s23, %s29_s28  }
   0xb   : > { %p7072_p5 = por %p37_p2, %p36_p0  ;;  %p7076_p6 = por %p43_p4, %p42_p3 }
   0xc   : > { %9707 = sst [smem:[#allocation13_spill]] %s7070_s30  ;;  %p171_p7 = scmp.eq.s32.totalorder %s7054_s25, 1 }
   0xd   : > { %p177_p8 = scmp.eq.s32.totalorder %s5198_s26, 1  ;;  %p5200_p11 = scmp.ge.s32.totalorder %s6971_s24, 2 }
   0xe   : > { %p7081_p9 = por %p171_p7, %p36_p0 }
   0xf   : > { %p7085_p10 = por %p177_p8, %p42_p3  ;;  %208 = sbr.rel (%p5200_p11) target bundleno = 33 (0x21), region = 36 }
  0x14   : > { %s212_s11 = sand.u32 1, %s6967_s23   ;;  %s5454_s12 = sshll.u32 %s6971_s24, 8 }
  0x15   : > { %s5201_s13 = sshll.u32 %s212_s11, 7  ;;  %s222_s16 = scalar_lea.hbm %s9642_s0, %s5454_s12 }
  0x16   : > { %s6516_s17 = scalar_select %p7072_p5, [#allocation0], [#allocation10] }
  0x17   : > { %s216_s18 = scalar_lea.vmem [#allocation2], %s5201_s13  ;;  %s6973_s26 = smov 512  }
  0x18   : > { %s235_s19 = sshll.u32 %s216_s18, 4  ;;  %s227_s20 = sld [smem:[%s6516_s17]]   ;;  %s236_s19 = int_to_ptr.vmem [resolvable:$true] %s235_s19 }
  0x19   : > { %6517 = sst [smem:[#allocation7]] (%p7072_p5), %s6973_s26  ;;  %s6974_s28 = smov 256  }
  0x1a   : > { %6518 = sst [smem:[#allocation7 + $0x1]] (%p7072_p5), %s6974_s28  ;;  %s6975_s29 = smov 2  }
  0x1b   : > { %6519 = sst [smem:[#allocation7 + $0x2]] (%p7072_p5), %s6975_s29  ;;  %s6976_s30 = smov 128  }
  0x1c   : > { %6520 = sst [smem:[#allocation7 + $0x3]] (%p7072_p5), %s6976_s30  ;;  %s6977_s13 = smov 8  }
  0x1d   : > { %6521 = sst [smem:[#allocation7 + $0x4]] (%p7072_p5), %s6976_s30  ;;  %s213_s15 = scalar_lea.sflag [#allocation3], %s212_s11 }
  0x1e   : > { %s5204_s12 = sshll.u32 %s227_s20, 26  ;;  %6522 = sst [smem:[#allocation7 + $0x5]] (%p7072_p5), %s6977_s13 }
  0x1f   : > { %s5205_s14 = sadd.s32 134217728, %s5204_s12  ;;  %s6978_s17 = smov 131072  }
  0x20   : > { %6523 = dma.general (%p7072_p5), %s222_s16, 2048, %s236_s19, %s213_s15, %s6978_s17, [#allocation7], %s5205_s14, 0  }
  0x21 PF: > { %p5206_p12 = scmp.ge.s32.totalorder %s6971_s24, 1  ;;  %p256_p13 = scmp.lt.s32.totalorder %s6971_s24, 3 }
  0x23   : > { %p257_p0 = pnand %p5206_p12, %p256_p13 }
  0x25   : > { %260 = sbr.rel (%p257_p0) target bundleno = 3887 (0xf2f), region = 44 }
  0x2a   : > { %s7116_s18 = sand.u32 1, %s6963_s22  }
  0x2b   : > { %s5207_s30 = sshll.u32 %s7116_s18, 7  ;;  %s263_s20 = scalar_lea.sflag [#allocation3], %s7116_s18 }
  0x2c   : > { %s7122_s11 = scalar_lea.vmem [#allocation2], %s5207_s30 }
  0x2d   : > { %6950 = dma.done.wait (%p7076_p6), %s263_s20, 2048  }
  0x2e   : > { %6952 = vsyncadd (%p7076_p6), %s263_s20, 4294965248  ;;  %vm322_vm0 = vcmask 261120   ;;  %v317_v0 = vld [vmem:[%s9643_s1 + $0x18] sm:$0xff]  ;;  %v316_v1 = vld [vmem:[%s9643_s1 + $0x10] sm:$0xff]  ;;  %v318_v20 = vlaneseq  ;;  %vm823_vm1 = vcmask 64512   ;;  %s6979_s15 = smov 96  }
  0x2f   : > { %5844 = vmatprep.subr.mxu0 %v317_v0  ;;  %v297_v2 = vld [vmem:[%s7122_s11] sm:$0xff]  ;;  %v315_v3 = vld [vmem:[%s9643_s1 + $0x8] sm:$0xff]  ;;  %v299_v6 = vld [vmem:[%s7122_s11 + $0x10] sm:$0xff]  ;;  %s6980_s17 = smov 64   ;;  %s6981_s20 = smov 88  }
  0x30   : > { %5845 = vmatpush3.msra.mxu0 %v317_v0  ;;  %5852 = vmatprep.mubr.msk.f32.mxu0 %vm322_vm0, %v297_v2  ;;  %v314_v4 = vld [vmem:[%s9643_s1] sm:$0xff]  ;;  %v298_v5 = vld [vmem:[%s7122_s11 + $0x8] sm:$0xff]  ;;  %v300_v7 = vld [vmem:[%s7122_s11 + $0x18] sm:$0xff]  ;;  %v7173_v21 = vshrl.u32 %v318_v20, 7  ;;  %s6983_s7 = smov 120   ;;  %s6984_s16 = smov 56  }
  0x31   : > { %5846 = vmatprep.subr.mxu0 %v316_v1  ;;  %v301_v8 = vld [vmem:[%s7122_s11 + $0x20] sm:$0xff]  ;;  %v302_v9 = vld [vmem:[%s7122_s11 + $0x28] sm:$0xff]  ;;  %v303_v10 = vld [vmem:[%s7122_s11 + $0x30] sm:$0xff]  ;;  %s6985_s28 = smov 80   ;;  %s6986_s8 = smov 112  }
  0x32   : > { %5847 = vmatpush3.msra.mxu0 %v316_v1  ;;  %v304_v11 = vld [vmem:[%s7122_s11 + $0x38] sm:$0xff]  ;;  %v305_v12 = vld [vmem:[%s7122_s11 + $0x40] sm:$0xff]  ;;  %v306_v13 = vld [vmem:[%s7122_s11 + $0x48] sm:$0xff]  ;;  %9712 = vst [vmem:[#allocation14_spill] sm:$0xff] %v7173_v21  ;;  %v320_v22 = vsub.s32 0, %v7173_v21  ;;  %s6987_s13 = smov 72  }
  0x33   : > { %5848 = vmatprep.subr.mxu0 %v315_v3  ;;  %v307_v14 = vld [vmem:[%s7122_s11 + $0x50] sm:$0xff]  ;;  %v308_v15 = vld [vmem:[%s7122_s11 + $0x58] sm:$0xff]  ;;  %v309_v16 = vld [vmem:[%s7122_s11 + $0x60] sm:$0xff]  ;;  %s6988_s14 = smov 104   ;;  %s9486_s26 = scalar_lea.vmem [#allocation5], %s5207_s30 }
  0x34   : > { %5849 = vmatpush3.msra.mxu0 %v315_v3  ;;  %v310_v17 = vld [vmem:[%s7122_s11 + $0x68] sm:$0xff]  ;;  %v311_v18 = vld [vmem:[%s7122_s11 + $0x70] sm:$0xff]  ;;  %v312_v19 = vld [vmem:[%s7122_s11 + $0x78] sm:$0xff]  ;;  %s5089_s30 = scalar_lea.sflag [#allocation4], %s7116_s18 }
  0x35   : > { %5850 = vmatprep.subr.mxu0 %v314_v4  ;;  %v313_v23 = vld [vmem:[%s9647_s5] sm:$0xff] }
  0x36   : > { %5851 = vmatpush3.msra.mxu0 %v314_v4  ;;  %v321_v25 = vrot.slane %v313_v23, %v320_v22 }
  0x37   : > { %5853 = vmatmul.mubr.msk.f32.vlgmr.msra.gmra.mxu0 %vm322_vm0, %v298_v5 }
  0x38   : > { %5855 = vmatprep.mubr.msk.f32.mxu0 %vm322_vm0, %v299_v6 }
  0x3b   : > { %5856 = vmatmul.mubr.msk.f32.gmra.mxu0 %vm322_vm0, %v300_v7 }
  0x3c   : > { %5858 = vmatprep.mubr.msk.f32.mxu0 %vm322_vm0, %v301_v8 }
  0x3f   : > { %5859 = vmatmul.mubr.msk.f32.gmra.mxu0 %vm322_vm0, %v302_v9 }
  0x40   : > { %5861 = vmatprep.mubr.msk.f32.mxu0 %vm322_vm0, %v303_v10 }
  0x43   : > { %5862 = vmatmul.mubr.msk.f32.gmra.mxu0 %vm322_vm0, %v304_v11 }
  0x44   : > { %5864 = vmatprep.mubr.msk.f32.mxu0 %vm322_vm0, %v305_v12 }
  0x47   : > { %5865 = vmatmul.mubr.msk.f32.gmra.mxu0 %vm322_vm0, %v306_v13 }
  0x48   : > { %5867 = vmatprep.mubr.msk.f32.mxu0 %vm322_vm0, %v307_v14 }
  0x4b   : > { %5868 = vmatmul.mubr.msk.f32.gmra.mxu0 %vm322_vm0, %v308_v15 }
  0x4c   : > { %5870 = vmatprep.mubr.msk.f32.mxu0 %vm322_vm0, %v309_v16 }
  0x4f   : > { %5871 = vmatmul.mubr.msk.f32.gmra.mxu0 %vm322_vm0, %v310_v17 }
  0x50   : > { %5873 = vmatprep.mubr.msk.f32.mxu0 %vm322_vm0, %v311_v18 }
  0x53   : > { %5874 = vmatmul.mubr.msk.f32.gmra.mxu0 %vm322_vm0, %v312_v19 }
  0xf7   : > { %v5854_v24 = vpop.f32.mrf.mxu0 }
  0xf8   : > { %v7241_v56 = vadd.f32 %v5854_v24, %v321_v25 }
  0xf9   : > { %v437_v26 = vpop.f32.mrf.mxu0 }
  0xfa   : > { %v7179_v27 = vadd.f32 %v437_v26, %v321_v25  ;;  %9728 = vst [vmem:[#allocation30_spill] sm:$0xff] %v7241_v56 }
  0xfb   : > { %v5857_v28 = vpop.f32.mrf.mxu0 }
  0xfc   : > { %9713 = vst [vmem:[#allocation15_spill] sm:$0xff] %v7179_v27  ;;  %5908 = vmatprep.mubr.msk.f32.mxu1 %vm823_vm1, %v7179_v27  ;;  %v7235_v55 = vadd.f32 %v5857_v28, %v321_v25 }
  0xfd   : > { %v447_v29 = vpop.f32.mrf.mxu0 }
  0xfe   : > { %v7227_v53 = vadd.f32 %v447_v29, %v321_v25  ;;  %9727 = vst [vmem:[#allocation29_spill] sm:$0xff] %v7235_v55 }
  0xff   : > { %v5860_v30 = vpop.f32.mrf.mxu0 }
 0x100   : > { %9725 = vst [vmem:[#allocation27_spill] sm:$0xff] %v7227_v53  ;;  %v7229_v54 = vadd.f32 %v5860_v30, %v321_v25 }
 0x101   : > { %v457_v31 = vpop.f32.mrf.mxu0 }
 0x102   : > { %v7219_v51 = vadd.f32 %v457_v31, %v321_v25  ;;  %9726 = vst [vmem:[#allocation28_spill] sm:$0xff] %v7229_v54 }
 0x103   : > { %v5863_v32 = vpop.f32.mrf.mxu0 }
 0x104   : > { %9723 = vst [vmem:[#allocation25_spill] sm:$0xff] %v7219_v51  ;;  %v7221_v52 = vadd.f32 %v5863_v32, %v321_v25 }
 0x105   : > { %v467_v33 = vpop.f32.mrf.mxu0 }
 0x106   : > { %v7211_v49 = vadd.f32 %v467_v33, %v321_v25  ;;  %9724 = vst [vmem:[#allocation26_spill] sm:$0xff] %v7221_v52  ;;  %v518_v33 = vadd.s32 8, %v7173_v21 }
 0x107   : > { %v5866_v34 = vpop.f32.mrf.mxu0 }
 0x108   : > { %9721 = vst [vmem:[#allocation23_spill] sm:$0xff] %v7211_v49  ;;  %v7213_v50 = vadd.f32 %v5866_v34, %v321_v25  ;;  %v534_v34 = vand.u32 127, %v318_v20 }
 0x109   : > { %v477_v35 = vpop.f32.mrf.mxu0 }
 0x10a   : > { %v7203_v47 = vadd.f32 %v477_v35, %v321_v25  ;;  %9722 = vst [vmem:[#allocation24_spill] sm:$0xff] %v7213_v50  ;;  %v546_v35 = vand.u32 15, %v518_v33 }
 0x10b   : > { %v5869_v36 = vpop.f32.mrf.mxu0 }
 0x10c   : > { %9719 = vst [vmem:[#allocation21_spill] sm:$0xff] %v7203_v47  ;;  %v7205_v48 = vadd.f32 %v5869_v36, %v321_v25  ;;  %v7361_v36 = vand.u32 15, %v534_v34 }
 0x10d   : > { %v487_v37 = vpop.f32.mrf.mxu0 }
 0x10e   : > { %v7195_v45 = vadd.f32 %v487_v37, %v321_v25  ;;  %9720 = vst [vmem:[#allocation22_spill] sm:$0xff] %v7205_v48  ;;  %v539_v37 = vand.u32 15, %v7173_v21  ;;  %vm740_vm2 = vcmp.eq.s32.totalorder %v546_v35, %v7361_v36  ;;  %v532_v35 = vadd.s32 120, %v7173_v21 }
 0x10f   : > { %v5872_v38 = vpop.f32.mrf.mxu0 }
 0x110   : > { %v7183_v39 = vadd.f32 %v5872_v38, %v321_v25  ;;  %9717 = vst [vmem:[#allocation19_spill] sm:$0xff] %v7195_v45  ;;  %v520_v38 = vadd.s32 24, %v7173_v21  ;;  %vm739_vm3 = vcmp.eq.s32.totalorder %v539_v37, %v7361_v36 }
 0x111   : > { %v497_v40 = vpop.f32.mrf.mxu0 }
 0x112   : > { %9714 = vst [vmem:[#allocation16_spill] sm:$0xff] %v7183_v39  ;;  %817 = vrot.lane.b32.xlu1 %v7183_v39, %s6979_s15  ;;  %v7187_v42 = vadd.f32 %v497_v40, %v321_v25  ;;  %v560_v40 = vand.u32 15, %v520_v38 }
 0x113   : > { %v5875_v41 = vpop.f32.mrf.mxu0 }
 0x114   : > { %9715 = vst [vmem:[#allocation17_spill] sm:$0xff] %v7187_v42  ;;  %v7189_v43 = vadd.f32 %v5875_v41, %v321_v25  ;;  %v519_v41 = vadd.s32 16, %v7173_v21  ;;  %vm742_vm4 = vcmp.eq.s32.totalorder %v560_v40, %v7361_v36 }
 0x115   : > { %v507_v44 = vpop.f32.mrf.mxu0 }
 0x116   : > { %9716 = vst [vmem:[#allocation18_spill] sm:$0xff] %v7189_v43  ;;  %821 = vrot.lane.b32.xlu0 %v7189_v43, %s6979_s15  ;;  %815 = vrot.lane.b32.xlu1 %v7187_v42, %s6979_s15  ;;  %v7197_v46 = vadd.f32 %v507_v44, %v321_v25  ;;  %v6982_v44 = vmov -1e+30  }
 0x117   : > { %v7372_v20 = vsel %vm739_vm3, 0.0, %v6982_v44 }
 0x118   : > { %9718 = vst [vmem:[#allocation20_spill] sm:$0xff] %v7197_v46  ;;  %9730 = vst [vmem:[#allocation32_spill] sm:$0xff] %v7372_v20 }
 0x11a   : > { %819 = vrot.lane.b32.xlu0 %v7197_v46, %s6979_s15  ;;  %811 = vrot.lane.b32.xlu1 %v7195_v45, %s6979_s15 }
 0x11e   : > { %813 = vrot.lane.b32.xlu0 %v7205_v48, %s6979_s15  ;;  %807 = vrot.lane.b32.xlu1 %v7203_v47, %s6979_s15 }
 0x122   : > { %809 = vrot.lane.b32.xlu0 %v7213_v50, %s6979_s15  ;;  %803 = vrot.lane.b32.xlu1 %v7211_v49, %s6979_s15 }
 0x126   : > { %805 = vrot.lane.b32.xlu0 %v7221_v52, %s6979_s15  ;;  %799 = vrot.lane.b32.xlu1 %v7219_v51, %s6979_s15 }
 0x12a   : > { %801 = vrot.lane.b32.xlu0 %v7229_v54, %s6979_s15  ;;  %795 = vrot.lane.b32.xlu1 %v7227_v53, %s6979_s15 }
 0x12e   : > { %797 = vrot.lane.b32.xlu0 %v7235_v55, %s6979_s15  ;;  %791 = vrot.lane.b32.xlu1 %v7179_v27, %s6979_s15 }
 0x132   : > { %793 = vrot.lane.b32.xlu0 %v7241_v56, %s6979_s15  ;;  %1207 = vrot.lane.b32.xlu1 %v7189_v43, %s6980_s17  ;;  %s6989_s15 = smov 48  }
 0x136   : > { %1203 = vrot.lane.b32.xlu0 %v7183_v39, %s6980_s17  ;;  %1201 = vrot.lane.b32.xlu1 %v7187_v42, %s6980_s17 }
 0x13a   : > { %1199 = vrot.lane.b32.xlu0 %v7205_v48, %s6980_s17  ;;  %1197 = vrot.lane.b32.xlu1 %v7195_v45, %s6980_s17 }
 0x13e   : > { %1191 = vrot.lane.b32.xlu0 %v7221_v52, %s6980_s17  ;;  %1195 = vrot.lane.b32.xlu1 %v7213_v50, %s6980_s17 }
 0x142   : > { %1187 = vrot.lane.b32.xlu0 %v7229_v54, %s6980_s17  ;;  %1193 = vrot.lane.b32.xlu1 %v7203_v47, %s6980_s17 }
 0x146   : > { %1183 = vrot.lane.b32.xlu0 %v7235_v55, %s6980_s17  ;;  %1189 = vrot.lane.b32.xlu1 %v7211_v49, %s6980_s17 }
 0x14a   : > { %1179 = vrot.lane.b32.xlu0 %v7241_v56, %s6980_s17  ;;  %1185 = vrot.lane.b32.xlu1 %v7219_v51, %s6980_s17 }
 0x14e   : > { %1432 = vrot.lane.b32.xlu0 %v7189_v43, %s6981_s20  ;;  %1181 = vrot.lane.b32.xlu1 %v7227_v53, %s6980_s17 }
 0x152   : > { %1428 = vrot.lane.b32.xlu0 %v7183_v39, %s6981_s20  ;;  %1177 = vrot.lane.b32.xlu1 %v7179_v27, %s6980_s17 }
 0x156   : > { %1424 = vrot.lane.b32.xlu0 %v7205_v48, %s6981_s20  ;;  %1426 = vrot.lane.b32.xlu1 %v7187_v42, %s6981_s20 }
 0x15a   : > { %1420 = vrot.lane.b32.xlu0 %v7213_v50, %s6981_s20  ;;  %1422 = vrot.lane.b32.xlu1 %v7195_v45, %s6981_s20 }
 0x15e   : > { %1416 = vrot.lane.b32.xlu0 %v7221_v52, %s6981_s20  ;;  %1418 = vrot.lane.b32.xlu1 %v7203_v47, %s6981_s20 }
 0x162   : > { %1205 = vrot.lane.b32.xlu0 %v7197_v46, %s6980_s17  ;;  %1430 = vrot.lane.b32.xlu1 %v7197_v46, %s6981_s20 }
 0x166   : > { %1412 = vrot.lane.b32.xlu0 %v7229_v54, %s6981_s20 }
 0x16a   : > { %1410 = vrot.lane.b32.xlu0 %v7219_v51, %s6981_s20 }
 0x16e   : > { %1408 = vrot.lane.b32.xlu0 %v7235_v55, %s6981_s20 }
 0x184   : > { %v818_v57 = vpop.permute.xlu1 %817 }
 0x188   : > { %v822_v58 = vpop.permute.xlu0 %821  ;;  %v816_v59 = vpop.permute.xlu1 %815 }
 0x189   : > { %5876 = vmatprep.subr.msk.mxu1 %vm823_vm1, %v822_v58 }
 0x18a   : > { %5877 = vmatpush3.xpose.msk.msra.mxu1 %vm823_vm1, %v822_v58 }
 0x18c   : > { %v820_v60 = vpop.permute.xlu0 %819  ;;  %v812_v61 = vpop.permute.xlu1 %811 }
 0x18d   : > { %5878 = vmatprep.subr.msk.mxu1 %vm823_vm1, %v820_v60 }
 0x18e   : > { %5879 = vmatpush3.xpose.msk.msra.mxu1 %vm823_vm1, %v820_v60  ;;  %v553_v60 = vand.u32 15, %v519_v41 }
 0x18f   : > { %5880 = vmatprep.subr.msk.mxu1 %vm823_vm1, %v818_v57 }
 0x190   : > { %v814_v62 = vpop.permute.xlu0 %813  ;;  %v808_v63 = vpop.permute.xlu1 %807  ;;  %vm741_vm5 = vcmp.eq.s32.totalorder %v553_v60, %v7361_v36 }
 0x192   : > { %5881 = vmatpush3.xpose.msk.msra.mxu1 %vm823_vm1, %v818_v57  ;;  %v7369_v57 = vsel %vm740_vm2, 0.0, %v6982_v44 }
 0x193   : > { %5882 = vmatprep.subr.msk.mxu1 %vm823_vm1, %v816_v59  ;;  %9729 = vst [vmem:[#allocation31_spill] sm:$0xff] %v7369_v57 }
 0x194   : > { %v810_v0 = vpop.permute.xlu0 %809  ;;  %v804_v1 = vpop.permute.xlu1 %803 }
 0x196   : > { %5883 = vmatpush3.xpose.msk.msra.mxu1 %vm823_vm1, %v816_v59 }
 0x197   : > { %5884 = vmatprep.subr.msk.mxu1 %vm823_vm1, %v814_v62 }
 0x198   : > { %v806_v2 = vpop.permute.xlu0 %805  ;;  %v800_v3 = vpop.permute.xlu1 %799 }
 0x19a   : > { %5885 = vmatpush3.xpose.msk.msra.mxu1 %vm823_vm1, %v814_v62 }
 0x19b   : > { %5886 = vmatprep.subr.msk.mxu1 %vm823_vm1, %v812_v61 }
 0x19c   : > { %v802_v4 = vpop.permute.xlu0 %801  ;;  %v796_v5 = vpop.permute.xlu1 %795 }
 0x19e   : > { %5887 = vmatpush3.xpose.msk.msra.mxu1 %vm823_vm1, %v812_v61  ;;  %v522_v61 = vadd.s32 40, %v7173_v21 }
 0x19f   : > { %5888 = vmatprep.subr.msk.mxu1 %vm823_vm1, %v810_v0 }
 0x1a0   : > { %v798_v6 = vpop.permute.xlu0 %797  ;;  %v792_v7 = vpop.permute.xlu1 %791 }
 0x1a2   : > { %5889 = vmatpush3.xpose.msk.msra.mxu1 %vm823_vm1, %v810_v0  ;;  %v7384_v0 = vsel %vm742_vm4, 0.0, %v6982_v44 }
 0x1a3   : > { %5890 = vmatprep.subr.msk.mxu1 %vm823_vm1, %v808_v63  ;;  %9731 = vst [vmem:[#allocation33_spill] sm:$0xff] %v7384_v0 }
 0x1a4   : > { %v794_v8 = vpop.permute.xlu0 %793  ;;  %v1208_v9 = vpop.permute.xlu1 %1207 }
 0x1a5   : > { %5932 = vmatprep.subr.mxu0 %v1208_v9 }
 0x1a6   : > { %5891 = vmatpush3.xpose.msk.msra.mxu1 %vm823_vm1, %v808_v63  ;;  %5933 = vmatpush3.msra.mxu0 %v1208_v9  ;;  %v526_v9 = vadd.s32 72, %v7173_v21 }
 0x1a7   : > { %5892 = vmatprep.subr.msk.mxu1 %vm823_vm1, %v806_v2 }
 0x1a8   : > { %v1204_v10 = vpop.permute.xlu0 %1203  ;;  %v1202_v18 = vpop.permute.xlu1 %1201 }
 0x1aa   : > { %5893 = vmatpush3.xpose.msk.msra.mxu1 %vm823_vm1, %v806_v2  ;;  %v574_v2 = vand.u32 15, %v522_v61 }
 0x1ab   : > { %5894 = vmatprep.subr.msk.mxu1 %vm823_vm1, %v804_v1 }
 0x1ac   : > { %v1200_v11 = vpop.permute.xlu0 %1199  ;;  %v1198_v22 = vpop.permute.xlu1 %1197  ;;  %vm744_vm6 = vcmp.eq.s32.totalorder %v574_v2, %v7361_v36 }
 0x1ae   : > { %5895 = vmatpush3.xpose.msk.msra.mxu1 %vm823_vm1, %v804_v1 }
 0x1af   : > { %5896 = vmatprep.subr.msk.mxu1 %vm823_vm1, %v802_v4 }
 0x1b0   : > { %v1192_v12 = vpop.permute.xlu0 %1191  ;;  %v1196_v25 = vpop.permute.xlu1 %1195 }
 0x1b2   : > { %5897 = vmatpush3.xpose.msk.msra.mxu1 %vm823_vm1, %v802_v4 }
 0x1b3   : > { %5898 = vmatprep.subr.msk.mxu1 %vm823_vm1, %v800_v3 }
 0x1b4   : > { %v1188_v13 = vpop.permute.xlu0 %1187  ;;  %v1194_v28 = vpop.permute.xlu1 %1193 }
 0x1b6   : > { %5899 = vmatpush3.xpose.msk.msra.mxu1 %vm823_vm1, %v800_v3  ;;  %v524_v3 = vadd.s32 56, %v7173_v21 }
 0x1b7   : > { %5900 = vmatprep.subr.msk.mxu1 %vm823_vm1, %v798_v6 }
 0x1b8   : > { %v1184_v14 = vpop.permute.xlu0 %1183  ;;  %v1190_v29 = vpop.permute.xlu1 %1189 }
 0x1ba   : > { %5901 = vmatpush3.xpose.msk.msra.mxu1 %vm823_vm1, %v798_v6  ;;  %v7393_v6 = vsel %vm741_vm5, 0.0, %v6982_v44 }
 0x1bb   : > { %5902 = vmatprep.subr.msk.mxu1 %vm823_vm1, %v796_v5  ;;  %9732 = vst [vmem:[#allocation34_spill] sm:$0xff] %v7393_v6 }
 0x1bc   : > { %v1180_v15 = vpop.permute.xlu0 %1179  ;;  %v1186_v30 = vpop.permute.xlu1 %1185 }
 0x1be   : > { %5903 = vmatpush3.xpose.msk.msra.mxu1 %vm823_vm1, %v796_v5 }
 0x1bf   : > { %5904 = vmatprep.subr.msk.mxu1 %vm823_vm1, %v794_v8 }
 0x1c0   : > { %v7314_v16 = vpop.permute.xlu0 %1432  ;;  %v1182_v31 = vpop.permute.xlu1 %1181 }
 0x1c2   : > { %5905 = vmatpush3.xpose.msk.msra.mxu1 %vm823_vm1, %v794_v8  ;;  %v588_v8 = vand.u32 15, %v524_v3 }
 0x1c3   : > { %5906 = vmatprep.subr.msk.mxu1 %vm823_vm1, %v792_v7 }
 0x1c4   : > { %v7318_v17 = vpop.permute.xlu0 %1428  ;;  %v1178_v32 = vpop.permute.xlu1 %1177  ;;  %vm746_vm7 = vcmp.eq.s32.totalorder %v588_v8, %v7361_v36 }
 0x1c6   : > { %5907 = vmatpush3.xpose.msk.msra.mxu1 %vm823_vm1, %v792_v7 }
 0x1c8   : > { %v7321_v19 = vpop.permute.xlu0 %1424 }
 0x1c9   : > { %5909 = vmatmul.mubr.msk.f32.vlgmr.msra.gmra.mxu1 %vm823_vm1, %v7241_v56 }
 0x1ca   : > { %5911 = vmatprep.mubr.msk.f32.mxu1 %vm823_vm1, %v7227_v53 }
 0x1cc   : > { %v7327_v23 = vpop.permute.xlu0 %1420 }
 0x1cd   : > { %5912 = vmatmul.mubr.msk.f32.gmra.mxu1 %vm823_vm1, %v7235_v55 }
 0x1ce   : > { %5914 = vmatprep.mubr.msk.f32.mxu1 %vm823_vm1, %v7219_v51 }
 0x1d0   : > { %v7333_v24 = vpop.permute.xlu0 %1416 }
 0x1d1   : > { %5915 = vmatmul.mubr.msk.f32.gmra.mxu1 %vm823_vm1, %v7229_v54 }
 0x1d2   : > { %5917 = vmatprep.mubr.msk.f32.mxu1 %vm823_vm1, %v7211_v49 }
 0x1d4   : > { %v1206_v26 = vpop.permute.xlu0 %1205 }
 0x1d5   : > { %5918 = vmatmul.mubr.msk.f32.gmra.mxu1 %vm823_vm1, %v7221_v52  ;;  %5934 = vmatprep.subr.mxu0 %v1206_v26 }
 0x1d6   : > { %5920 = vmatprep.mubr.msk.f32.mxu1 %vm823_vm1, %v7203_v47  ;;  %5935 = vmatpush3.msra.mxu0 %v1206_v26 }
 0x1d7   : > { %5936 = vmatprep.subr.mxu0 %v1204_v10 }
 0x1d8   : > { %5937 = vmatpush3.msra.mxu0 %v1204_v10 }
 0x1d9   : > { %5921 = vmatmul.mubr.msk.f32.gmra.mxu1 %vm823_vm1, %v7213_v50  ;;  %5938 = vmatprep.subr.mxu0 %v1202_v18 }
 0x1da   : > { %5923 = vmatprep.mubr.msk.f32.mxu1 %vm823_vm1, %v7195_v45  ;;  %5939 = vmatpush3.msra.mxu0 %v1202_v18 }
 0x1db   : > { %5940 = vmatprep.subr.mxu0 %v1200_v11 }
 0x1dc   : > { %5941 = vmatpush3.msra.mxu0 %v1200_v11 }
 0x1dd   : > { %5924 = vmatmul.mubr.msk.f32.gmra.mxu1 %vm823_vm1, %v7205_v48  ;;  %5942 = vmatprep.subr.mxu0 %v1198_v22 }
 0x1de   : > { %5926 = vmatprep.mubr.msk.f32.mxu1 %vm823_vm1, %v7187_v42  ;;  %5943 = vmatpush3.msra.mxu0 %v1198_v22 }
 0x1df   : > { %5944 = vmatprep.subr.mxu0 %v1196_v25 }
 0x1e0   : > { %5945 = vmatpush3.msra.mxu0 %v1196_v25  ;;  %v7411_v25 = vsel %vm746_vm7, 0.0, %v6982_v44 }
 0x1e1   : > { %5927 = vmatmul.mubr.msk.f32.gmra.mxu1 %vm823_vm1, %v7183_v39  ;;  %5946 = vmatprep.subr.mxu0 %v1194_v28  ;;  %9734 = vst [vmem:[#allocation36_spill] sm:$0xff] %v7411_v25 }
 0x1e2   : > { %5929 = vmatprep.mubr.msk.f32.mxu1 %vm823_vm1, %v7197_v46  ;;  %5947 = vmatpush3.msra.mxu0 %v1194_v28 }
 0x1e3   : > { %5948 = vmatprep.subr.mxu0 %v1192_v12 }
 0x1e4   : > { %5949 = vmatpush3.msra.mxu0 %v1192_v12  ;;  %v7402_v12 = vsel %vm744_vm6, 0.0, %v6982_v44 }
 0x1e5   : > { %5930 = vmatmul.mubr.msk.f32.gmra.mxu1 %vm823_vm1, %v7189_v43  ;;  %5950 = vmatprep.subr.mxu0 %v1190_v29  ;;  %9733 = vst [vmem:[#allocation35_spill] sm:$0xff] %v7402_v12 }
 0x1e6   : > { %5951 = vmatpush3.msra.mxu0 %v1190_v29  ;;  %v530_v29 = vadd.s32 104, %v7173_v21 }
 0x1e7   : > { %5952 = vmatprep.subr.mxu0 %v1188_v13 }
 0x1e8   : > { %5953 = vmatpush3.msra.mxu0 %v1188_v13  ;;  %v630_v34 = vand.u32 15, %v530_v29 }
 0x1e9   : > { %5954 = vmatprep.subr.mxu0 %v1186_v30 }
 0x1ea   : > { %5955 = vmatpush3.msra.mxu0 %v1186_v30  ;;  %vm752_vm10 = vcmp.eq.s32.totalorder %v630_v34, %v7361_v36 }
 0x1eb   : > { %5956 = vmatprep.subr.mxu0 %v1184_v14  ;;  %v7439_v61 = vsel %vm752_vm10, 0.0, %v6982_v44 }
 0x1ec   : > { %5957 = vmatpush3.msra.mxu0 %v1184_v14  ;;  %v602_v14 = vand.u32 15, %v526_v9  ;;  %9737 = vst [vmem:[#allocation39_spill] sm:$0xff] %v7439_v61  ;;  %v523_v9 = vadd.s32 48, %v7173_v21 }
 0x1ed   : > { %5958 = vmatprep.subr.mxu0 %v1182_v31 }
 0x1ee   : > { %5959 = vmatpush3.msra.mxu0 %v1182_v31  ;;  %vm748_vm8 = vcmp.eq.s32.totalorder %v602_v14, %v7361_v36  ;;  %v525_v14 = vadd.s32 64, %v7173_v21 }
 0x1ef   : > { %5960 = vmatprep.subr.mxu0 %v1180_v15 }
 0x1f0   : > { %5961 = vmatpush3.msra.mxu0 %v1180_v15  ;;  %v528_v15 = vadd.s32 88, %v7173_v21 }
 0x1f1   : > { %5962 = vmatprep.subr.mxu0 %v1178_v32 }
 0x1f2   : > { %5963 = vmatpush3.msra.mxu0 %v1178_v32  ;;  %v616_v28 = vand.u32 15, %v528_v15  ;;  %v7420_v32 = vsel %vm748_vm8, 0.0, %v6982_v44 }
 0x1f3   : > { %5988 = vmatprep.subr.msk.mxu0 %vm823_vm1, %v7314_v16  ;;  %9735 = vst [vmem:[#allocation37_spill] sm:$0xff] %v7420_v32 }
 0x1f4   : > { %vm750_vm9 = vcmp.eq.s32.totalorder %v616_v28, %v7361_v36  ;;  %v527_v28 = vadd.s32 80, %v7173_v21 }
 0x1f5   : > { %v7431_v40 = vsel %vm750_vm9, 0.0, %v6982_v44 }
 0x1f6   : > { %9736 = vst [vmem:[#allocation38_spill] sm:$0xff] %v7431_v40  ;;  %v609_v34 = vand.u32 15, %v527_v28 }
 0x1f8   : > { %vm749_vm15 = vcmp.eq.s32.totalorder %v609_v34, %v7361_v36 }
 0x289   : > { %v5910_v58 = vpop.f32.mrf.mxu1 }
 0x28a   : > { %v7375_v59 = vadd.f32 %v5910_v58, %v7369_v57  ;;  %v644_v58 = vand.u32 15, %v532_v35  ;;  %v529_v35 = vadd.s32 96, %v7173_v21 }
 0x28b   : > { %v954_v62 = vpop.f32.mrf.mxu1 }
 0x28c   : > { %v7380_v63 = vadd.f32 %v954_v62, %v7372_v20  ;;  %1035 = vmax.xlane.f32.xlu1 %v7375_v59  ;;  %vm754_vm11 = vcmp.eq.s32.totalorder %v644_v58, %v7361_v36 }
 0x28d   : > { %v5913_v1 = vpop.f32.mrf.mxu1  ;;  %v7447_v2 = vsel %vm754_vm11, 0.0, %v6982_v44 }
 0x28e   : > { %1033 = vmax.xlane.f32.xlu0 %v7380_v63  ;;  %v7390_v5 = vadd.f32 %v5913_v1, %v7384_v0  ;;  %9738 = vst [vmem:[#allocation40_spill] sm:$0xff] %v7447_v2 }
 0x28f   : > { %v964_v4 = vpop.f32.mrf.mxu1 }
 0x290   : > { %v7399_v11 = vadd.f32 %v964_v4, %v7393_v6 }
 0x291   : > { %v5916_v7 = vpop.f32.mrf.mxu1 }
 0x292   : > { %1039 = vmax.xlane.f32.xlu0 %v7390_v5  ;;  %v7408_v22 = vadd.f32 %v5916_v7, %v7402_v12  ;;  %v521_v7 = vadd.s32 32, %v7173_v21 }
 0x293   : > { %v974_v10 = vpop.f32.mrf.mxu1 }
 0x294   : > { %v567_v8 = vand.u32 15, %v521_v7 }
 0x295   : > { %v5919_v13 = vpop.f32.mrf.mxu1 }
 0x296   : > { %1037 = vmax.xlane.f32.xlu0 %v7399_v11  ;;  %v7417_v31 = vadd.f32 %v5919_v13, %v7411_v25  ;;  %vm743_vm12 = vcmp.eq.s32.totalorder %v567_v8, %v7361_v36  ;;  %v581_v13 = vand.u32 15, %v523_v9  ;;  %v7487_v8 = vsel %vm749_vm15, 0.0, %v6982_v44 }
 0x297   : > { %v984_v18 = vpop.f32.mrf.mxu1  ;;  %v7459_v15 = vsel %vm743_vm12, 0.0, %v6982_v44  ;;  %9742 = vst [vmem:[#allocation44_spill] sm:$0xff] %v7487_v8 }
 0x298   : > { %9739 = vst [vmem:[#allocation41_spill] sm:$0xff] %v7459_v15  ;;  %vm745_vm13 = vcmp.eq.s32.totalorder %v581_v13, %v7361_v36  ;;  %v7464_v29 = vadd.f32 %v974_v10, %v7459_v15  ;;  %v623_v10 = vand.u32 15, %v529_v35 }
 0x299   : > { %v5922_v26 = vpop.f32.mrf.mxu1 }
 0x29a   : > { %1043 = vmax.xlane.f32.xlu0 %v7408_v22  ;;  %v7428_v38 = vadd.f32 %v5922_v26, %v7420_v32  ;;  %v595_v26 = vand.u32 15, %v525_v14  ;;  %vm751_vm2 = vcmp.eq.s32.totalorder %v623_v10, %v7361_v36 }
 0x29b   : > { %v994_v30 = vpop.f32.mrf.mxu1  ;;  %v7495_v13 = vsel %vm751_vm2, 0.0, %v6982_v44 }
 0x29c   : > { %vm747_vm14 = vcmp.eq.s32.totalorder %v595_v26, %v7361_v36  ;;  %9743 = vst [vmem:[#allocation45_spill] sm:$0xff] %v7495_v13 }
 0x29d   : > { %1414 = vrot.lane.b32.xlu1 %v7211_v49, %s6981_s20  ;;  %v5925_v33 = vpop.f32.mrf.mxu1  ;;  %v7476_v58 = vsel %vm747_vm14, 0.0, %v6982_v44 }
 0x29e   : > { %1047 = vmax.xlane.f32.xlu0 %v7417_v31  ;;  %v7436_v60 = vadd.f32 %v5925_v33, %v7431_v40  ;;  %v7467_v33 = vsel %vm745_vm13, 0.0, %v6982_v44  ;;  %9741 = vst [vmem:[#allocation43_spill] sm:$0xff] %v7476_v58  ;;  %v7484_v7 = vadd.f32 %v994_v30, %v7476_v58 }
 0x29f   : > { %v1004_v37 = vpop.f32.mrf.mxu1  ;;  %9740 = vst [vmem:[#allocation42_spill] sm:$0xff] %v7467_v33 }
 0x2a0   : > { %v7492_v9 = vadd.f32 %v1004_v37, %v7487_v8  ;;  %v7510_v37 = vpop.permute.xlu1 %1426 }
 0x2a1   : > { %v5928_v41 = vpop.f32.mrf.mxu1 }
 0x2a2   : > { %1051 = vmax.xlane.f32.xlu0 %v7428_v38  ;;  %v7444_v1 = vadd.f32 %v5928_v41, %v7439_v61  ;;  %v7473_v41 = vadd.f32 %v984_v18, %v7467_v33 }
 0x2a3   : > { %v1014_v62 = vpop.f32.mrf.mxu1 }
 0x2a4   : > { %v7500_v30 = vadd.f32 %v1014_v62, %v7495_v13  ;;  %v7512_v34 = vpop.permute.xlu1 %1422 }
 0x2a5   : > { %v5931_v3 = vpop.f32.mrf.mxu1 }
 0x2a6   : > { %1055 = vmax.xlane.f32.xlu0 %v7436_v60  ;;  %v7451_v4 = vadd.f32 %v5931_v3, %v7447_v2  ;;  %v531_v3 = vadd.s32 112, %v7173_v21 }
 0x2a7   : > { %v1024_v26 = vpop.f32.mrf.mxu1 }
 0x2a8   : > { %v637_v18 = vand.u32 15, %v531_v3  ;;  %v7516_v35 = vpop.permute.xlu1 %1418 }
 0x2aa   : > { %1059 = vmax.xlane.f32.xlu0 %v7444_v1  ;;  %vm753_vm3 = vcmp.eq.s32.totalorder %v637_v18, %v7361_v36  ;;  %v7514_v36 = vpop.permute.xlu0 %1412 }
 0x2ab   : > { %v7503_v14 = vsel %vm753_vm3, 0.0, %v6982_v44 }
 0x2ac   : > { %9744 = vst [vmem:[#allocation46_spill] sm:$0xff] %v7503_v14  ;;  %v7507_v28 = vadd.f32 %v1024_v26, %v7503_v14  ;;  %v7520_v44 = vpop.permute.xlu1 %1430 }
 0x2ae   : > { %1063 = vmax.xlane.f32.xlu0 %v7451_v4  ;;  %v7518_v62 = vpop.permute.xlu0 %1410 }
 0x2b2   : > { %v7522_v10 = vpop.permute.xlu0 %1408 }
 0x2c1   : > { %1041 = vmax.xlane.f32.xlu1 %v7464_v29 }
 0x2c4   : > { %1406 = vrot.lane.b32.xlu0 %v7227_v53, %s6981_s20 }
 0x2c5   : > { %1045 = vmax.xlane.f32.xlu1 %v7473_v41 }
 0x2c9   : > { %1049 = vmax.xlane.f32.xlu1 %v7484_v7 }
 0x2cd   : > { %1053 = vmax.xlane.f32.xlu1 %v7492_v9 }
 0x2d1   : > { %1057 = vmax.xlane.f32.xlu1 %v7500_v30 }
 0x2d5   : > { %1061 = vmax.xlane.f32.xlu1 %v7507_v28 }
 0x315   : > { %v1036_v3 = vpop.xlane.xlu1 %1035 }
 0x316   : > { %v1066_v18 = vsub.f32 %v7375_v59, %v1036_v3 }
 0x317   : > { %v1034_v26 = vpop.xlane.xlu0 %1033 }
 0x318   : > { %v1083_v21 = vmul.f32 1.442695, %v1066_v18  ;;  %v1065_v2 = vsub.f32 %v7380_v63, %v1034_v26 }
 0x31a   : > { %6595 = vpow2.f32 %v1083_v21  ;;  %v1081_v14 = vmul.f32 1.442695, %v1065_v2 }
 0x31b   : > { %v1040_v61 = vpop.xlane.xlu0 %1039 }
 0x31c   : > { %6597 = vpow2.f32 %v1081_v14  ;;  %v1068_v13 = vsub.f32 %v7390_v5, %v1040_v61 }
 0x31e   : > { %v1087_v40 = vmul.f32 1.442695, %v1068_v13 }
 0x31f   : > { %v1038_v8 = vpop.xlane.xlu0 %1037 }
 0x320   : > { %6599 = vpow2.f32 %v1087_v40  ;;  %v1067_v32 = vsub.f32 %v7399_v11, %v1038_v8 }
 0x322   : > { %v1085_v58 = vmul.f32 1.442695, %v1067_v32 }
 0x323   : > { %v1044_v25 = vpop.xlane.xlu0 %1043 }
 0x324   : > { %6601 = vpow2.f32 %v1085_v58  ;;  %v1070_v59 = vsub.f32 %v7408_v22, %v1044_v25  ;;  %v7544_v22 = vpop.permute.xlu1 %1414 }
 0x326   : > { %v1091_v3 = vmul.f32 1.442695, %v1070_v59 }
 0x327   : > { %v7529_v18 = vpop.eup %6595  ;;  %v1048_v25 = vpop.xlane.xlu0 %1047 }
 0x328   : > { %6603 = vpow2.f32 %v1091_v3  ;;  %1115 = vadd.xlane.f32.xlu0 %v7529_v18  ;;  %v1072_v32 = vsub.f32 %v7417_v31, %v1048_v25 }
 0x329   : > { %v7532_v21 = vpop.eup %6597 }
 0x32a   : > { %1113 = vadd.xlane.f32.xlu1 %v7532_v21  ;;  %v1095_v8 = vmul.f32 1.442695, %v1072_v32 }
 0x32b   : > { %v1052_v2 = vpop.xlane.xlu0 %1051 }
 0x32c   : > { %v1074_v14 = vsub.f32 %v7428_v38, %v1052_v2 }
 0x32d   : > { %v7535_v63 = vpop.eup %6599 }
 0x32e   : > { %1119 = vadd.xlane.f32.xlu1 %v7535_v63  ;;  %v1099_v33 = vmul.f32 1.442695, %v1074_v14 }
 0x32f   : > { %v1056_v31 = vpop.xlane.xlu0 %1055 }
 0x331   : > { %v7538_v5 = vpop.eup %6601 }
 0x332   : > { %1117 = vadd.xlane.f32.xlu0 %v7538_v5 }
 0x335   : > { %v7541_v11 = vpop.eup %6603 }
 0x336   : > { %1123 = vadd.xlane.f32.xlu1 %v7541_v11 }
 0x34a   : > { %v1042_v40 = vpop.xlane.xlu1 %1041 }
 0x34b   : > { %v1069_v61 = vsub.f32 %v7464_v29, %v1042_v40  ;;  %v1076_v29 = vsub.f32 %v7436_v60, %v1056_v31 }
 0x34d   : > { %v1089_v58 = vmul.f32 1.442695, %v1069_v61  ;;  %v1103_v38 = vmul.f32 1.442695, %v1076_v29 }
 0x34e   : > { %v1046_v13 = vpop.xlane.xlu1 %1045 }
 0x34f   : > { %6605 = vpow2.f32 %v1089_v58  ;;  %v1071_v26 = vsub.f32 %v7473_v41, %v1046_v13 }
 0x350   : > { %6607 = vpow2.f32 %v1095_v8 }
 0x351   : > { %v1093_v59 = vmul.f32 1.442695, %v1071_v26 }
 0x352   : > { %v1050_v3 = vpop.xlane.xlu1 %1049 }
 0x353   : > { %6609 = vpow2.f32 %v1093_v59  ;;  %v1073_v12 = vsub.f32 %v7484_v7, %v1050_v3 }
 0x354   : > { %6611 = vpow2.f32 %v1099_v33 }
 0x355   : > { %v1097_v25 = vmul.f32 1.442695, %v1073_v12 }
 0x356   : > { %v1054_v15 = vpop.xlane.xlu1 %1053 }
 0x357   : > { %v1075_v32 = vsub.f32 %v7492_v9, %v1054_v15  ;;  %6613 = vpow2.f32 %v1097_v25  ;;  %v1060_v9 = vpop.xlane.xlu0 %1059 }
 0x358   : > { %v1078_v58 = vsub.f32 %v7444_v1, %v1060_v9 }
 0x359   : > { %v1101_v40 = vmul.f32 1.442695, %v1075_v32 }
 0x35a   : > { %v1058_v2 = vpop.xlane.xlu1 %1057  ;;  %v1107_v14 = vmul.f32 1.442695, %v1078_v58 }
 0x35b   : > { %6615 = vpow2.f32 %v1101_v40  ;;  %v1064_v8 = vpop.xlane.xlu0 %1063  ;;  %v1077_v26 = vsub.f32 %v7500_v30, %v1058_v2 }
 0x35c   : > { %v7553_v41 = vpop.eup %6605  ;;  %6617 = vpow2.f32 %v1103_v38  ;;  %v1080_v13 = vsub.f32 %v7451_v4, %v1064_v8 }
 0x35d   : > { %1121 = vadd.xlane.f32.xlu1 %v7553_v41  ;;  %v7556_v61 = vpop.eup %6607  ;;  %6619 = vpow2.f32 %v1107_v14  ;;  %v1105_v31 = vmul.f32 1.442695, %v1077_v26 }
 0x35e   : > { %v1062_v59 = vpop.xlane.xlu1 %1061  ;;  %v1111_v3 = vmul.f32 1.442695, %v1080_v13 }
 0x35f   : > { %v1079_v25 = vsub.f32 %v7507_v28, %v1062_v59  ;;  %v7594_v28 = vpop.permute.xlu0 %1406 }
 0x360   : > { %v7558_v7 = vpop.eup %6609  ;;  %6621 = vpow2.f32 %v1111_v3 }
 0x361   : > { %1125 = vadd.xlane.f32.xlu0 %v7558_v7  ;;  %1127 = vadd.xlane.f32.xlu1 %v7556_v61  ;;  %v7562_v12 = vpop.eup %6611  ;;  %6623 = vpow2.f32 %v1105_v31  ;;  %v1109_v29 = vmul.f32 1.442695, %v1079_v25 }
 0x363   : > { %6625 = vpow2.f32 %v1109_v29 }
 0x364   : > { %v7565_v60 = vpop.eup %6613 }
 0x365   : > { %1131 = vadd.xlane.f32.xlu1 %v7562_v12 }
 0x368   : > { %v7567_v15 = vpop.eup %6615 }
 0x369   : > { %1133 = vadd.xlane.f32.xlu0 %v7567_v15  ;;  %1129 = vadd.xlane.f32.xlu1 %v7565_v60  ;;  %v7571_v33 = vpop.eup %6617 }
 0x36a   : > { %v7582_v32 = vpop.eup %6619 }
 0x36d   : > { %1135 = vadd.xlane.f32.xlu1 %v7571_v33  ;;  %v7585_v1 = vpop.eup %6621 }
 0x36e   : > { %v7587_v4 = vpop.eup %6623 }
 0x370   : > { %v7591_v30 = vpop.eup %6625 }
 0x37e   : > { %1402 = vrot.lane.b32.xlu1 %v7179_v27, %s6981_s20 }
 0x37f   : > { %1404 = vrot.lane.b32.xlu0 %v7241_v56, %s6981_s20 }
 0x39e   : > { %1139 = vadd.xlane.f32.xlu0 %v7582_v32 }
 0x3a2   : > { %1137 = vadd.xlane.f32.xlu1 %v7587_v4  ;;  %1143 = vadd.xlane.f32.xlu0 %v7585_v1 }
 0x3a6   : > { %1141 = vadd.xlane.f32.xlu1 %v7591_v30 }
 0x3b1   : > { %v1116_v40 = vpop.xlane.xlu0 %1115 }
 0x3b2   : > { %6627 = vrcp.f32 %v1116_v40 }
 0x3b3   : > { %v1114_v38 = vpop.xlane.xlu1 %1113 }
 0x3b4   : > { %6629 = vrcp.f32 %v1114_v38 }
 0x3b7   : > { %1372 = vrot.lane.b32.xlu1 %v7241_v56, %s6983_s7  ;;  %v1120_v9 = vpop.xlane.xlu1 %1119 }
 0x3b8   : > { %1370 = vrot.lane.b32.xlu0 %v7179_v27, %s6983_s7  ;;  %6631 = vrcp.f32 %v1120_v9  ;;  %v771_v9 = vld [vmem:[%s9644_s2] sm:$0xff] }
 0x3bb   : > { %1376 = vrot.lane.b32.xlu1 %v7235_v55, %s6983_s7  ;;  %v1118_v2 = vpop.xlane.xlu0 %1117 }
 0x3bc   : > { %6633 = vrcp.f32 %v1118_v2  ;;  %1374 = vrot.lane.b32.xlu0 %v7227_v53, %s6983_s7 }
 0x3bf   : > { %1380 = vrot.lane.b32.xlu1 %v7229_v54, %s6983_s7  ;;  %v6628_v58 = vpop.eup %6627 }
 0x3c0   : > { %1378 = vrot.lane.b32.xlu0 %v7219_v51, %s6983_s7  ;;  %v1162_v14 = vmul.f32 %v6628_v58, %v7529_v18 }
 0x3c1   : > { %v6630_v8 = vpop.eup %6629 }
 0x3c2   : > { %v1161_v13 = vmul.f32 %v6630_v8, %v7532_v21 }
 0x3c3   : > { %1384 = vrot.lane.b32.xlu1 %v7221_v52, %s6983_s7 }
 0x3c4   : > { %5964 = vmatprep.mubr.f32.mxu0 %v1161_v13  ;;  %1382 = vrot.lane.b32.xlu0 %v7211_v49, %s6983_s7 }
 0x3c5   : > { %5965 = vmatmul.mubr.f32.vlgmr.msra.gmra.mxu0 %v1162_v14  ;;  %v6632_v21 = vpop.eup %6631 }
 0x3c6   : > { %5989 = vmatpush3.xpose.msk.msra.mxu0 %vm823_vm1, %v7314_v16  ;;  %v1164_v16 = vmul.f32 %v6632_v21, %v7535_v63 }
 0x3c7   : > { %5990 = vmatprep.subr.msk.mxu0 %vm823_vm1, %v7520_v44  ;;  %1388 = vrot.lane.b32.xlu1 %v7213_v50, %s6983_s7 }
 0x3c8   : > { %1386 = vrot.lane.b32.xlu0 %v7203_v47, %s6983_s7 }
 0x3c9   : > { %v6634_v26 = vpop.eup %6633 }
 0x3ca   : > { %5991 = vmatpush3.xpose.msk.msra.mxu0 %vm823_vm1, %v7520_v44  ;;  %v1163_v18 = vmul.f32 %v6634_v26, %v7538_v5 }
 0x3cb   : > { %5992 = vmatprep.subr.msk.mxu0 %vm823_vm1, %v7318_v17  ;;  %1392 = vrot.lane.b32.xlu1 %v7205_v48, %s6983_s7 }
 0x3cc   : > { %1390 = vrot.lane.b32.xlu0 %v7195_v45, %s6983_s7  ;;  %5967 = vmatprep.mubr.f32.mxu0 %v1163_v18 }
 0x3cd   : > { %5968 = vmatmul.mubr.f32.gmra.mxu0 %v1164_v16 }
 0x3ce   : > { %5993 = vmatpush3.xpose.msk.msra.mxu0 %vm823_vm1, %v7318_v17  ;;  %v1124_v17 = vpop.xlane.xlu1 %1123 }
 0x3cf   : > { %5994 = vmatprep.subr.msk.mxu0 %vm823_vm1, %v7510_v37  ;;  %1396 = vrot.lane.b32.xlu1 %v7183_v39, %s6983_s7  ;;  %6635 = vrcp.f32 %v1124_v17 }
 0x3d0   : > { %1394 = vrot.lane.b32.xlu0 %v7187_v42, %s6983_s7 }
 0x3d2   : > { %5995 = vmatpush3.xpose.msk.msra.mxu0 %vm823_vm1, %v7510_v37 }
 0x3d3   : > { %5996 = vmatprep.subr.msk.mxu0 %vm823_vm1, %v7321_v19  ;;  %1400 = vrot.lane.b32.xlu1 %v7189_v43, %s6983_s7 }
 0x3d4   : > { %1398 = vrot.lane.b32.xlu0 %v7197_v46, %s6983_s7  ;;  %s6990_s7 = smov 40  }
 0x3d6   : > { %5997 = vmatpush3.xpose.msk.msra.mxu0 %vm823_vm1, %v7321_v19 }
 0x3d7   : > { %5998 = vmatprep.subr.msk.mxu0 %vm823_vm1, %v7512_v34  ;;  %1817 = vrot.lane.b32.xlu1 %v7189_v43, %s6984_s16 }
 0x3d8   : > { %1815 = vrot.lane.b32.xlu0 %v7197_v46, %s6984_s16 }
 0x3da   : > { %5999 = vmatpush3.xpose.msk.msra.mxu0 %vm823_vm1, %v7512_v34 }
 0x3db   : > { %6000 = vmatprep.subr.msk.mxu0 %vm823_vm1, %v7327_v23  ;;  %1813 = vrot.lane.b32.xlu1 %v7183_v39, %s6984_s16 }
 0x3dc   : > { %1811 = vrot.lane.b32.xlu0 %v7187_v42, %s6984_s16  ;;  %v6636_v44 = vpop.eup %6635 }
 0x3de   : > { %6001 = vmatpush3.xpose.msk.msra.mxu0 %vm823_vm1, %v7327_v23 }
 0x3df   : > { %6002 = vmatprep.subr.msk.mxu0 %vm823_vm1, %v7516_v35  ;;  %1809 = vrot.lane.b32.xlu1 %v7205_v48, %s6984_s16 }
 0x3e0   : > { %1805 = vrot.lane.b32.xlu0 %v7213_v50, %s6984_s16 }
 0x3e2   : > { %6003 = vmatpush3.xpose.msk.msra.mxu0 %vm823_vm1, %v7516_v35 }
 0x3e3   : > { %6004 = vmatprep.subr.msk.mxu0 %vm823_vm1, %v7333_v24  ;;  %1807 = vrot.lane.b32.xlu1 %v7195_v45, %s6984_s16 }
 0x3e4   : > { %1801 = vrot.lane.b32.xlu0 %v7221_v52, %s6984_s16 }
 0x3e6   : > { %6005 = vmatpush3.xpose.msk.msra.mxu0 %vm823_vm1, %v7333_v24  ;;  %v1122_v19 = vpop.xlane.xlu1 %1121 }
 0x3e7   : > { %6637 = vrcp.f32 %v1122_v19  ;;  %6006 = vmatprep.subr.msk.mxu0 %vm823_vm1, %v7544_v22  ;;  %1803 = vrot.lane.b32.xlu1 %v7203_v47, %s6984_s16 }
 0x3e8   : > { %1797 = vrot.lane.b32.xlu0 %v7229_v54, %s6984_s16 }
 0x3ea   : > { %6007 = vmatpush3.xpose.msk.msra.mxu0 %vm823_vm1, %v7544_v22  ;;  %v1128_v23 = vpop.xlane.xlu1 %1127  ;;  %v1126_v37 = vpop.xlane.xlu0 %1125  ;;  %v1166_v22 = vmul.f32 %v6636_v44, %v7541_v11 }
 0x3eb   : > { %6639 = vrcp.f32 %v1128_v23  ;;  %6008 = vmatprep.subr.msk.mxu0 %vm823_vm1, %v7514_v36  ;;  %1799 = vrot.lane.b32.xlu1 %v7211_v49, %s6984_s16 }
 0x3ec   : > { %6641 = vrcp.f32 %v1126_v37 }
 0x3ee   : > { %6009 = vmatpush3.xpose.msk.msra.mxu0 %vm823_vm1, %v7514_v36  ;;  %v1132_v24 = vpop.xlane.xlu1 %1131 }
 0x3ef   : > { %6010 = vmatprep.subr.msk.mxu0 %vm823_vm1, %v7518_v62  ;;  %1795 = vrot.lane.b32.xlu1 %v7219_v51, %s6984_s16  ;;  %6643 = vrcp.f32 %v1132_v24 }
 0x3f2   : > { %6011 = vmatpush3.xpose.msk.msra.mxu0 %vm823_vm1, %v7518_v62  ;;  %v1130_v34 = vpop.xlane.xlu1 %1129  ;;  %v1134_v35 = vpop.xlane.xlu0 %1133 }
 0x3f3   : > { %6645 = vrcp.f32 %v1130_v34  ;;  %6012 = vmatprep.subr.msk.mxu0 %vm823_vm1, %v7522_v10 }
 0x3f4   : > { %v6638_v63 = vpop.eup %6637  ;;  %6647 = vrcp.f32 %v1134_v35 }
 0x3f5   : > { %v1165_v36 = vmul.f32 %v6638_v63, %v7553_v41 }
 0x3f6   : > { %6013 = vmatpush3.xpose.msk.msra.mxu0 %vm823_vm1, %v7522_v10  ;;  %v1136_v5 = vpop.xlane.xlu1 %1135  ;;  %v1405_v31 = vpop.permute.xlu0 %1404 }
 0x3f7   : > { %6649 = vrcp.f32 %v1136_v5  ;;  %6014 = vmatprep.subr.msk.mxu0 %vm823_vm1, %v7594_v28  ;;  %5970 = vmatprep.mubr.f32.mxu0 %v1165_v36 }
 0x3f8   : > { %v6640_v62 = vpop.eup %6639  ;;  %5971 = vmatmul.mubr.f32.gmra.mxu0 %v1166_v22 }
 0x3f9   : > { %v6642_v59 = vpop.eup %6641  ;;  %v1168_v3 = vmul.f32 %v6640_v62, %v7556_v61 }
 0x3fa   : > { %6015 = vmatpush3.xpose.msk.msra.mxu0 %vm823_vm1, %v7594_v28  ;;  %v1167_v41 = vmul.f32 %v6642_v59, %v7558_v7  ;;  %v1403_v10 = vpop.permute.xlu1 %1402 }
 0x3fb   : > { %6016 = vmatprep.subr.msk.mxu0 %vm823_vm1, %v1405_v31 }
 0x3fc   : > { %5973 = vmatprep.mubr.f32.mxu0 %v1167_v41  ;;  %v6644_v11 = vpop.eup %6643 }
 0x3fd   : > { %5974 = vmatmul.mubr.f32.gmra.mxu0 %v1168_v3  ;;  %v1170_v28 = vmul.f32 %v6644_v11, %v7562_v12 }
 0x3fe   : > { %6017 = vmatpush3.xpose.msk.msra.mxu0 %vm823_vm1, %v1405_v31 }
 0x3ff   : > { %6018 = vmatprep.subr.msk.mxu0 %vm823_vm1, %v1403_v10 }
 0x400   : > { %v6646_v25 = vpop.eup %6645 }
 0x401   : > { %v6648_v29 = vpop.eup %6647  ;;  %v1169_v61 = vmul.f32 %v6646_v25, %v7565_v60 }
 0x402   : > { %6019 = vmatpush3.xpose.msk.msra.mxu0 %vm823_vm1, %v1403_v10  ;;  %v1171_v7 = vmul.f32 %v6648_v29, %v7567_v15 }
 0x403   : > { %5976 = vmatprep.mubr.f32.mxu0 %v1169_v61  ;;  %6126 = vmatprep.subr.mxu0 %v771_v9 }
 0x404   : > { %v6650_v40 = vpop.eup %6649  ;;  %5977 = vmatmul.mubr.f32.gmra.mxu0 %v1170_v28 }
 0x405   : > { %5979 = vmatprep.mubr.f32.mxu0 %v1171_v7  ;;  %v1172_v38 = vmul.f32 %v6650_v40, %v7571_v33 }
 0x408   : > { %5980 = vmatmul.mubr.f32.gmra.mxu0 %v1172_v38 }
 0x427   : > { %v1140_v2 = vpop.xlane.xlu0 %1139 }
 0x428   : > { %6651 = vrcp.f32 %v1140_v2 }
 0x42b   : > { %v1138_v60 = vpop.xlane.xlu1 %1137  ;;  %v1144_v58 = vpop.xlane.xlu0 %1143 }
 0x42c   : > { %6653 = vrcp.f32 %v1138_v60 }
 0x42d   : > { %6655 = vrcp.f32 %v1144_v58 }
 0x42f   : > { %v1142_v12 = vpop.xlane.xlu1 %1141  ;;  %v1371_v8 = vpop.permute.xlu0 %1370 }
 0x430   : > { %6657 = vrcp.f32 %v1142_v12 }
 0x433   : > { %v1373_v15 = vpop.permute.xlu1 %1372  ;;  %v1375_v13 = vpop.permute.xlu0 %1374 }
 0x435   : > { %v6652_v33 = vpop.eup %6651 }
 0x436   : > { %v1174_v19 = vmul.f32 %v6652_v33, %v7582_v32 }
 0x437   : > { %v1377_v14 = vpop.permute.xlu1 %1376  ;;  %v1379_v21 = vpop.permute.xlu0 %1378 }
 0x439   : > { %v6654_v26 = vpop.eup %6653 }
 0x43a   : > { %v1173_v18 = vmul.f32 %v6654_v26, %v7587_v4  ;;  %v6656_v23 = vpop.eup %6655 }
 0x43b   : > { %v1381_v16 = vpop.permute.xlu1 %1380  ;;  %v1383_v17 = vpop.permute.xlu0 %1382  ;;  %v1176_v44 = vmul.f32 %v6656_v23, %v7585_v1 }
 0x43c   : > { %5982 = vmatprep.mubr.f32.mxu0 %v1173_v18 }
 0x43d   : > { %v6658_v37 = vpop.eup %6657  ;;  %5983 = vmatmul.mubr.f32.gmra.mxu0 %v1174_v19 }
 0x43e   : > { %v1175_v24 = vmul.f32 %v6658_v37, %v7591_v30 }
 0x43f   : > { %v1385_v34 = vpop.permute.xlu1 %1384  ;;  %v1387_v35 = vpop.permute.xlu0 %1386 }
 0x440   : > { %5985 = vmatprep.mubr.f32.mxu0 %v1175_v24 }
 0x441   : > { %5986 = vmatmul.mubr.f32.gmra.mxu0 %v1176_v44 }
 0x442   : > { %6020 = vmatprep.mubr.msk.f32.mxu0 %vm823_vm1, %v1371_v8 }
 0x443   : > { %v1389_v63 = vpop.permute.xlu1 %1388  ;;  %v1391_v4 = vpop.permute.xlu0 %1390 }
 0x445   : > { %6021 = vmatmul.mubr.msk.f32.vlgmr.msra.gmra.mxu0 %vm823_vm1, %v1373_v15 }
 0x446   : > { %6023 = vmatprep.mubr.msk.f32.mxu0 %vm823_vm1, %v1375_v13  ;;  %6127 = vmatpush3.msra.mxu0 %v771_v9 }
 0x447   : > { %v1393_v32 = vpop.permute.xlu1 %1392  ;;  %v1395_v36 = vpop.permute.xlu0 %1394 }
 0x449   : > { %6024 = vmatmul.mubr.msk.f32.gmra.mxu0 %vm823_vm1, %v1377_v14 }
 0x44a   : > { %6026 = vmatprep.mubr.msk.f32.mxu0 %vm823_vm1, %v1379_v21 }
 0x44b   : > { %v1397_v30 = vpop.permute.xlu1 %1396  ;;  %v1399_v5 = vpop.permute.xlu0 %1398 }
 0x44d   : > { %6027 = vmatmul.mubr.msk.f32.gmra.mxu0 %vm823_vm1, %v1381_v16 }
 0x44e   : > { %6029 = vmatprep.mubr.msk.f32.mxu0 %vm823_vm1, %v1383_v17 }
 0x44f   : > { %v1401_v1 = vpop.permute.xlu1 %1400  ;;  %v1816_v22 = vpop.permute.xlu0 %1815 }
 0x451   : > { %6030 = vmatmul.mubr.msk.f32.gmra.mxu0 %vm823_vm1, %v1385_v34 }
 0x452   : > { %6032 = vmatprep.mubr.msk.f32.mxu0 %vm823_vm1, %v1387_v35 }
 0x453   : > { %v1818_v62 = vpop.permute.xlu1 %1817  ;;  %v1812_v59 = vpop.permute.xlu0 %1811 }
 0x454   : > { %6044 = vmatprep.subr.mxu1 %v1818_v62 }
 0x455   : > { %6033 = vmatmul.mubr.msk.f32.gmra.mxu0 %vm823_vm1, %v1389_v63  ;;  %6045 = vmatpush3.msra.mxu1 %v1818_v62 }
 0x456   : > { %6035 = vmatprep.mubr.msk.f32.mxu0 %vm823_vm1, %v1391_v4  ;;  %6046 = vmatprep.subr.mxu1 %v1816_v22  ;;  %v9745_v4 = vld [vmem:[#allocation41_spill] sm:$0xff] }
 0x457   : > { %v1814_v3 = vpop.permute.xlu1 %1813  ;;  %6047 = vmatpush3.msra.mxu1 %v1816_v22  ;;  %v1806_v41 = vpop.permute.xlu0 %1805  ;;  %v9747_v22 = vld [vmem:[#allocation42_spill] sm:$0xff] }
 0x458   : > { %6048 = vmatprep.subr.mxu1 %v1814_v3 }
 0x459   : > { %6036 = vmatmul.mubr.msk.f32.gmra.mxu0 %vm823_vm1, %v1393_v32  ;;  %6049 = vmatpush3.msra.mxu1 %v1814_v3 }
 0x45a   : > { %6038 = vmatprep.mubr.msk.f32.mxu0 %vm823_vm1, %v1395_v36  ;;  %6050 = vmatprep.subr.mxu1 %v1812_v59 }
 0x45b   : > { %v1810_v31 = vpop.permute.xlu1 %1809  ;;  %6051 = vmatpush3.msra.mxu1 %v1812_v59  ;;  %v1802_v11 = vpop.permute.xlu0 %1801 }
 0x45c   : > { %6052 = vmatprep.subr.mxu1 %v1810_v31 }
 0x45d   : > { %6039 = vmatmul.mubr.msk.f32.gmra.mxu0 %vm823_vm1, %v1397_v30  ;;  %6053 = vmatpush3.msra.mxu1 %v1810_v31  ;;  %v9748_v31 = vld [vmem:[#allocation36_spill] sm:$0xff] }
 0x45e   : > { %6041 = vmatprep.mubr.msk.f32.mxu0 %vm823_vm1, %v1399_v5  ;;  %v9746_v5 = vld [vmem:[#allocation35_spill] sm:$0xff] }
 0x45f   : > { %v1808_v10 = vpop.permute.xlu1 %1807  ;;  %v1798_v61 = vpop.permute.xlu0 %1797 }
 0x460   : > { %6054 = vmatprep.subr.mxu1 %v1808_v10 }
 0x461   : > { %6042 = vmatmul.mubr.msk.f32.gmra.mxu0 %vm823_vm1, %v1401_v1  ;;  %6055 = vmatpush3.msra.mxu1 %v1808_v10  ;;  %v9749_v10 = vld [vmem:[#allocation43_spill] sm:$0xff] }
 0x462   : > { %6056 = vmatprep.subr.mxu1 %v1806_v41 }
 0x463   : > { %v1804_v25 = vpop.permute.xlu1 %1803  ;;  %6057 = vmatpush3.msra.mxu1 %v1806_v41 }
 0x464   : > { %6058 = vmatprep.subr.mxu1 %v1804_v25 }
 0x465   : > { %6059 = vmatpush3.msra.mxu1 %v1804_v25 }
 0x466   : > { %6060 = vmatprep.subr.mxu1 %v1802_v11 }
 0x467   : > { %v1800_v29 = vpop.permute.xlu1 %1799  ;;  %6061 = vmatpush3.msra.mxu1 %v1802_v11 }
 0x468   : > { %6062 = vmatprep.subr.mxu1 %v1800_v29 }
 0x469   : > { %6063 = vmatpush3.msra.mxu1 %v1800_v29 }
 0x46a   : > { %6064 = vmatprep.subr.mxu1 %v1798_v61 }
 0x46b   : > { %v1796_v28 = vpop.permute.xlu1 %1795  ;;  %6065 = vmatpush3.msra.mxu1 %v1798_v61  ;;  %v9750_v61 = vld [vmem:[#allocation37_spill] sm:$0xff] }
 0x46c   : > { %6066 = vmatprep.subr.mxu1 %v1796_v28 }
 0x46d   : > { %6067 = vmatpush3.msra.mxu1 %v1796_v28 }
 0x485   : > { %v5966_v7 = vpop.f32.mrf.mxu0 }
 0x487   : > { %v1291_v40 = vpop.f32.mrf.mxu0 }
 0x488   : > { %6128 = vmatprep.mubr.msk.f32.mxu0 %vm823_vm1, %v1291_v40 }
 0x489   : > { %6129 = vmatmul.mubr.msk.f32.vlgmr.msra.gmra.mxu0 %vm823_vm1, %v5966_v7  ;;  %v9751_v7 = vld [vmem:[#allocation44_spill] sm:$0xff] }
 0x48d   : > { %v5969_v38 = vpop.f32.mrf.mxu0 }
 0x48f   : > { %v1301_v9 = vpop.f32.mrf.mxu0 }
 0x490   : > { %6131 = vmatprep.mubr.msk.f32.mxu0 %vm823_vm1, %v1301_v9 }
 0x491   : > { %6132 = vmatmul.mubr.msk.f32.gmra.mxu0 %vm823_vm1, %v5969_v38 }
 0x4b8   : > { %v5972_v2 = vpop.f32.mrf.mxu0 }
 0x4ba   : > { %v1311_v60 = vpop.f32.mrf.mxu0 }
 0x4bb   : > { %6134 = vmatprep.mubr.msk.f32.mxu0 %vm823_vm1, %v1311_v60 }
 0x4bc   : > { %6135 = vmatmul.mubr.msk.f32.gmra.mxu0 %vm823_vm1, %v5972_v2  ;;  %v9752_v2 = vld [vmem:[#allocation38_spill] sm:$0xff] }
 0x4bd   : > { %v5975_v58 = vpop.f32.mrf.mxu0 }
 0x4bf   : > { %v1321_v12 = vpop.f32.mrf.mxu0 }
 0x4c0   : > { %6137 = vmatprep.mubr.msk.f32.mxu0 %vm823_vm1, %v1321_v12 }
 0x4c1   : > { %6138 = vmatmul.mubr.msk.f32.gmra.mxu0 %vm823_vm1, %v5975_v58  ;;  %v9753_v58 = vld [vmem:[#allocation45_spill] sm:$0xff] }
 0x4c4   : > { %v5978_v8 = vpop.f32.mrf.mxu0 }
 0x4c6   : > { %v1331_v15 = vpop.f32.mrf.mxu0 }
 0x4c7   : > { %6140 = vmatprep.mubr.msk.f32.mxu0 %vm823_vm1, %v1331_v15 }
 0x4c8   : > { %v5981_v13 = vpop.f32.mrf.mxu0  ;;  %6141 = vmatmul.mubr.msk.f32.gmra.mxu0 %vm823_vm1, %v5978_v8 }
 0x4ca   : > { %v1341_v14 = vpop.f32.mrf.mxu0 }
 0x4cb   : > { %6143 = vmatprep.mubr.msk.f32.mxu0 %vm823_vm1, %v1341_v14 }
 0x4cc   : > { %6144 = vmatmul.mubr.msk.f32.gmra.mxu0 %vm823_vm1, %v5981_v13  ;;  %v9754_v13 = vld [vmem:[#allocation39_spill] sm:$0xff] }
 0x4fd   : > { %v5984_v21 = vpop.f32.mrf.mxu0 }
 0x4ff   : > { %v1351_v33 = vpop.f32.mrf.mxu0 }
 0x500   : > { %6146 = vmatprep.mubr.msk.f32.mxu0 %vm823_vm1, %v1351_v33 }
 0x501   : > { %v5987_v26 = vpop.f32.mrf.mxu0  ;;  %6147 = vmatmul.mubr.msk.f32.gmra.mxu0 %vm823_vm1, %v5984_v21  ;;  %v9755_v21 = vld [vmem:[#allocation46_spill] sm:$0xff] }
 0x503   : > { %v1361_v18 = vpop.f32.mrf.mxu0 }
 0x504   : > { %6149 = vmatprep.mubr.msk.f32.mxu0 %vm823_vm1, %v1361_v18 }
 0x505   : > { %v6022_v16 = vpop.f32.mrf.mxu0  ;;  %6150 = vmatmul.mubr.msk.f32.gmra.mxu0 %vm823_vm1, %v5987_v26  ;;  %v9756_v26 = vld [vmem:[#allocation40_spill] sm:$0xff] }
 0x506   : > { %v1570_v17 = vadd.f32 %v6022_v16, %v7369_v57 }
 0x507   : > { %v1564_v19 = vpop.f32.mrf.mxu0 }
 0x508   : > { %v1565_v23 = vadd.f32 %v1564_v19, %v7372_v20  ;;  %1645 = vmax.xlane.f32.xlu1 %v1570_v17 }
 0x509   : > { %v6025_v37 = vpop.f32.mrf.mxu0 }
 0x50a   : > { %1643 = vmax.xlane.f32.xlu0 %v1565_v23  ;;  %v7764_v34 = vadd.f32 %v6025_v37, %v7384_v0 }
 0x50b   : > { %v1574_v24 = vpop.f32.mrf.mxu0 }
 0x50c   : > { %v7768_v63 = vadd.f32 %v1574_v24, %v7393_v6 }
 0x50d   : > { %v6028_v35 = vpop.f32.mrf.mxu0 }
 0x50e   : > { %1649 = vmax.xlane.f32.xlu0 %v7764_v34  ;;  %v7776_v1 = vadd.f32 %v6028_v35, %v9746_v5 }
 0x50f   : > { %v1584_v44 = vpop.f32.mrf.mxu0 }
 0x510   : > { %v7771_v32 = vadd.f32 %v1584_v44, %v9745_v4 }
 0x511   : > { %v6031_v36 = vpop.f32.mrf.mxu0 }
 0x512   : > { %1647 = vmax.xlane.f32.xlu0 %v7768_v63  ;;  %1651 = vmax.xlane.f32.xlu1 %v7771_v32  ;;  %v7784_v41 = vadd.f32 %v6031_v36, %v9748_v31 }
 0x513   : > { %v1594_v30 = vpop.f32.mrf.mxu0 }
 0x514   : > { %v7779_v62 = vadd.f32 %v1594_v30, %v9747_v22 }
 0x515   : > { %v6034_v59 = vpop.f32.mrf.mxu0 }
 0x516   : > { %1653 = vmax.xlane.f32.xlu0 %v7776_v1  ;;  %1655 = vmax.xlane.f32.xlu1 %v7779_v62  ;;  %v7792_v28 = vadd.f32 %v6034_v59, %v9750_v61 }
 0x517   : > { %v1604_v3 = vpop.f32.mrf.mxu0 }
 0x518   : > { %v7787_v11 = vadd.f32 %v1604_v3, %v9749_v10 }
 0x519   : > { %v6037_v25 = vpop.f32.mrf.mxu0 }
 0x51a   : > { %1657 = vmax.xlane.f32.xlu0 %v7784_v41  ;;  %1659 = vmax.xlane.f32.xlu1 %v7787_v11  ;;  %v7800_v60 = vadd.f32 %v6037_v25, %v9752_v2 }
 0x51b   : > { %v1614_v29 = vpop.f32.mrf.mxu0 }
 0x51c   : > { %v7795_v40 = vadd.f32 %v1614_v29, %v9751_v7 }
 0x51d   : > { %v6040_v38 = vpop.f32.mrf.mxu0 }
 0x51e   : > { %1661 = vmax.xlane.f32.xlu0 %v7792_v28  ;;  %1663 = vmax.xlane.f32.xlu1 %v7795_v40  ;;  %v7808_v14 = vadd.f32 %v6040_v38, %v9754_v13 }
 0x51f   : > { %v1624_v9 = vpop.f32.mrf.mxu0 }
 0x520   : > { %v7803_v12 = vadd.f32 %v1624_v9, %v9753_v58 }
 0x521   : > { %v6043_v8 = vpop.f32.mrf.mxu0 }
 0x522   : > { %1665 = vmax.xlane.f32.xlu0 %v7800_v60  ;;  %1667 = vmax.xlane.f32.xlu1 %v7803_v12  ;;  %v7816_v18 = vadd.f32 %v6043_v8, %v9756_v26 }
 0x523   : > { %v1634_v15 = vpop.f32.mrf.mxu0 }
 0x524   : > { %v7811_v33 = vadd.f32 %v1634_v15, %v9755_v21 }
 0x526   : > { %1669 = vmax.xlane.f32.xlu0 %v7808_v14  ;;  %1671 = vmax.xlane.f32.xlu1 %v7811_v33 }
 0x52a   : > { %1673 = vmax.xlane.f32.xlu0 %v7816_v18 }
 0x537   : > { %1791 = vrot.lane.b32.xlu1 %v7227_v53, %s6984_s16 }
 0x540   : > { %1793 = vrot.lane.b32.xlu0 %v7235_v55, %s6984_s16 }
 0x591   : > { %v1646_v16 = vpop.xlane.xlu1 %1645 }
 0x592   : > { %v1676_v19 = vsub.f32 %v1570_v17, %v1646_v16 }
 0x593   : > { %v1644_v37 = vpop.xlane.xlu0 %1643 }
 0x594   : > { %v1693_v24 = vmul.f32 1.442695, %v1676_v19  ;;  %v1675_v35 = vsub.f32 %v1565_v23, %v1644_v37 }
 0x596   : > { %6659 = vpow2.f32 %v1693_v24  ;;  %v1691_v44 = vmul.f32 1.442695, %v1675_v35 }
 0x597   : > { %v1650_v36 = vpop.xlane.xlu0 %1649 }
 0x598   : > { %6661 = vpow2.f32 %v1691_v44  ;;  %v1678_v58 = vsub.f32 %v7764_v34, %v1650_v36 }
 0x59a   : > { %v1697_v2 = vmul.f32 1.442695, %v1678_v58 }
 0x59b   : > { %v1652_v30 = vpop.xlane.xlu1 %1651  ;;  %v1648_v59 = vpop.xlane.xlu0 %1647 }
 0x59c   : > { %v1677_v26 = vsub.f32 %v7768_v63, %v1648_v59  ;;  %v1679_v13 = vsub.f32 %v7771_v32, %v1652_v30 }
 0x59e   : > { %v1695_v7 = vmul.f32 1.442695, %v1677_v26  ;;  %v1699_v61 = vmul.f32 1.442695, %v1679_v13 }
 0x59f   : > { %v1656_v3 = vpop.xlane.xlu1 %1655  ;;  %v1654_v25 = vpop.xlane.xlu0 %1653 }
 0x5a0   : > { %v1681_v10 = vsub.f32 %v7779_v62, %v1656_v3  ;;  %6663 = vpow2.f32 %v1695_v7  ;;  %v1680_v21 = vsub.f32 %v7776_v1, %v1654_v25 }
 0x5a1   : > { %6665 = vpow2.f32 %v1697_v2 }
 0x5a2   : > { %6667 = vpow2.f32 %v1699_v61 }
 0x5a3   : > { %v7823_v29 = vpop.eup %6659  ;;  %v1660_v38 = vpop.xlane.xlu1 %1659 }
 0x5a4   : > { %v1658_v9 = vpop.xlane.xlu0 %1657  ;;  %1725 = vadd.xlane.f32.xlu0 %v7823_v29  ;;  %v1683_v31 = vsub.f32 %v7787_v11, %v1660_v38 }
 0x5a5   : > { %v7826_v8 = vpop.eup %6661  ;;  %v1682_v63 = vsub.f32 %v7784_v41, %v1658_v9 }
 0x5a6   : > { %1723 = vadd.xlane.f32.xlu1 %v7826_v8  ;;  %v1707_v34 = vmul.f32 1.442695, %v1683_v31 }
 0x5a7   : > { %v1664_v17 = vpop.xlane.xlu1 %1663  ;;  %v1705_v58 = vmul.f32 1.442695, %v1682_v63 }
 0x5a8   : > { %v1662_v23 = vpop.xlane.xlu0 %1661  ;;  %v1685_v32 = vsub.f32 %v7795_v40, %v1664_v17 }
 0x5a9   : > { %v1684_v62 = vsub.f32 %v7792_v28, %v1662_v23 }
 0x5aa   : > { %v1711_v7 = vmul.f32 1.442695, %v1685_v32 }
 0x5ab   : > { %v1668_v16 = vpop.xlane.xlu1 %1667 }
 0x5ac   : > { %v1666_v15 = vpop.xlane.xlu0 %1665  ;;  %v1687_v1 = vsub.f32 %v7803_v12, %v1668_v16 }
 0x5ad   : > { %v1686_v11 = vsub.f32 %v7800_v60, %v1666_v15  ;;  %v7844_v61 = vpop.eup %6663 }
 0x5ae   : > { %v1715_v41 = vmul.f32 1.442695, %v1687_v1  ;;  %v7848_v40 = vpop.eup %6665 }
 0x5af   : > { %v1672_v37 = vpop.xlane.xlu1 %1671  ;;  %v1713_v28 = vmul.f32 1.442695, %v1686_v11  ;;  %v7852_v12 = vpop.eup %6667 }
 0x5b0   : > { %v1670_v19 = vpop.xlane.xlu0 %1669  ;;  %v1689_v31 = vsub.f32 %v7811_v33, %v1672_v37  ;;  %v772_v37 = vld [vmem:[%s9644_s2 + $0x8] sm:$0xff] }
 0x5b1   : > { %v1688_v2 = vsub.f32 %v7808_v14, %v1670_v19 }
 0x5b2   : > { %v1719_v60 = vmul.f32 1.442695, %v1689_v31 }
 0x5b3   : > { %v1792_v44 = vpop.permute.xlu1 %1791 }
 0x5b4   : > { %v1674_v24 = vpop.xlane.xlu0 %1673 }
 0x5b5   : > { %v1690_v33 = vsub.f32 %v7816_v18, %v1674_v24 }
 0x5b7   : > { %1787 = vrot.lane.b32.xlu1 %v7179_v27, %s6984_s16  ;;  %v1721_v36 = vmul.f32 1.442695, %v1690_v33 }
 0x5b8   : > { %v1794_v35 = vpop.permute.xlu0 %1793 }
 0x5b9   : > { %6068 = vmatprep.subr.mxu1 %v1794_v35 }
 0x5ba   : > { %6069 = vmatpush3.msra.mxu1 %v1794_v35  ;;  %1789 = vrot.lane.b32.xlu0 %v7241_v56, %s6984_s16  ;;  %v1703_v35 = vmul.f32 1.442695, %v1681_v10  ;;  %v1709_v10 = vmul.f32 1.442695, %v1684_v62 }
 0x5bb   : > { %6070 = vmatprep.subr.mxu1 %v1792_v44 }
 0x5bc   : > { %6071 = vmatpush3.msra.mxu1 %v1792_v44  ;;  %v1701_v44 = vmul.f32 1.442695, %v1680_v21  ;;  %6669 = vpow2.f32 %v1703_v35  ;;  %v1717_v21 = vmul.f32 1.442695, %v1688_v2 }
 0x5be   : > { %6671 = vpow2.f32 %v1701_v44 }
 0x5bf   : > { %6673 = vpow2.f32 %v1707_v34 }
 0x5c0   : > { %6675 = vpow2.f32 %v1705_v58 }
 0x5c1   : > { %6677 = vpow2.f32 %v1711_v7 }
 0x5c2   : > { %6679 = vpow2.f32 %v1709_v10 }
 0x5c3   : > { %6681 = vpow2.f32 %v1715_v41 }
 0x5c4   : > { %6683 = vpow2.f32 %v1713_v28 }
 0x5c5   : > { %6685 = vpow2.f32 %v1719_v60 }
 0x5c6   : > { %6687 = vpow2.f32 %v1717_v21 }
 0x5c7   : > { %6689 = vpow2.f32 %v1721_v36 }
 0x5c9   : > { %v7855_v13 = vpop.eup %6669 }
 0x5cb   : > { %v7859_v26 = vpop.eup %6671 }
 0x5cc   : > { %v7862_v14 = vpop.eup %6673 }
 0x5cd   : > { %v7865_v30 = vpop.eup %6675 }
 0x5ce   : > { %v7868_v59 = vpop.eup %6677 }
 0x5cf   : > { %v7871_v18 = vpop.eup %6679 }
 0x5d0   : > { %v7874_v3 = vpop.eup %6681 }
 0x5d1   : > { %v7877_v25 = vpop.eup %6683 }
 0x5d2   : > { %v7880_v38 = vpop.eup %6685 }
 0x5d3   : > { %v7883_v9 = vpop.eup %6687 }
 0x5d4   : > { %v7886_v17 = vpop.eup %6689 }
 0x5d9   : > { %1727 = vadd.xlane.f32.xlu0 %v7844_v61 }
 0x5db   : > { %1729 = vadd.xlane.f32.xlu1 %v7848_v40 }
 0x5dd   : > { %1731 = vadd.xlane.f32.xlu0 %v7852_v12 }
 0x5df   : > { %1735 = vadd.xlane.f32.xlu1 %v7855_v13 }
 0x5e1   : > { %1733 = vadd.xlane.f32.xlu0 %v7859_v26 }
 0x5e3   : > { %1739 = vadd.xlane.f32.xlu1 %v7862_v14 }
 0x5e5   : > { %1737 = vadd.xlane.f32.xlu0 %v7865_v30 }
 0x5e7   : > { %1743 = vadd.xlane.f32.xlu1 %v7868_v59 }
 0x5e9   : > { %1741 = vadd.xlane.f32.xlu0 %v7871_v18 }
 0x5eb   : > { %1747 = vadd.xlane.f32.xlu1 %v7874_v3 }
 0x5ed   : > { %1745 = vadd.xlane.f32.xlu0 %v7877_v25 }
 0x5ef   : > { %1751 = vadd.xlane.f32.xlu1 %v7880_v38 }
 0x5f1   : > { %1749 = vadd.xlane.f32.xlu0 %v7883_v9 }
 0x5f5   : > { %1753 = vadd.xlane.f32.xlu0 %v7886_v17 }
 0x600   : > { %2428 = vrot.lane.b32.xlu1 %v7189_v43, %s6985_s28 }
 0x604   : > { %2424 = vrot.lane.b32.xlu1 %v7183_v39, %s6985_s28 }
 0x608   : > { %2422 = vrot.lane.b32.xlu1 %v7187_v42, %s6985_s28 }
 0x60b   : > { %2426 = vrot.lane.b32.xlu0 %v7197_v46, %s6985_s28 }
 0x60c   : > { %2418 = vrot.lane.b32.xlu1 %v7195_v45, %s6985_s28 }
 0x60f   : > { %2420 = vrot.lane.b32.xlu0 %v7205_v48, %s6985_s28 }
 0x610   : > { %2414 = vrot.lane.b32.xlu1 %v7203_v47, %s6985_s28 }
 0x613   : > { %2416 = vrot.lane.b32.xlu0 %v7213_v50, %s6985_s28 }
 0x614   : > { %2410 = vrot.lane.b32.xlu1 %v7211_v49, %s6985_s28 }
 0x617   : > { %2412 = vrot.lane.b32.xlu0 %v7221_v52, %s6985_s28 }
 0x618   : > { %2406 = vrot.lane.b32.xlu1 %v7219_v51, %s6985_s28 }
 0x61b   : > { %2408 = vrot.lane.b32.xlu0 %v7229_v54, %s6985_s28 }
 0x61c   : > { %2402 = vrot.lane.b32.xlu1 %v7227_v53, %s6985_s28 }
 0x61f   : > { %2404 = vrot.lane.b32.xlu0 %v7235_v55, %s6985_s28 }
 0x620   : > { %2398 = vrot.lane.b32.xlu1 %v7179_v27, %s6985_s28 }
 0x623   : > { %2400 = vrot.lane.b32.xlu0 %v7241_v56, %s6985_s28 }
 0x624   : > { %2368 = vrot.lane.b32.xlu1 %v7241_v56, %s6986_s8 }
 0x627   : > { %2366 = vrot.lane.b32.xlu0 %v7179_v27, %s6986_s8 }
 0x628   : > { %2372 = vrot.lane.b32.xlu1 %v7235_v55, %s6986_s8 }
 0x62b   : > { %2370 = vrot.lane.b32.xlu0 %v7227_v53, %s6986_s8 }
 0x62c   : > { %2376 = vrot.lane.b32.xlu1 %v7229_v54, %s6986_s8 }
 0x62d   : > { %v1726_v23 = vpop.xlane.xlu0 %1725 }
 0x62e   : > { %6691 = vrcp.f32 %v1726_v23 }
 0x62f   : > { %v1724_v15 = vpop.xlane.xlu1 %1723  ;;  %2374 = vrot.lane.b32.xlu0 %v7219_v51, %s6986_s8 }
 0x630   : > { %6693 = vrcp.f32 %v1724_v15  ;;  %2380 = vrot.lane.b32.xlu1 %v7221_v52, %s6986_s8 }
 0x631   : > { %v1790_v16 = vpop.permute.xlu0 %1789 }
 0x632   : > { %6072 = vmatprep.subr.mxu1 %v1790_v16 }
 0x633   : > { %v1788_v19 = vpop.permute.xlu1 %1787  ;;  %2378 = vrot.lane.b32.xlu0 %v7211_v49, %s6986_s8  ;;  %6073 = vmatpush3.msra.mxu1 %v1790_v16 }
 0x634   : > { %2384 = vrot.lane.b32.xlu1 %v7213_v50, %s6986_s8  ;;  %6074 = vmatprep.subr.mxu1 %v1788_v19 }
 0x635   : > { %6075 = vmatpush3.msra.mxu1 %v1788_v19 }
 0x636   : > { %6100 = vmatprep.subr.mxu1 %v772_v37 }
 0x637   : > { %2382 = vrot.lane.b32.xlu0 %v7203_v47, %s6986_s8 }
 0x638   : > { %2388 = vrot.lane.b32.xlu1 %v7205_v48, %s6986_s8 }
 0x63b   : > { %2386 = vrot.lane.b32.xlu0 %v7195_v45, %s6986_s8  ;;  %v6692_v24 = vpop.eup %6691 }
 0x63c   : > { %2392 = vrot.lane.b32.xlu1 %v7183_v39, %s6986_s8  ;;  %v1772_v63 = vmul.f32 %v6692_v24, %v7823_v29 }
 0x63d   : > { %v6694_v35 = vpop.eup %6693 }
 0x63e   : > { %v1771_v44 = vmul.f32 %v6694_v35, %v7826_v8 }
 0x63f   : > { %2390 = vrot.lane.b32.xlu0 %v7187_v42, %s6986_s8 }
 0x640   : > { %6076 = vmatprep.mubr.f32.mxu1 %v1771_v44  ;;  %2396 = vrot.lane.b32.xlu1 %v7189_v43, %s6986_s8 }
 0x641   : > { %6077 = vmatmul.mubr.f32.vlgmr.msra.gmra.mxu1 %v1772_v63 }
 0x642   : > { %6101 = vmatpush3.msra.mxu1 %v772_v37 }
 0x643   : > { %2394 = vrot.lane.b32.xlu0 %v7197_v46, %s6986_s8 }
 0x644   : > { %3245 = vrot.lane.b32.xlu1 %v7197_v46, %s6987_s13 }
 0x647   : > { %3247 = vrot.lane.b32.xlu0 %v7189_v43, %s6987_s13 }
 0x648   : > { %3241 = vrot.lane.b32.xlu1 %v7187_v42, %s6987_s13 }
 0x64b   : > { %3243 = vrot.lane.b32.xlu0 %v7183_v39, %s6987_s13 }
 0x64c   : > { %3237 = vrot.lane.b32.xlu1 %v7195_v45, %s6987_s13 }
 0x64f   : > { %3239 = vrot.lane.b32.xlu0 %v7205_v48, %s6987_s13 }
 0x650   : > { %3233 = vrot.lane.b32.xlu1 %v7203_v47, %s6987_s13 }
 0x653   : > { %3235 = vrot.lane.b32.xlu0 %v7213_v50, %s6987_s13 }
 0x654   : > { %3229 = vrot.lane.b32.xlu1 %v7211_v49, %s6987_s13 }
 0x657   : > { %3231 = vrot.lane.b32.xlu0 %v7221_v52, %s6987_s13 }
 0x658   : > { %3225 = vrot.lane.b32.xlu1 %v7219_v51, %s6987_s13 }
 0x65b   : > { %3227 = vrot.lane.b32.xlu0 %v7229_v54, %s6987_s13 }
 0x65c   : > { %3221 = vrot.lane.b32.xlu1 %v7227_v53, %s6987_s13 }
 0x65f   : > { %3223 = vrot.lane.b32.xlu0 %v7235_v55, %s6987_s13 }
 0x660   : > { %3217 = vrot.lane.b32.xlu1 %v7179_v27, %s6987_s13 }
 0x662   : > { %v1728_v29 = vpop.xlane.xlu0 %1727 }
 0x663   : > { %6695 = vrcp.f32 %v1728_v29  ;;  %3219 = vrot.lane.b32.xlu0 %v7241_v56, %s6987_s13 }
 0x664   : > { %3187 = vrot.lane.b32.xlu1 %v7241_v56, %s6988_s14  ;;  %v1730_v8 = vpop.xlane.xlu1 %1729 }
 0x665   : > { %6697 = vrcp.f32 %v1730_v8 }
 0x666   : > { %v1732_v34 = vpop.xlane.xlu0 %1731 }
 0x667   : > { %6699 = vrcp.f32 %v1732_v34  ;;  %3185 = vrot.lane.b32.xlu0 %v7179_v27, %s6988_s14 }
 0x668   : > { %3191 = vrot.lane.b32.xlu1 %v7235_v55, %s6988_s14  ;;  %v1736_v32 = vpop.xlane.xlu1 %1735 }
 0x669   : > { %6701 = vrcp.f32 %v1736_v32 }
 0x66a   : > { %v1734_v58 = vpop.xlane.xlu0 %1733 }
 0x66b   : > { %6703 = vrcp.f32 %v1734_v58  ;;  %3189 = vrot.lane.b32.xlu0 %v7227_v53, %s6988_s14 }
 0x66c   : > { %3195 = vrot.lane.b32.xlu1 %v7229_v54, %s6988_s14  ;;  %v1740_v62 = vpop.xlane.xlu1 %1739 }
 0x66d   : > { %6705 = vrcp.f32 %v1740_v62 }
 0x66e   : > { %v1738_v7 = vpop.xlane.xlu0 %1737 }
 0x66f   : > { %6707 = vrcp.f32 %v1738_v7  ;;  %3193 = vrot.lane.b32.xlu0 %v7219_v51, %s6988_s14 }
 0x670   : > { %v6696_v1 = vpop.eup %6695  ;;  %3199 = vrot.lane.b32.xlu1 %v7221_v52, %s6988_s14  ;;  %v1744_v10 = vpop.xlane.xlu1 %1743 }
 0x671   : > { %v1773_v11 = vmul.f32 %v6696_v1, %v7844_v61  ;;  %6709 = vrcp.f32 %v1744_v10 }
 0x672   : > { %v6698_v41 = vpop.eup %6697  ;;  %v1742_v31 = vpop.xlane.xlu0 %1741 }
 0x673   : > { %6711 = vrcp.f32 %v1742_v31  ;;  %3197 = vrot.lane.b32.xlu0 %v7211_v49, %s6988_s14  ;;  %6079 = vmatprep.mubr.f32.mxu1 %v1773_v11  ;;  %v1774_v28 = vmul.f32 %v6698_v41, %v7848_v40 }
 0x674   : > { %v6700_v2 = vpop.eup %6699  ;;  %3203 = vrot.lane.b32.xlu1 %v7213_v50, %s6988_s14  ;;  %v1748_v60 = vpop.xlane.xlu1 %1747 }
 0x675   : > { %6080 = vmatmul.mubr.f32.gmra.mxu1 %v1774_v28  ;;  %v1775_v21 = vmul.f32 %v6700_v2, %v7852_v12  ;;  %6713 = vrcp.f32 %v1748_v60 }
 0x676   : > { %v1746_v61 = vpop.xlane.xlu0 %1745  ;;  %v6702_v33 = vpop.eup %6701 }
 0x677   : > { %6715 = vrcp.f32 %v1746_v61  ;;  %3201 = vrot.lane.b32.xlu0 %v7203_v47, %s6988_s14  ;;  %6082 = vmatprep.mubr.f32.mxu1 %v1775_v21  ;;  %v1777_v16 = vmul.f32 %v6702_v33, %v7855_v13 }
 0x678   : > { %v6704_v36 = vpop.eup %6703  ;;  %3207 = vrot.lane.b32.xlu1 %v7205_v48, %s6988_s14  ;;  %v1752_v40 = vpop.xlane.xlu1 %1751 }
 0x679   : > { %v1776_v23 = vmul.f32 %v6704_v36, %v7859_v26  ;;  %6717 = vrcp.f32 %v1752_v40 }
 0x67a   : > { %v1750_v15 = vpop.xlane.xlu0 %1749  ;;  %v6706_v12 = vpop.eup %6705 }
 0x67b   : > { %6719 = vrcp.f32 %v1750_v15  ;;  %3205 = vrot.lane.b32.xlu0 %v7195_v45, %s6988_s14  ;;  %6083 = vmatmul.mubr.f32.gmra.mxu1 %v1776_v23  ;;  %v1779_v13 = vmul.f32 %v6706_v12, %v7862_v14 }
 0x67c   : > { %v6708_v19 = vpop.eup %6707  ;;  %3211 = vrot.lane.b32.xlu1 %v7183_v39, %s6988_s14  ;;  %v7989_v37 = vpop.permute.xlu1 %2428  ;;  %6085 = vmatprep.mubr.f32.mxu1 %v1777_v16 }
 0x67d   : > { %6152 = vmatprep.subr.msk.mxu1 %vm823_vm1, %v7989_v37  ;;  %v1778_v26 = vmul.f32 %v6708_v19, %v7865_v30 }
 0x67e   : > { %v1754_v24 = vpop.xlane.xlu0 %1753  ;;  %v6710_v35 = vpop.eup %6709 }
 0x67f   : > { %6721 = vrcp.f32 %v1754_v24  ;;  %3209 = vrot.lane.b32.xlu0 %v7187_v42, %s6988_s14  ;;  %6086 = vmatmul.mubr.f32.gmra.mxu1 %v1778_v26  ;;  %v1781_v30 = vmul.f32 %v6710_v35, %v7868_v59 }
 0x680   : > { %v6712_v44 = vpop.eup %6711  ;;  %3213 = vrot.lane.b32.xlu1 %v7197_v46, %s6988_s14  ;;  %v7999_v63 = vpop.permute.xlu1 %2424  ;;  %6088 = vmatprep.mubr.f32.mxu1 %v1779_v13 }
 0x681   : > { %v1780_v29 = vmul.f32 %v6712_v44, %v7871_v18 }
 0x682   : > { %v8002_v8 = vpop.permute.xlu0 %2426  ;;  %v6714_v14 = vpop.eup %6713 }
 0x683   : > { %3215 = vrot.lane.b32.xlu0 %v7189_v43, %s6988_s14  ;;  %6089 = vmatmul.mubr.f32.gmra.mxu1 %v1780_v29  ;;  %v1783_v62 = vmul.f32 %v6714_v14, %v7874_v3 }
 0x684   : > { %v6716_v34 = vpop.eup %6715  ;;  %2811 = vrot.lane.b32.xlu1 %v7197_v46, %s6989_s15  ;;  %v8009_v32 = vpop.permute.xlu1 %2422  ;;  %6091 = vmatprep.mubr.f32.mxu1 %v1781_v30 }
 0x685   : > { %v1782_v58 = vmul.f32 %v6716_v34, %v7877_v25 }
 0x686   : > { %v8012_v18 = vpop.permute.xlu0 %2420  ;;  %v6718_v59 = vpop.eup %6717 }
 0x687   : > { %2813 = vrot.lane.b32.xlu0 %v7189_v43, %s6989_s15  ;;  %6092 = vmatmul.mubr.f32.gmra.mxu1 %v1782_v58  ;;  %v1785_v25 = vmul.f32 %v6718_v59, %v7880_v38 }
 0x688   : > { %v6720_v7 = vpop.eup %6719  ;;  %2807 = vrot.lane.b32.xlu1 %v7187_v42, %s6989_s15  ;;  %v8019_v1 = vpop.permute.xlu1 %2418  ;;  %6094 = vmatprep.mubr.f32.mxu1 %v1783_v62 }
 0x689   : > { %v1784_v10 = vmul.f32 %v6720_v7, %v7883_v9 }
 0x68a   : > { %v8022_v11 = vpop.permute.xlu0 %2416 }
 0x68b   : > { %2809 = vrot.lane.b32.xlu0 %v7183_v39, %s6989_s15  ;;  %6095 = vmatmul.mubr.f32.gmra.mxu1 %v1784_v10 }
 0x68c   : > { %v6722_v3 = vpop.eup %6721  ;;  %2803 = vrot.lane.b32.xlu1 %v7195_v45, %s6989_s15  ;;  %v8029_v41 = vpop.permute.xlu1 %2414  ;;  %6097 = vmatprep.mubr.f32.mxu1 %v1785_v25 }
 0x68d   : > { %v1786_v31 = vmul.f32 %v6722_v3, %v7886_v17 }
 0x68e   : > { %v8032_v28 = vpop.permute.xlu0 %2412 }
 0x68f   : > { %2805 = vrot.lane.b32.xlu0 %v7205_v48, %s6989_s15  ;;  %6098 = vmatmul.mubr.f32.gmra.mxu1 %v1786_v31 }
 0x690   : > { %2799 = vrot.lane.b32.xlu1 %v7203_v47, %s6989_s15  ;;  %v8038_v38 = vpop.permute.xlu1 %2410 }
 0x692   : > { %v8040_v9 = vpop.permute.xlu0 %2408 }
 0x693   : > { %2801 = vrot.lane.b32.xlu0 %v7213_v50, %s6989_s15 }
 0x694   : > { %v8044_v2 = vpop.permute.xlu1 %2406 }
 0x696   : > { %v8046_v60 = vpop.permute.xlu0 %2404 }
 0x698   : > { %v8048_v17 = vpop.permute.xlu1 %2402 }
 0x69a   : > { %v8050_v21 = vpop.permute.xlu0 %2400 }
 0x69c   : > { %v8052_v61 = vpop.permute.xlu1 %2398 }
 0x69e   : > { %v8054_v33 = vpop.permute.xlu0 %2366 }
 0x6a0   : > { %v8056_v36 = vpop.permute.xlu1 %2368 }
 0x6a2   : > { %v8058_v40 = vpop.permute.xlu0 %2370 }
 0x6a4   : > { %v8060_v23 = vpop.permute.xlu1 %2372 }
 0x6a6   : > { %v8062_v15 = vpop.permute.xlu0 %2374 }
 0x6a8   : > { %v8064_v16 = vpop.permute.xlu1 %2376 }
 0x6aa   : > { %v8066_v12 = vpop.permute.xlu0 %2378 }
 0x6ac   : > { %v8068_v19 = vpop.permute.xlu1 %2380 }
 0x6ae   : > { %v8070_v26 = vpop.permute.xlu0 %2382 }
 0x6b0   : > { %v8072_v24 = vpop.permute.xlu1 %2384 }
 0x6b2   : > { %v8074_v13 = vpop.permute.xlu0 %2386 }
 0x6b4   : > { %v8076_v35 = vpop.permute.xlu1 %2388 }
 0x6b6   : > { %v8078_v44 = vpop.permute.xlu0 %2390 }
 0x6b8   : > { %v8080_v29 = vpop.permute.xlu1 %2392 }
 0x6ba   : > { %v8082_v30 = vpop.permute.xlu0 %2394 }
 0x6bc   : > { %v8084_v14 = vpop.permute.xlu1 %2396 }
 0x6be   : > { %v8086_v34 = vpop.permute.xlu0 %3247 }
 0x6c0   : > { %v8088_v58 = vpop.permute.xlu1 %3245 }
 0x6c2   : > { %v8090_v62 = vpop.permute.xlu0 %3243 }
 0x6c4   : > { %v8092_v59 = vpop.permute.xlu1 %3241 }
 0x6c6   : > { %v8094_v7 = vpop.permute.xlu0 %3239 }
 0x6c8   : > { %v8096_v10 = vpop.permute.xlu1 %3237 }
 0x6ca   : > { %v8098_v25 = vpop.permute.xlu0 %3235 }
 0x6cc   : > { %v8100_v3 = vpop.permute.xlu1 %3233 }
 0x6ce   : > { %v8102_v31 = vpop.permute.xlu0 %3231 }
 0x6d0   : > { %v8104_v50 = vpop.permute.xlu1 %3229 }
 0x6d2   : > { %v8106_v48 = vpop.permute.xlu0 %3227 }
 0x6d4   : > { %v8108_v47 = vpop.permute.xlu1 %3225 }
 0x6d6   : > { %v8110_v39 = vpop.permute.xlu0 %3223 }
 0x6d8   : > { %v8112_v45 = vpop.permute.xlu1 %3221 }
 0x6da   : > { %v8114_v43 = vpop.permute.xlu0 %3219 }
 0x6dc   : > { %v8116_v42 = vpop.permute.xlu1 %3217 }
 0x6de   : > { %v8118_v46 = vpop.permute.xlu0 %3185 }
 0x6e0   : > { %v8120_v27 = vpop.permute.xlu1 %3187 }
 0x6e2   : > { %v8122_v53 = vpop.permute.xlu0 %3189 }
 0x6e4   : > { %v8124_v51 = vpop.permute.xlu1 %3191 }
 0x6e6   : > { %v8126_v56 = vpop.permute.xlu0 %3193 }
 0x6e8   : > { %v8128_v55 = vpop.permute.xlu1 %3195 }
 0x6e9   : > { %9757 = vst [vmem:[#allocation47_spill] sm:$0xff] %v8128_v55 }
 0x6ea   : > { %v8130_v54 = vpop.permute.xlu0 %3197 }
 0x6eb   : > { %9758 = vst [vmem:[#allocation48_spill] sm:$0xff] %v8130_v54 }
 0x6ec   : > { %v8132_v49 = vpop.permute.xlu1 %3199 }
 0x6ed   : > { %9759 = vst [vmem:[#allocation49_spill] sm:$0xff] %v8132_v49 }
 0x6ee   : > { %v8134_v52 = vpop.permute.xlu0 %3201 }
 0x6ef   : > { %9760 = vst [vmem:[#allocation50_spill] sm:$0xff] %v8134_v52 }
 0x6f0   : > { %v8136_v4 = vpop.permute.xlu1 %3203 }
 0x6f1   : > { %9761 = vst [vmem:[#allocation51_spill] sm:$0xff] %v8136_v4 }
 0x6f2   : > { %v8138_v22 = vpop.permute.xlu0 %3205 }
 0x6f3   : > { %9762 = vst [vmem:[#allocation52_spill] sm:$0xff] %v8138_v22 }
 0x6f4   : > { %v8140_v5 = vpop.permute.xlu1 %3207 }
 0x6f6   : > { %v8142_v6 = vpop.permute.xlu0 %3209 }
 0x6f8   : > { %v8144_v0 = vpop.permute.xlu1 %3211 }
 0x6fa   : > { %v8146_v20 = vpop.permute.xlu0 %3215 }
 0x6fb   : > { %9763 = vst [vmem:[#allocation53_spill] sm:$0xff] %v8146_v20 }
 0x6fc   : > { %v8148_v57 = vpop.permute.xlu1 %3213 }
 0x6fe   : > { %v2814_v55 = vpop.permute.xlu0 %2813 }
 0x6ff   : > { %6208 = vmatprep.subr.mxu0 %v2814_v55 }
 0x700   : > { %v2812_v54 = vpop.permute.xlu1 %2811  ;;  %6209 = vmatpush3.msra.mxu0 %v2814_v55 }
 0x701   : > { %v6078_v49 = vpop.f32.mrf.mxu1  ;;  %6210 = vmatprep.subr.mxu0 %v2812_v54 }
 0x702   : > { %6211 = vmatpush3.msra.mxu0 %v2812_v54  ;;  %v2810_v4 = vpop.permute.xlu0 %2809 }
 0x703   : > { %v1901_v52 = vpop.f32.mrf.mxu1  ;;  %6212 = vmatprep.subr.mxu0 %v2810_v4 }
 0x704   : > { %v2808_v22 = vpop.permute.xlu1 %2807  ;;  %6102 = vmatprep.mubr.msk.f32.mxu1 %vm823_vm1, %v1901_v52  ;;  %6213 = vmatpush3.msra.mxu0 %v2810_v4 }
 0x705   : > { %6103 = vmatmul.mubr.msk.f32.vlgmr.msra.gmra.mxu1 %vm823_vm1, %v6078_v49  ;;  %6214 = vmatprep.subr.mxu0 %v2808_v22 }
 0x706   : > { %6153 = vmatpush3.xpose.msk.msra.mxu1 %vm823_vm1, %v7989_v37  ;;  %6215 = vmatpush3.msra.mxu0 %v2808_v22  ;;  %v2806_v20 = vpop.permute.xlu0 %2805 }
 0x707   : > { %6154 = vmatprep.subr.msk.mxu1 %vm823_vm1, %v8002_v8  ;;  %6216 = vmatprep.subr.mxu0 %v2806_v20 }
 0x708   : > { %v2804_v54 = vpop.permute.xlu1 %2803  ;;  %6217 = vmatpush3.msra.mxu0 %v2806_v20 }
 0x709   : > { %6218 = vmatprep.subr.mxu0 %v2804_v54 }
 0x70a   : > { %6155 = vmatpush3.xpose.msk.msra.mxu1 %vm823_vm1, %v8002_v8  ;;  %6219 = vmatpush3.msra.mxu0 %v2804_v54  ;;  %v2802_v52 = vpop.permute.xlu0 %2801 }
 0x70b   : > { %6156 = vmatprep.subr.msk.mxu1 %vm823_vm1, %v7999_v63  ;;  %6220 = vmatprep.subr.mxu0 %v2802_v52 }
 0x70c   : > { %v2800_v49 = vpop.permute.xlu1 %2799  ;;  %6221 = vmatpush3.msra.mxu0 %v2802_v52  ;;  %v9787_v52 = vld [vmem:[#allocation26_spill] sm:$0xff] }
 0x70d   : > { %6222 = vmatprep.subr.mxu0 %v2800_v49 }
 0x70e   : > { %6157 = vmatpush3.xpose.msk.msra.mxu1 %vm823_vm1, %v7999_v63  ;;  %6223 = vmatpush3.msra.mxu0 %v2800_v49  ;;  %v9788_v49 = vld [vmem:[#allocation23_spill] sm:$0xff] }
 0x70f   : > { %6158 = vmatprep.subr.msk.mxu1 %vm823_vm1, %v8009_v32 }
 0x712   : > { %6159 = vmatpush3.xpose.msk.msra.mxu1 %vm823_vm1, %v8009_v32 }
 0x713   : > { %6160 = vmatprep.subr.msk.mxu1 %vm823_vm1, %v8012_v18 }
 0x716   : > { %6161 = vmatpush3.xpose.msk.msra.mxu1 %vm823_vm1, %v8012_v18 }
 0x717   : > { %6162 = vmatprep.subr.msk.mxu1 %vm823_vm1, %v8019_v1 }
 0x71a   : > { %6163 = vmatpush3.xpose.msk.msra.mxu1 %vm823_vm1, %v8019_v1 }
 0x71b   : > { %6164 = vmatprep.subr.msk.mxu1 %vm823_vm1, %v8022_v11 }
 0x71e   : > { %6165 = vmatpush3.xpose.msk.msra.mxu1 %vm823_vm1, %v8022_v11 }
 0x71f   : > { %6166 = vmatprep.subr.msk.mxu1 %vm823_vm1, %v8029_v41 }
 0x722   : > { %6167 = vmatpush3.xpose.msk.msra.mxu1 %vm823_vm1, %v8029_v41 }
 0x723   : > { %6168 = vmatprep.subr.msk.mxu1 %vm823_vm1, %v8032_v28 }
 0x726   : > { %6169 = vmatpush3.xpose.msk.msra.mxu1 %vm823_vm1, %v8032_v28 }
 0x727   : > { %6170 = vmatprep.subr.msk.mxu1 %vm823_vm1, %v8038_v38 }
 0x72a   : > { %6171 = vmatpush3.xpose.msk.msra.mxu1 %vm823_vm1, %v8038_v38 }
 0x72b   : > { %6172 = vmatprep.subr.msk.mxu1 %vm823_vm1, %v8040_v9 }
 0x72e   : > { %6173 = vmatpush3.xpose.msk.msra.mxu1 %vm823_vm1, %v8040_v9 }
 0x72f   : > { %6174 = vmatprep.subr.msk.mxu1 %vm823_vm1, %v8044_v2 }
 0x732   : > { %6175 = vmatpush3.xpose.msk.msra.mxu1 %vm823_vm1, %v8044_v2 }
 0x733   : > { %6176 = vmatprep.subr.msk.mxu1 %vm823_vm1, %v8046_v60 }
 0x735   : > { %v6081_v55 = vpop.f32.mrf.mxu1 }
 0x736   : > { %6177 = vmatpush3.xpose.msk.msra.mxu1 %vm823_vm1, %v8046_v60 }
 0x737   : > { %6178 = vmatprep.subr.msk.mxu1 %vm823_vm1, %v8048_v17  ;;  %v1911_v20 = vpop.f32.mrf.mxu1 }
 0x738   : > { %6105 = vmatprep.mubr.msk.f32.mxu1 %vm823_vm1, %v1911_v20 }
 0x739   : > { %6106 = vmatmul.mubr.msk.f32.gmra.mxu1 %vm823_vm1, %v6081_v55 }
 0x73a   : > { %6179 = vmatpush3.xpose.msk.msra.mxu1 %vm823_vm1, %v8048_v17 }
 0x73b   : > { %6180 = vmatprep.subr.msk.mxu1 %vm823_vm1, %v8050_v21  ;;  %v6084_v4 = vpop.f32.mrf.mxu1 }
 0x73d   : > { %v1921_v22 = vpop.f32.mrf.mxu1 }
 0x73e   : > { %6181 = vmatpush3.xpose.msk.msra.mxu1 %vm823_vm1, %v8050_v21  ;;  %6108 = vmatprep.mubr.msk.f32.mxu1 %vm823_vm1, %v1921_v22 }
 0x73f   : > { %6182 = vmatprep.subr.msk.mxu1 %vm823_vm1, %v8052_v61  ;;  %v6087_v37 = vpop.f32.mrf.mxu1  ;;  %6109 = vmatmul.mubr.msk.f32.gmra.mxu1 %vm823_vm1, %v6084_v4 }
 0x741   : > { %v1931_v63 = vpop.f32.mrf.mxu1 }
 0x742   : > { %6183 = vmatpush3.xpose.msk.msra.mxu1 %vm823_vm1, %v8052_v61  ;;  %6111 = vmatprep.mubr.msk.f32.mxu1 %vm823_vm1, %v1931_v63 }
 0x743   : > { %6290 = vmatprep.subr.msk.mxu1 %vm823_vm1, %v8086_v34  ;;  %v6090_v8 = vpop.f32.mrf.mxu1  ;;  %6112 = vmatmul.mubr.msk.f32.gmra.mxu1 %vm823_vm1, %v6087_v37 }
 0x745   : > { %v1941_v32 = vpop.f32.mrf.mxu1 }
 0x746   : > { %6114 = vmatprep.mubr.msk.f32.mxu1 %vm823_vm1, %v1941_v32  ;;  %v9789_v32 = vld [vmem:[#allocation46_spill] sm:$0xff] }
 0x747   : > { %v6093_v18 = vpop.f32.mrf.mxu1  ;;  %6115 = vmatmul.mubr.msk.f32.gmra.mxu1 %vm823_vm1, %v6090_v8 }
 0x749   : > { %v1951_v1 = vpop.f32.mrf.mxu1 }
 0x74a   : > { %6117 = vmatprep.mubr.msk.f32.mxu1 %vm823_vm1, %v1951_v1  ;;  %v9790_v1 = vld [vmem:[#allocation37_spill] sm:$0xff] }
 0x74b   : > { %v6096_v11 = vpop.f32.mrf.mxu1  ;;  %6118 = vmatmul.mubr.msk.f32.gmra.mxu1 %vm823_vm1, %v6093_v18 }
 0x74d   : > { %v1961_v41 = vpop.f32.mrf.mxu1 }
 0x74e   : > { %6120 = vmatprep.mubr.msk.f32.mxu1 %vm823_vm1, %v1961_v41  ;;  %v9791_v41 = vld [vmem:[#allocation43_spill] sm:$0xff] }
 0x74f   : > { %v6099_v28 = vpop.f32.mrf.mxu1  ;;  %6121 = vmatmul.mubr.msk.f32.gmra.mxu1 %vm823_vm1, %v6096_v11 }
 0x751   : > { %v1971_v38 = vpop.f32.mrf.mxu1 }
 0x752   : > { %6123 = vmatprep.mubr.msk.f32.mxu1 %vm823_vm1, %v1971_v38  ;;  %v9792_v38 = vld [vmem:[#allocation38_spill] sm:$0xff] }
 0x753   : > { %6124 = vmatmul.mubr.msk.f32.gmra.mxu1 %vm823_vm1, %v6099_v28 }
 0x754   : > { %6184 = vmatprep.mubr.msk.f32.mxu1 %vm823_vm1, %v8054_v33 }
 0x757   : > { %6185 = vmatmul.mubr.msk.f32.vlgmr.msra.gmra.mxu1 %vm823_vm1, %v8056_v36 }
 0x758   : > { %6291 = vmatpush3.xpose.msk.msra.mxu1 %vm823_vm1, %v8086_v34  ;;  %6187 = vmatprep.mubr.msk.f32.mxu1 %vm823_vm1, %v8058_v40  ;;  %v9779_v40 = vld [vmem:[#allocation31_spill] sm:$0xff] }
 0x759   : > { %6292 = vmatprep.subr.msk.mxu1 %vm823_vm1, %v8088_v58  ;;  %v9783_v34 = vld [vmem:[#allocation35_spill] sm:$0xff] }
 0x75b   : > { %6188 = vmatmul.mubr.msk.f32.gmra.mxu1 %vm823_vm1, %v8060_v23 }
 0x75c   : > { %6293 = vmatpush3.xpose.msk.msra.mxu1 %vm823_vm1, %v8088_v58  ;;  %6190 = vmatprep.mubr.msk.f32.mxu1 %vm823_vm1, %v8062_v15 }
 0x75d   : > { %6294 = vmatprep.subr.msk.mxu1 %vm823_vm1, %v8090_v62 }
 0x75f   : > { %6191 = vmatmul.mubr.msk.f32.gmra.mxu1 %vm823_vm1, %v8064_v16  ;;  %v9780_v16 = vld [vmem:[#allocation32_spill] sm:$0xff] }
 0x760   : > { %6295 = vmatpush3.xpose.msk.msra.mxu1 %vm823_vm1, %v8090_v62  ;;  %6193 = vmatprep.mubr.msk.f32.mxu1 %vm823_vm1, %v8066_v12 }
 0x761   : > { %6296 = vmatprep.subr.msk.mxu1 %vm823_vm1, %v8092_v59 }
 0x763   : > { %6194 = vmatmul.mubr.msk.f32.gmra.mxu1 %vm823_vm1, %v8068_v19 }
 0x764   : > { %6297 = vmatpush3.xpose.msk.msra.mxu1 %vm823_vm1, %v8092_v59  ;;  %6196 = vmatprep.mubr.msk.f32.mxu1 %vm823_vm1, %v8070_v26  ;;  %v9781_v26 = vld [vmem:[#allocation33_spill] sm:$0xff]  ;;  %v9784_v59 = vld [vmem:[#allocation42_spill] sm:$0xff] }
 0x765   : > { %6298 = vmatprep.subr.msk.mxu1 %vm823_vm1, %v8094_v7 }
 0x767   : > { %6197 = vmatmul.mubr.msk.f32.gmra.mxu1 %vm823_vm1, %v8072_v24 }
 0x768   : > { %6299 = vmatpush3.xpose.msk.msra.mxu1 %vm823_vm1, %v8094_v7  ;;  %6199 = vmatprep.mubr.msk.f32.mxu1 %vm823_vm1, %v8074_v13 }
 0x769   : > { %6300 = vmatprep.subr.msk.mxu1 %vm823_vm1, %v8096_v10 }
 0x76b   : > { %6200 = vmatmul.mubr.msk.f32.gmra.mxu1 %vm823_vm1, %v8076_v35 }
 0x76c   : > { %6301 = vmatpush3.xpose.msk.msra.mxu1 %vm823_vm1, %v8096_v10  ;;  %6202 = vmatprep.mubr.msk.f32.mxu1 %vm823_vm1, %v8078_v44  ;;  %v9782_v44 = vld [vmem:[#allocation34_spill] sm:$0xff]  ;;  %v9785_v10 = vld [vmem:[#allocation41_spill] sm:$0xff] }
 0x76d   : > { %6302 = vmatprep.subr.msk.mxu1 %vm823_vm1, %v8098_v25 }
 0x76f   : > { %6203 = vmatmul.mubr.msk.f32.gmra.mxu1 %vm823_vm1, %v8080_v29 }
 0x770   : > { %6303 = vmatpush3.xpose.msk.msra.mxu1 %vm823_vm1, %v8098_v25  ;;  %6205 = vmatprep.mubr.msk.f32.mxu1 %vm823_vm1, %v8082_v30 }
 0x771   : > { %6304 = vmatprep.subr.msk.mxu1 %vm823_vm1, %v8100_v3 }
 0x773   : > { %6206 = vmatmul.mubr.msk.f32.gmra.mxu1 %vm823_vm1, %v8084_v14 }
 0x774   : > { %6305 = vmatpush3.xpose.msk.msra.mxu1 %vm823_vm1, %v8100_v3  ;;  %6322 = vmatprep.mubr.msk.f32.mxu1 %vm823_vm1, %v8118_v46  ;;  %v9769_v46 = vld [vmem:[#allocation52_spill] sm:$0xff] }
 0x775   : > { %6306 = vmatprep.subr.msk.mxu1 %vm823_vm1, %v8102_v31  ;;  %v9786_v3 = vld [vmem:[#allocation36_spill] sm:$0xff] }
 0x778   : > { %6307 = vmatpush3.xpose.msk.msra.mxu1 %vm823_vm1, %v8102_v31 }
 0x779   : > { %6308 = vmatprep.subr.msk.mxu1 %vm823_vm1, %v8104_v50 }
 0x77c   : > { %6309 = vmatpush3.xpose.msk.msra.mxu1 %vm823_vm1, %v8104_v50 }
 0x77d   : > { %6310 = vmatprep.subr.msk.mxu1 %vm823_vm1, %v8106_v48 }
 0x780   : > { %6311 = vmatpush3.xpose.msk.msra.mxu1 %vm823_vm1, %v8106_v48 }
 0x781   : > { %6312 = vmatprep.subr.msk.mxu1 %vm823_vm1, %v8108_v47 }
 0x784   : > { %6313 = vmatpush3.xpose.msk.msra.mxu1 %vm823_vm1, %v8108_v47  ;;  %v9770_v47 = vld [vmem:[#allocation53_spill] sm:$0xff] }
 0x785   : > { %6314 = vmatprep.subr.msk.mxu1 %vm823_vm1, %v8110_v39 }
 0x788   : > { %6315 = vmatpush3.xpose.msk.msra.mxu1 %vm823_vm1, %v8110_v39  ;;  %v9764_v39 = vld [vmem:[#allocation47_spill] sm:$0xff] }
 0x789   : > { %6316 = vmatprep.subr.msk.mxu1 %vm823_vm1, %v8112_v45 }
 0x78c   : > { %6317 = vmatpush3.xpose.msk.msra.mxu1 %vm823_vm1, %v8112_v45  ;;  %v9766_v45 = vld [vmem:[#allocation49_spill] sm:$0xff] }
 0x78d   : > { %6318 = vmatprep.subr.msk.mxu1 %vm823_vm1, %v8114_v43 }
 0x790   : > { %6319 = vmatpush3.xpose.msk.msra.mxu1 %vm823_vm1, %v8114_v43  ;;  %v9765_v43 = vld [vmem:[#allocation48_spill] sm:$0xff] }
 0x791   : > { %6320 = vmatprep.subr.msk.mxu1 %vm823_vm1, %v8116_v42 }
 0x794   : > { %6321 = vmatpush3.xpose.msk.msra.mxu1 %vm823_vm1, %v8116_v42  ;;  %v9767_v42 = vld [vmem:[#allocation50_spill] sm:$0xff] }
 0x797   : > { %6323 = vmatmul.mubr.msk.f32.vlgmr.msra.gmra.mxu1 %vm823_vm1, %v8120_v27  ;;  %v9768_v27 = vld [vmem:[#allocation51_spill] sm:$0xff] }
 0x798   : > { %6325 = vmatprep.mubr.msk.f32.mxu1 %vm823_vm1, %v8122_v53 }
 0x79b   : > { %6326 = vmatmul.mubr.msk.f32.gmra.mxu1 %vm823_vm1, %v8124_v51 }
 0x79c   : > { %6328 = vmatprep.mubr.msk.f32.mxu1 %vm823_vm1, %v8126_v56 }
 0x79f   : > { %6329 = vmatmul.mubr.msk.f32.gmra.mxu1 %vm823_vm1, %v9764_v39 }
 0x7a0   : > { %6331 = vmatprep.mubr.msk.f32.mxu1 %vm823_vm1, %v9765_v43  ;;  %v9793_v43 = vld [vmem:[#allocation44_spill] sm:$0xff] }
 0x7a3   : > { %6332 = vmatmul.mubr.msk.f32.gmra.mxu1 %vm823_vm1, %v9766_v45 }
 0x7a4   : > { %6334 = vmatprep.mubr.msk.f32.mxu1 %vm823_vm1, %v9767_v42  ;;  %v9794_v42 = vld [vmem:[#allocation39_spill] sm:$0xff] }
 0x7a7   : > { %6335 = vmatmul.mubr.msk.f32.gmra.mxu1 %vm823_vm1, %v9768_v27 }
 0x7a8   : > { %6337 = vmatprep.mubr.msk.f32.mxu1 %vm823_vm1, %v9769_v46  ;;  %v9795_v46 = vld [vmem:[#allocation28_spill] sm:$0xff] }
 0x7ab   : > { %6338 = vmatmul.mubr.msk.f32.gmra.mxu1 %vm823_vm1, %v8140_v5 }
 0x7ac   : > { %6340 = vmatprep.mubr.msk.f32.mxu1 %vm823_vm1, %v8142_v6 }
 0x7af   : > { %6341 = vmatmul.mubr.msk.f32.gmra.mxu1 %vm823_vm1, %v8144_v0 }
 0x7b0   : > { %6343 = vmatprep.mubr.msk.f32.mxu1 %vm823_vm1, %v8148_v57 }
 0x7b3   : > { %6344 = vmatmul.mubr.msk.f32.gmra.mxu1 %vm823_vm1, %v9770_v47  ;;  %v9796_v47 = vld [vmem:[#allocation45_spill] sm:$0xff] }
 0x7c5   : > { %v8356_v48 = vpop.f32.mrf.mxu1 }
 0x7c7   : > { %v8358_v50 = vpop.f32.mrf.mxu1 }
 0x7f9   : > { %v8360_v51 = vpop.f32.mrf.mxu1 }
 0x7fb   : > { %v8362_v53 = vpop.f32.mrf.mxu1 }
 0x7ff   : > { %v8364_v56 = vpop.f32.mrf.mxu1 }
 0x801   : > { %v8366_v6 = vpop.f32.mrf.mxu1 }
 0x803   : > { %v8368_v5 = vpop.f32.mrf.mxu1 }
 0x805   : > { %v8370_v0 = vpop.f32.mrf.mxu1 }
 0x807   : > { %v8372_v57 = vpop.f32.mrf.mxu1 }
 0x808   : > { %9771 = vst [vmem:[#allocation47_spill] sm:$0xff] %v8372_v57 }
 0x809   : > { %v8374_v9 = vpop.f32.mrf.mxu1 }
 0x80a   : > { %9772 = vst [vmem:[#allocation48_spill] sm:$0xff] %v8374_v9 }
 0x80b   : > { %v8376_v2 = vpop.f32.mrf.mxu1 }
 0x80c   : > { %9773 = vst [vmem:[#allocation49_spill] sm:$0xff] %v8376_v2 }
 0x80d   : > { %v8378_v60 = vpop.f32.mrf.mxu1 }
 0x80e   : > { %9774 = vst [vmem:[#allocation50_spill] sm:$0xff] %v8378_v60 }
 0x80f   : > { %v8380_v17 = vpop.f32.mrf.mxu1 }
 0x810   : > { %9775 = vst [vmem:[#allocation51_spill] sm:$0xff] %v8380_v17 }
 0x811   : > { %v8382_v21 = vpop.f32.mrf.mxu1 }
 0x812   : > { %9776 = vst [vmem:[#allocation52_spill] sm:$0xff] %v8382_v21 }
 0x813   : > { %v8384_v61 = vpop.f32.mrf.mxu1 }
 0x814   : > { %9777 = vst [vmem:[#allocation53_spill] sm:$0xff] %v8384_v61 }
 0x815   : > { %v8386_v33 = vpop.f32.mrf.mxu1 }
 0x816   : > { %9778 = vst [vmem:[#allocation54_spill] sm:$0xff] %v8386_v33 }
 0x817   : > { %v6186_v36 = vpop.f32.mrf.mxu1 }
 0x818   : > { %v2566_v23 = vadd.f32 %v6186_v36, %v9779_v40 }
 0x819   : > { %v2560_v15 = vpop.f32.mrf.mxu1 }
 0x81a   : > { %v2561_v12 = vadd.f32 %v2560_v15, %v9780_v16  ;;  %2641 = vmax.xlane.f32.xlu1 %v2566_v23  ;;  %v9797_v15 = vld [vmem:[#allocation29_spill] sm:$0xff] }
 0x81b   : > { %v6189_v19 = vpop.f32.mrf.mxu1 }
 0x81c   : > { %v2576_v24 = vadd.f32 %v6189_v19, %v9781_v26  ;;  %2639 = vmax.xlane.f32.xlu0 %v2561_v12  ;;  %v9798_v19 = vld [vmem:[#allocation40_spill] sm:$0xff] }
 0x81d   : > { %v2570_v13 = vpop.f32.mrf.mxu1 }
 0x81e   : > { %2645 = vmax.xlane.f32.xlu1 %v2576_v24  ;;  %v2571_v29 = vadd.f32 %v2570_v13, %v9782_v44 }
 0x81f   : > { %v6192_v35 = vpop.f32.mrf.mxu1 }
 0x820   : > { %v2586_v58 = vadd.f32 %v6192_v35, %v9783_v34  ;;  %v9799_v35 = vld [vmem:[#allocation30_spill] sm:$0xff] }
 0x821   : > { %v2580_v30 = vpop.f32.mrf.mxu1 }
 0x822   : > { %2643 = vmax.xlane.f32.xlu1 %v2571_v29  ;;  %v8397_v25 = vadd.f32 %v2580_v30, %v9785_v10  ;;  %v9800_v30 = vld [vmem:[#allocation25_spill] sm:$0xff] }
 0x823   : > { %v6195_v14 = vpop.f32.mrf.mxu1 }
 0x824   : > { %v8402_v31 = vadd.f32 %v6195_v14, %v9786_v3  ;;  %v9801_v14 = vld [vmem:[#allocation27_spill] sm:$0xff] }
 0x825   : > { %v2590_v62 = vpop.f32.mrf.mxu1 }
 0x826   : > { %v8394_v7 = vadd.f32 %v2590_v62, %v9784_v59  ;;  %2649 = vmax.xlane.f32.xlu1 %v2586_v58  ;;  %v9802_v62 = vld [vmem:[#allocation15_spill] sm:$0xff] }
 0x827   : > { %v6198_v54 = vpop.f32.mrf.mxu1 }
 0x828   : > { %2651 = vmax.xlane.f32.xlu0 %v8394_v7  ;;  %v8414_v11 = vadd.f32 %v6198_v54, %v9790_v1 }
 0x829   : > { %v2600_v55 = vpop.f32.mrf.mxu1 }
 0x82a   : > { %2647 = vmax.xlane.f32.xlu1 %v8397_v25  ;;  %v8418_v28 = vadd.f32 %v2600_v55, %v9791_v41 }
 0x82b   : > { %v6201_v20 = vpop.f32.mrf.mxu1 }
 0x82c   : > { %v8422_v39 = vadd.f32 %v6201_v20, %v9792_v38 }
 0x82d   : > { %v2610_v4 = vpop.f32.mrf.mxu1 }
 0x82e   : > { %2653 = vmax.xlane.f32.xlu1 %v8402_v31  ;;  %v8426_v45 = vadd.f32 %v2610_v4, %v9793_v43 }
 0x82f   : > { %v6204_v22 = vpop.f32.mrf.mxu1 }
 0x830   : > { %v8430_v27 = vadd.f32 %v6204_v22, %v9794_v42 }
 0x831   : > { %v2620_v37 = vpop.f32.mrf.mxu1 }
 0x832   : > { %v8436_v36 = vadd.f32 %v2620_v37, %v9796_v47 }
 0x833   : > { %v6207_v63 = vpop.f32.mrf.mxu1 }
 0x834   : > { %v8442_v13 = vadd.f32 %v6207_v63, %v9798_v19 }
 0x835   : > { %v2630_v8 = vpop.f32.mrf.mxu1 }
 0x836   : > { %v8410_v18 = vadd.f32 %v2630_v8, %v9789_v32 }
 0x83e   : > { %2797 = vrot.lane.b32.xlu0 %v9787_v52, %s6989_s15 }
 0x83f   : > { %2795 = vrot.lane.b32.xlu1 %v9788_v49, %s6989_s15 }
 0x85d   : > { %2667 = vmax.xlane.f32.xlu0 %v8410_v18 }
 0x863   : > { %2657 = vmax.xlane.f32.xlu1 %v8414_v11 }
 0x867   : > { %2655 = vmax.xlane.f32.xlu1 %v8418_v28 }
 0x86b   : > { %2661 = vmax.xlane.f32.xlu1 %v8422_v39 }
 0x86f   : > { %2659 = vmax.xlane.f32.xlu1 %v8426_v45 }
 0x873   : > { %2665 = vmax.xlane.f32.xlu1 %v8430_v27  ;;  %2793 = vrot.lane.b32.xlu0 %v9795_v46, %s6989_s15 }
 0x877   : > { %2663 = vmax.xlane.f32.xlu1 %v8436_v36  ;;  %2789 = vrot.lane.b32.xlu0 %v9797_v15, %s6989_s15 }
 0x87b   : > { %2669 = vmax.xlane.f32.xlu1 %v8442_v13  ;;  %2785 = vrot.lane.b32.xlu0 %v9799_v35, %s6989_s15 }
 0x88c   : > { %2791 = vrot.lane.b32.xlu1 %v9800_v30, %s6989_s15 }
 0x890   : > { %2787 = vrot.lane.b32.xlu1 %v9801_v14, %s6989_s15 }
 0x894   : > { %2783 = vrot.lane.b32.xlu1 %v9802_v62, %s6989_s15 }
 0x8a3   : > { %v2642_v54 = vpop.xlane.xlu1 %2641 }
 0x8a4   : > { %v2672_v55 = vsub.f32 %v2566_v23, %v2642_v54 }
 0x8a5   : > { %v2640_v20 = vpop.xlane.xlu0 %2639 }
 0x8a6   : > { %v2689_v4 = vmul.f32 1.442695, %v2672_v55  ;;  %v2671_v22 = vsub.f32 %v2561_v12, %v2640_v20 }
 0x8a7   : > { %v2646_v37 = vpop.xlane.xlu1 %2645 }
 0x8a8   : > { %6723 = vpow2.f32 %v2689_v4  ;;  %v2687_v63 = vmul.f32 1.442695, %v2671_v22  ;;  %v2674_v8 = vsub.f32 %v2576_v24, %v2646_v37 }
 0x8aa   : > { %6725 = vpow2.f32 %v2687_v63  ;;  %v2693_v33 = vmul.f32 1.442695, %v2674_v8 }
 0x8ab   : > { %v2644_v61 = vpop.xlane.xlu1 %2643 }
 0x8ac   : > { %6727 = vpow2.f32 %v2693_v33  ;;  %v2673_v21 = vsub.f32 %v2571_v29, %v2644_v61 }
 0x8ae   : > { %v2691_v17 = vmul.f32 1.442695, %v2673_v21 }
 0x8af   : > { %v2650_v60 = vpop.xlane.xlu1 %2649 }
 0x8b0   : > { %6729 = vpow2.f32 %v2691_v17  ;;  %v2676_v2 = vsub.f32 %v2586_v58, %v2650_v60 }
 0x8b1   : > { %v2652_v9 = vpop.xlane.xlu0 %2651 }
 0x8b2   : > { %v2697_v57 = vmul.f32 1.442695, %v2676_v2  ;;  %v2677_v23 = vsub.f32 %v8394_v7, %v2652_v9 }
 0x8b3   : > { %v2648_v54 = vpop.xlane.xlu1 %2647 }
 0x8b4   : > { %6731 = vpow2.f32 %v2697_v57  ;;  %v2675_v12 = vsub.f32 %v8397_v25, %v2648_v54  ;;  %v2699_v21 = vmul.f32 1.442695, %v2677_v23 }
 0x8b5   : > { %v8455_v55 = vpop.eup %6723  ;;  %v2798_v24 = vpop.permute.xlu0 %2797 }
 0x8b6   : > { %v2695_v20 = vmul.f32 1.442695, %v2675_v12  ;;  %2721 = vadd.xlane.f32.xlu0 %v8455_v55  ;;  %6224 = vmatprep.subr.mxu0 %v2798_v24 }
 0x8b7   : > { %v8458_v61 = vpop.eup %6725  ;;  %v2654_v17 = vpop.xlane.xlu1 %2653  ;;  %6225 = vmatpush3.msra.mxu0 %v2798_v24 }
 0x8b8   : > { %6733 = vpow2.f32 %v2695_v20  ;;  %v2678_v2 = vsub.f32 %v8402_v31, %v2654_v17  ;;  %2719 = vadd.xlane.f32.xlu1 %v8458_v61  ;;  %v6324_v20 = vpop.f32.mrf.mxu1 }
 0x8b9   : > { %v8462_v57 = vpop.eup %6727  ;;  %6735 = vpow2.f32 %v2699_v21 }
 0x8ba   : > { %v2701_v9 = vmul.f32 1.442695, %v2678_v2  ;;  %2725 = vadd.xlane.f32.xlu0 %v8462_v57 }
 0x8bb   : > { %v2796_v60 = vpop.permute.xlu1 %2795 }
 0x8bc   : > { %6737 = vpow2.f32 %v2701_v9  ;;  %6226 = vmatprep.subr.mxu0 %v2796_v60  ;;  %v3379_v9 = vpop.f32.mrf.mxu1 }
 0x8bd   : > { %v8465_v33 = vpop.eup %6729  ;;  %6227 = vmatpush3.msra.mxu0 %v2796_v60 }
 0x8be   : > { %2723 = vadd.xlane.f32.xlu1 %v8465_v33 }
 0x8c1   : > { %v8468_v29 = vpop.eup %6731 }
 0x8c2   : > { %2729 = vadd.xlane.f32.xlu0 %v8468_v29 }
 0x8c5   : > { %v8471_v58 = vpop.eup %6733 }
 0x8c6   : > { %2727 = vadd.xlane.f32.xlu1 %v8471_v58  ;;  %v8474_v7 = vpop.eup %6735 }
 0x8c9   : > { %v8476_v25 = vpop.eup %6737 }
 0x8ca   : > { %2733 = vadd.xlane.f32.xlu0 %v8476_v25  ;;  %2731 = vadd.xlane.f32.xlu1 %v8474_v7 }
 0x8e6   : > { %v2668_v31 = vpop.xlane.xlu0 %2667 }
 0x8ea   : > { %v2794_v4 = vpop.permute.xlu0 %2793 }
 0x8eb   : > { %6228 = vmatprep.subr.mxu0 %v2794_v4 }
 0x8ec   : > { %v2658_v22 = vpop.xlane.xlu1 %2657  ;;  %6229 = vmatpush3.msra.mxu0 %v2794_v4 }
 0x8ed   : > { %v2680_v37 = vsub.f32 %v8414_v11, %v2658_v22 }
 0x8ef   : > { %v2705_v63 = vmul.f32 1.442695, %v2680_v37 }
 0x8f0   : > { %v2656_v8 = vpop.xlane.xlu1 %2655 }
 0x8f1   : > { %6739 = vpow2.f32 %v2705_v63  ;;  %v2679_v23 = vsub.f32 %v8418_v28, %v2656_v8  ;;  %v6327_v28 = vpop.f32.mrf.mxu1 }
 0x8f3   : > { %v2703_v54 = vmul.f32 1.442695, %v2679_v23 }
 0x8f4   : > { %v2662_v12 = vpop.xlane.xlu1 %2661 }
 0x8f5   : > { %6741 = vpow2.f32 %v2703_v54  ;;  %v2682_v24 = vsub.f32 %v8422_v39, %v2662_v12  ;;  %v2685_v39 = vsub.f32 %v8410_v18, %v2668_v31  ;;  %v2790_v18 = vpop.permute.xlu0 %2789 }
 0x8f7   : > { %v2709_v21 = vmul.f32 1.442695, %v2682_v24  ;;  %v2715_v12 = vmul.f32 1.442695, %v2685_v39 }
 0x8f8   : > { %v2660_v17 = vpop.xlane.xlu1 %2659 }
 0x8f9   : > { %6743 = vpow2.f32 %v2709_v21  ;;  %v2681_v2 = vsub.f32 %v8426_v45, %v2660_v17  ;;  %v3389_v45 = vpop.f32.mrf.mxu1 }
 0x8fb   : > { %v2707_v60 = vmul.f32 1.442695, %v2681_v2  ;;  %v6330_v17 = vpop.f32.mrf.mxu1 }
 0x8fc   : > { %v2666_v4 = vpop.xlane.xlu1 %2665 }
 0x8fd   : > { %6745 = vpow2.f32 %v2707_v60  ;;  %v2684_v11 = vsub.f32 %v8430_v27, %v2666_v4  ;;  %v3399_v60 = vpop.f32.mrf.mxu1 }
 0x8fe   : > { %v8485_v22 = vpop.eup %6739 }
 0x8ff   : > { %v2713_v37 = vmul.f32 1.442695, %v2684_v11  ;;  %2737 = vadd.xlane.f32.xlu0 %v8485_v22  ;;  %v6333_v11 = vpop.f32.mrf.mxu1 }
 0x900   : > { %v2664_v63 = vpop.xlane.xlu1 %2663 }
 0x901   : > { %6747 = vpow2.f32 %v2713_v37  ;;  %v2683_v8 = vsub.f32 %v8436_v36, %v2664_v63  ;;  %v2786_v37 = vpop.permute.xlu0 %2785 }
 0x902   : > { %v8490_v23 = vpop.eup %6741 }
 0x903   : > { %v2711_v54 = vmul.f32 1.442695, %v2683_v8  ;;  %2735 = vadd.xlane.f32.xlu1 %v8490_v23  ;;  %v3409_v8 = vpop.f32.mrf.mxu1 }
 0x904   : > { %v2670_v27 = vpop.xlane.xlu1 %2669 }
 0x905   : > { %6749 = vpow2.f32 %v2711_v54  ;;  %v2686_v24 = vsub.f32 %v8442_v13, %v2670_v27  ;;  %v6336_v27 = vpop.f32.mrf.mxu1 }
 0x906   : > { %v8494_v21 = vpop.eup %6743  ;;  %6751 = vpow2.f32 %v2715_v12 }
 0x907   : > { %v2717_v2 = vmul.f32 1.442695, %v2686_v24  ;;  %2741 = vadd.xlane.f32.xlu0 %v8494_v21  ;;  %v8513_v24 = vadd.f32 %v6324_v20, %v9779_v40  ;;  %v8529_v40 = vadd.f32 %v6330_v17, %v9783_v34  ;;  %v8545_v34 = vadd.f32 %v6336_v27, %v9790_v1  ;;  %v9805_v27 = vld [vmem:[#allocation18_spill] sm:$0xff] }
 0x908   : > { %v2792_v36 = vpop.permute.xlu1 %2791 }
 0x909   : > { %6753 = vpow2.f32 %v2717_v2  ;;  %6230 = vmatprep.subr.mxu0 %v2792_v36  ;;  %v8516_v2 = vadd.f32 %v3379_v9, %v9780_v16  ;;  %v8532_v16 = vadd.f32 %v3399_v60, %v9785_v10 }
 0x90a   : > { %v8497_v31 = vpop.eup %6745  ;;  %6231 = vmatpush3.msra.mxu0 %v2792_v36  ;;  %v8521_v36 = vadd.f32 %v6327_v28, %v9781_v26  ;;  %v8537_v26 = vadd.f32 %v6333_v11, %v9786_v3 }
 0x90b   : > { %2739 = vadd.xlane.f32.xlu1 %v8497_v31  ;;  %6232 = vmatprep.subr.mxu0 %v2790_v18 }
 0x90c   : > { %v2788_v4 = vpop.permute.xlu1 %2787  ;;  %6233 = vmatpush3.msra.mxu0 %v2790_v18  ;;  %v3419_v18 = vpop.f32.mrf.mxu1 }
 0x90d   : > { %6234 = vmatprep.subr.mxu0 %v2788_v4  ;;  %v8548_v10 = vadd.f32 %v3419_v18, %v9791_v41 }
 0x90e   : > { %v8500_v13 = vpop.eup %6747  ;;  %6235 = vmatpush3.msra.mxu0 %v2788_v4  ;;  %v8524_v4 = vadd.f32 %v3389_v45, %v9782_v44  ;;  %v8540_v44 = vadd.f32 %v3409_v8, %v9784_v59  ;;  %v9804_v8 = vld [vmem:[#allocation17_spill] sm:$0xff] }
 0x90f   : > { %2745 = vadd.xlane.f32.xlu0 %v8500_v13  ;;  %6236 = vmatprep.subr.mxu0 %v2786_v37 }
 0x910   : > { %v2784_v39 = vpop.permute.xlu1 %2783  ;;  %6237 = vmatpush3.msra.mxu0 %v2786_v37  ;;  %v6339_v37 = vpop.f32.mrf.mxu1 }
 0x911   : > { %6238 = vmatprep.subr.mxu0 %v2784_v39  ;;  %v8553_v3 = vadd.f32 %v6339_v37, %v9792_v38 }
 0x912   : > { %v8503_v63 = vpop.eup %6749  ;;  %6239 = vmatpush3.msra.mxu0 %v2784_v39  ;;  %v3429_v20 = vpop.f32.mrf.mxu1 }
 0x913   : > { %2743 = vadd.xlane.f32.xlu1 %v8503_v63  ;;  %v8506_v54 = vpop.eup %6751  ;;  %v8556_v59 = vadd.f32 %v3429_v20, %v9793_v43 }
 0x914   : > { %v6342_v9 = vpop.f32.mrf.mxu1 }
 0x915   : > { %v8561_v1 = vadd.f32 %v6342_v9, %v9794_v42  ;;  %v9806_v9 = vld [vmem:[#allocation19_spill] sm:$0xff] }
 0x916   : > { %v8508_v12 = vpop.eup %6753  ;;  %v3439_v28 = vpop.f32.mrf.mxu1 }
 0x917   : > { %2749 = vadd.xlane.f32.xlu0 %v8508_v12  ;;  %2747 = vadd.xlane.f32.xlu1 %v8506_v54  ;;  %v8564_v41 = vadd.f32 %v3439_v28, %v9796_v47  ;;  %v773_v47 = vld [vmem:[%s9644_s2 + $0x10] sm:$0xff] }
 0x918   : > { %v6345_v45 = vpop.f32.mrf.mxu1  ;;  %6264 = vmatprep.subr.mxu0 %v773_v47 }
 0x919   : > { %v8569_v38 = vadd.f32 %v6345_v45, %v9798_v19  ;;  %v9807_v45 = vld [vmem:[#allocation16_spill] sm:$0xff] }
 0x91a   : > { %v3449_v17 = vpop.f32.mrf.mxu1 }
 0x91b   : > { %3458 = vmax.xlane.f32.xlu0 %v8516_v2  ;;  %3460 = vmax.xlane.f32.xlu1 %v8513_v24  ;;  %v8572_v43 = vadd.f32 %v3449_v17, %v9789_v32  ;;  %v9803_v32 = vld [vmem:[#allocation20_spill] sm:$0xff] }
 0x91f   : > { %3462 = vmax.xlane.f32.xlu0 %v8524_v4  ;;  %3464 = vmax.xlane.f32.xlu1 %v8521_v36 }
 0x923   : > { %3466 = vmax.xlane.f32.xlu0 %v8532_v16  ;;  %3468 = vmax.xlane.f32.xlu1 %v8529_v40 }
 0x927   : > { %3470 = vmax.xlane.f32.xlu0 %v8540_v44  ;;  %3472 = vmax.xlane.f32.xlu1 %v8537_v26 }
 0x92b   : > { %3474 = vmax.xlane.f32.xlu0 %v8548_v10  ;;  %3476 = vmax.xlane.f32.xlu1 %v8545_v34 }
 0x92f   : > { %3478 = vmax.xlane.f32.xlu0 %v8556_v59  ;;  %3480 = vmax.xlane.f32.xlu1 %v8553_v3 }
 0x933   : > { %3482 = vmax.xlane.f32.xlu0 %v8564_v41  ;;  %3484 = vmax.xlane.f32.xlu1 %v8561_v1 }
 0x937   : > { %3486 = vmax.xlane.f32.xlu0 %v8572_v43  ;;  %3488 = vmax.xlane.f32.xlu1 %v8569_v38 }
 0x93f   : > { %v2722_v42 = vpop.xlane.xlu0 %2721 }
 0x940   : > { %6755 = vrcp.f32 %v2722_v42 }
 0x941   : > { %v2720_v60 = vpop.xlane.xlu1 %2719 }
 0x942   : > { %6757 = vrcp.f32 %v2720_v60 }
 0x943   : > { %v2726_v11 = vpop.xlane.xlu0 %2725 }
 0x944   : > { %6759 = vrcp.f32 %v2726_v11 }
 0x947   : > { %v2724_v19 = vpop.xlane.xlu1 %2723 }
 0x948   : > { %6761 = vrcp.f32 %v2724_v19  ;;  %3630 = vrot.lane.b32.xlu1 %v9803_v32, %s6990_s7  ;;  %v9808_v19 = vld [vmem:[#allocation21_spill] sm:$0xff] }
 0x94b   : > { %v2730_v39 = vpop.xlane.xlu0 %2729 }
 0x94c   : > { %3626 = vrot.lane.b32.xlu1 %v9804_v8, %s6990_s7  ;;  %6763 = vrcp.f32 %v2730_v39  ;;  %v9809_v39 = vld [vmem:[#allocation22_spill] sm:$0xff] }
 0x94d   : > { %3632 = vrot.lane.b32.xlu0 %v9805_v27, %s6990_s7  ;;  %v6756_v18 = vpop.eup %6755 }
 0x94e   : > { %v2768_v17 = vmul.f32 %v6756_v18, %v8455_v55  ;;  %v9810_v55 = vld [vmem:[#allocation24_spill] sm:$0xff] }
 0x94f   : > { %v6758_v37 = vpop.eup %6757  ;;  %v2728_v20 = vpop.xlane.xlu1 %2727 }
 0x950   : > { %6765 = vrcp.f32 %v2728_v20  ;;  %3622 = vrot.lane.b32.xlu1 %v9806_v9, %s6990_s7  ;;  %v2767_v28 = vmul.f32 %v6758_v37, %v8458_v61 }
 0x951   : > { %3628 = vrot.lane.b32.xlu0 %v9807_v45, %s6990_s7  ;;  %v6760_v11 = vpop.eup %6759 }
 0x952   : > { %6240 = vmatprep.mubr.f32.mxu0 %v2767_v28  ;;  %v2770_v8 = vmul.f32 %v6760_v11, %v8462_v57 }
 0x953   : > { %v2732_v42 = vpop.xlane.xlu1 %2731  ;;  %6241 = vmatmul.mubr.f32.vlgmr.msra.gmra.mxu0 %v2768_v17  ;;  %v2734_v60 = vpop.xlane.xlu0 %2733 }
 0x954   : > { %6767 = vrcp.f32 %v2732_v42  ;;  %3618 = vrot.lane.b32.xlu1 %v9808_v19, %s6990_s7  ;;  %6265 = vmatpush3.msra.mxu0 %v773_v47 }
 0x955   : > { %v6762_v32 = vpop.eup %6761  ;;  %6769 = vrcp.f32 %v2734_v60  ;;  %3624 = vrot.lane.b32.xlu0 %v9809_v39, %s6990_s7 }
 0x956   : > { %v2769_v61 = vmul.f32 %v6762_v32, %v8465_v33 }
 0x958   : > { %3614 = vrot.lane.b32.xlu1 %v9788_v49, %s6990_s7  ;;  %6243 = vmatprep.mubr.f32.mxu0 %v2769_v61 }
 0x959   : > { %3620 = vrot.lane.b32.xlu0 %v9810_v55, %s6990_s7  ;;  %6244 = vmatmul.mubr.f32.gmra.mxu0 %v2770_v8  ;;  %v6764_v27 = vpop.eup %6763 }
 0x95a   : > { %v2772_v57 = vmul.f32 %v6764_v27, %v8468_v29 }
 0x95c   : > { %3610 = vrot.lane.b32.xlu1 %v9800_v30, %s6990_s7 }
 0x95d   : > { %v6766_v47 = vpop.eup %6765  ;;  %3616 = vrot.lane.b32.xlu0 %v9787_v52, %s6990_s7 }
 0x95e   : > { %v2771_v33 = vmul.f32 %v6766_v47, %v8471_v58 }
 0x960   : > { %3606 = vrot.lane.b32.xlu1 %v9801_v14, %s6990_s7  ;;  %6246 = vmatprep.mubr.f32.mxu0 %v2771_v33 }
 0x961   : > { %v6768_v49 = vpop.eup %6767  ;;  %3612 = vrot.lane.b32.xlu0 %v9795_v46, %s6990_s7  ;;  %6247 = vmatmul.mubr.f32.gmra.mxu0 %v2772_v57 }
 0x962   : > { %v6770_v18 = vpop.eup %6769  ;;  %v2773_v30 = vmul.f32 %v6768_v49, %v8474_v7 }
 0x963   : > { %v2774_v37 = vmul.f32 %v6770_v18, %v8476_v25 }
 0x964   : > { %3602 = vrot.lane.b32.xlu1 %v9802_v62, %s6990_s7  ;;  %6249 = vmatprep.mubr.f32.mxu0 %v2773_v30 }
 0x965   : > { %3608 = vrot.lane.b32.xlu0 %v9797_v15, %s6990_s7  ;;  %6250 = vmatmul.mubr.f32.gmra.mxu0 %v2774_v37 }
 0x969   : > { %3604 = vrot.lane.b32.xlu0 %v9799_v35, %s6990_s7 }
 0x988   : > { %v2738_v52 = vpop.xlane.xlu0 %2737 }
 0x989   : > { %6771 = vrcp.f32 %v2738_v52 }
 0x98c   : > { %v2736_v46 = vpop.xlane.xlu1 %2735 }
 0x98d   : > { %6773 = vrcp.f32 %v2736_v46 }
 0x990   : > { %v2742_v14 = vpop.xlane.xlu0 %2741 }
 0x991   : > { %6775 = vrcp.f32 %v2742_v14 }
 0x994   : > { %v2740_v29 = vpop.xlane.xlu1 %2739 }
 0x995   : > { %6777 = vrcp.f32 %v2740_v29 }
 0x996   : > { %v6772_v58 = vpop.eup %6771 }
 0x997   : > { %v2776_v15 = vmul.f32 %v6772_v58, %v8485_v22 }
 0x998   : > { %v2746_v7 = vpop.xlane.xlu0 %2745 }
 0x999   : > { %6779 = vrcp.f32 %v2746_v7 }
 0x99a   : > { %v6774_v25 = vpop.eup %6773 }
 0x99b   : > { %v2775_v62 = vmul.f32 %v6774_v25, %v8490_v23 }
 0x99c   : > { %v2744_v20 = vpop.xlane.xlu1 %2743 }
 0x99d   : > { %6781 = vrcp.f32 %v2744_v20  ;;  %6252 = vmatprep.mubr.f32.mxu0 %v2775_v62 }
 0x99e   : > { %6253 = vmatmul.mubr.f32.gmra.mxu0 %v2776_v15  ;;  %v6776_v28 = vpop.eup %6775 }
 0x99f   : > { %v2778_v11 = vmul.f32 %v6776_v28, %v8494_v21 }
 0x9a0   : > { %v2748_v35 = vpop.xlane.xlu1 %2747  ;;  %v2750_v9 = vpop.xlane.xlu0 %2749 }
 0x9a1   : > { %6783 = vrcp.f32 %v2748_v35 }
 0x9a2   : > { %v6778_v45 = vpop.eup %6777  ;;  %6785 = vrcp.f32 %v2750_v9 }
 0x9a3   : > { %v2777_v17 = vmul.f32 %v6778_v45, %v8497_v31 }
 0x9a4   : > { %v3461_v42 = vpop.xlane.xlu1 %3460  ;;  %v3459_v60 = vpop.xlane.xlu0 %3458 }
 0x9a5   : > { %v3491_v23 = vsub.f32 %v8513_v24, %v3461_v42  ;;  %v3490_v19 = vsub.f32 %v8516_v2, %v3459_v60  ;;  %6255 = vmatprep.mubr.f32.mxu0 %v2777_v17 }
 0x9a6   : > { %6256 = vmatmul.mubr.f32.gmra.mxu0 %v2778_v11  ;;  %v6780_v8 = vpop.eup %6779 }
 0x9a7   : > { %v3508_v22 = vmul.f32 1.442695, %v3491_v23  ;;  %v3506_v32 = vmul.f32 1.442695, %v3490_v19  ;;  %v2780_v57 = vmul.f32 %v6780_v8, %v8500_v13 }
 0x9a8   : > { %v3465_v39 = vpop.xlane.xlu1 %3464  ;;  %v3463_v61 = vpop.xlane.xlu0 %3462 }
 0x9a9   : > { %6787 = vpow2.f32 %v3508_v22  ;;  %v3493_v55 = vsub.f32 %v8521_v36, %v3465_v39  ;;  %v3492_v31 = vsub.f32 %v8524_v4, %v3463_v61 }
 0x9aa   : > { %v6782_v27 = vpop.eup %6781  ;;  %6789 = vpow2.f32 %v3506_v32 }
 0x9ab   : > { %v3512_v47 = vmul.f32 1.442695, %v3493_v55  ;;  %v3510_v21 = vmul.f32 1.442695, %v3492_v31  ;;  %v2779_v24 = vmul.f32 %v6782_v27, %v8503_v63 }
 0x9ac   : > { %v3469_v33 = vpop.xlane.xlu1 %3468  ;;  %v3467_v2 = vpop.xlane.xlu0 %3466 }
 0x9ad   : > { %6791 = vpow2.f32 %v3512_v47  ;;  %v3495_v49 = vsub.f32 %v8529_v40, %v3469_v33  ;;  %v3494_v18 = vsub.f32 %v8532_v16, %v3467_v2  ;;  %6258 = vmatprep.mubr.f32.mxu0 %v2779_v24 }
 0x9ae   : > { %v6784_v30 = vpop.eup %6783  ;;  %6793 = vpow2.f32 %v3510_v21  ;;  %6259 = vmatmul.mubr.f32.gmra.mxu0 %v2780_v57  ;;  %v8691_v57 = vpop.f32.mrf.mxu0 }
 0x9af   : > { %v6786_v36 = vpop.eup %6785  ;;  %v3516_v4 = vmul.f32 1.442695, %v3495_v49  ;;  %v3514_v37 = vmul.f32 1.442695, %v3494_v18  ;;  %v2781_v52 = vmul.f32 %v6784_v30, %v8506_v54 }
 0x9b0   : > { %v3473_v46 = vpop.xlane.xlu1 %3472  ;;  %v3471_v63 = vpop.xlane.xlu0 %3470  ;;  %v2782_v14 = vmul.f32 %v6786_v36, %v8508_v12 }
 0x9b1   : > { %6795 = vpow2.f32 %v3516_v4  ;;  %v3497_v13 = vsub.f32 %v8537_v26, %v3473_v46  ;;  %v3496_v40 = vsub.f32 %v8540_v44, %v3471_v63  ;;  %6261 = vmatprep.mubr.f32.mxu0 %v2781_v52  ;;  %v8693_v49 = vpop.f32.mrf.mxu0 }
 0x9b2   : > { %6797 = vpow2.f32 %v3514_v37  ;;  %6262 = vmatmul.mubr.f32.gmra.mxu0 %v2782_v14 }
 0x9b3   : > { %v3520_v16 = vmul.f32 1.442695, %v3497_v13  ;;  %v3518_v29 = vmul.f32 1.442695, %v3496_v40  ;;  %v8695_v18 = vpop.f32.mrf.mxu0 }
 0x9b4   : > { %v3477_v58 = vpop.xlane.xlu1 %3476  ;;  %v3475_v7 = vpop.xlane.xlu0 %3474 }
 0x9b5   : > { %6799 = vpow2.f32 %v3520_v16  ;;  %v3499_v25 = vsub.f32 %v8545_v34, %v3477_v58  ;;  %v3498_v54 = vsub.f32 %v8548_v10, %v3475_v7  ;;  %v8697_v30 = vpop.f32.mrf.mxu0 }
 0x9b6   : > { %v8637_v62 = vpop.eup %6787  ;;  %6801 = vpow2.f32 %v3518_v29 }
 0x9b7   : > { %v8639_v12 = vpop.eup %6789  ;;  %v3524_v26 = vmul.f32 1.442695, %v3499_v25  ;;  %v3522_v20 = vmul.f32 1.442695, %v3498_v54  ;;  %3540 = vadd.xlane.f32.xlu0 %v8637_v62  ;;  %v8699_v36 = vpop.f32.mrf.mxu0 }
 0x9b8   : > { %3538 = vadd.xlane.f32.xlu1 %v8639_v12  ;;  %v3481_v44 = vpop.xlane.xlu1 %3480  ;;  %v3479_v15 = vpop.xlane.xlu0 %3478 }
 0x9b9   : > { %6803 = vpow2.f32 %v3524_v26  ;;  %v3501_v35 = vsub.f32 %v8553_v3, %v3481_v44  ;;  %v3500_v34 = vsub.f32 %v8556_v59, %v3479_v15  ;;  %v8701_v4 = vpop.f32.mrf.mxu0 }
 0x9ba   : > { %v8645_v9 = vpop.eup %6791  ;;  %6805 = vpow2.f32 %v3522_v20 }
 0x9bb   : > { %v8647_v10 = vpop.eup %6793  ;;  %v3528_v28 = vmul.f32 1.442695, %v3501_v35  ;;  %v3526_v45 = vmul.f32 1.442695, %v3500_v34  ;;  %3544 = vadd.xlane.f32.xlu0 %v8645_v9  ;;  %v8703_v37 = vpop.f32.mrf.mxu0 }
 0x9bc   : > { %3542 = vadd.xlane.f32.xlu1 %v8647_v10  ;;  %v3485_v17 = vpop.xlane.xlu1 %3484  ;;  %v3483_v42 = vpop.xlane.xlu0 %3482 }
 0x9bd   : > { %6807 = vpow2.f32 %v3528_v28  ;;  %v3503_v60 = vsub.f32 %v8561_v1, %v3485_v17  ;;  %v3502_v3 = vsub.f32 %v8564_v41, %v3483_v42  ;;  %v8705_v52 = vpop.f32.mrf.mxu0 }
 0x9be   : > { %v8653_v11 = vpop.eup %6795  ;;  %6809 = vpow2.f32 %v3526_v45 }
 0x9bf   : > { %v8655_v59 = vpop.eup %6797  ;;  %v3532_v23 = vmul.f32 1.442695, %v3503_v60  ;;  %v3530_v19 = vmul.f32 1.442695, %v3502_v3  ;;  %3548 = vadd.xlane.f32.xlu0 %v8653_v11  ;;  %v8707_v46 = vpop.f32.mrf.mxu0 }
 0x9c0   : > { %3546 = vadd.xlane.f32.xlu1 %v8655_v59  ;;  %v3489_v22 = vpop.xlane.xlu1 %3488  ;;  %v3487_v32 = vpop.xlane.xlu0 %3486 }
 0x9c1   : > { %6811 = vpow2.f32 %v3532_v23  ;;  %v3505_v39 = vsub.f32 %v8569_v38, %v3489_v22  ;;  %v3504_v1 = vsub.f32 %v8572_v43, %v3487_v32  ;;  %v8709_v63 = vpop.f32.mrf.mxu0 }
 0x9c2   : > { %v8661_v61 = vpop.eup %6799  ;;  %6813 = vpow2.f32 %v3530_v19 }
 0x9c3   : > { %v8663_v41 = vpop.eup %6801  ;;  %v3536_v8 = vmul.f32 1.442695, %v3505_v39  ;;  %v3534_v55 = vmul.f32 1.442695, %v3504_v1  ;;  %3552 = vadd.xlane.f32.xlu0 %v8661_v61  ;;  %v8711_v14 = vpop.f32.mrf.mxu0 }
 0x9c4   : > { %3550 = vadd.xlane.f32.xlu1 %v8663_v41  ;;  %v3633_v31 = vpop.permute.xlu0 %3632  ;;  %v3631_v29 = vpop.permute.xlu1 %3630 }
 0x9c5   : > { %6815 = vpow2.f32 %v3536_v8  ;;  %6346 = vmatprep.subr.mxu0 %v3633_v31  ;;  %v8713_v13 = vpop.f32.mrf.mxu0 }
 0x9c6   : > { %v8667_v27 = vpop.eup %6803  ;;  %6817 = vpow2.f32 %v3534_v55 }
 0x9c7   : > { %v8669_v38 = vpop.eup %6805  ;;  %3556 = vadd.xlane.f32.xlu0 %v8667_v27  ;;  %v8715_v40 = vpop.f32.mrf.mxu0 }
 0x9c8   : > { %3554 = vadd.xlane.f32.xlu1 %v8669_v38  ;;  %v3629_v7 = vpop.permute.xlu0 %3628  ;;  %v3627_v25 = vpop.permute.xlu1 %3626 }
 0x9c9   : > { %v8717_v16 = vpop.f32.mrf.mxu0 }
 0x9ca   : > { %v8673_v43 = vpop.eup %6807 }
 0x9cb   : > { %v8675_v47 = vpop.eup %6809  ;;  %3560 = vadd.xlane.f32.xlu0 %v8673_v43  ;;  %v8719_v58 = vpop.f32.mrf.mxu0 }
 0x9cc   : > { %3558 = vadd.xlane.f32.xlu1 %v8675_v47  ;;  %v3625_v20 = vpop.permute.xlu0 %3624  ;;  %v3623_v15 = vpop.permute.xlu1 %3622 }
 0x9cd   : > { %v8721_v54 = vpop.f32.mrf.mxu0 }
 0x9ce   : > { %v8679_v21 = vpop.eup %6811 }
 0x9cf   : > { %v8681_v24 = vpop.eup %6813  ;;  %3564 = vadd.xlane.f32.xlu0 %v8679_v21 }
 0x9d0   : > { %3562 = vadd.xlane.f32.xlu1 %v8681_v24  ;;  %v3621_v34 = vpop.permute.xlu0 %3620  ;;  %v3619_v45 = vpop.permute.xlu1 %3618 }
 0x9d2   : > { %v8685_v33 = vpop.eup %6815 }
 0x9d3   : > { %v8687_v2 = vpop.eup %6817  ;;  %3568 = vadd.xlane.f32.xlu0 %v8685_v33 }
 0x9d4   : > { %3566 = vadd.xlane.f32.xlu1 %v8687_v2  ;;  %v3617_v17 = vpop.permute.xlu0 %3616  ;;  %v3615_v60 = vpop.permute.xlu1 %3614 }
 0x9d8   : > { %v3613_v19 = vpop.permute.xlu0 %3612  ;;  %v3611_v32 = vpop.permute.xlu1 %3610 }
 0x9dc   : > { %v3609_v39 = vpop.permute.xlu0 %3608  ;;  %v3607_v1 = vpop.permute.xlu1 %3606 }
 0x9e0   : > { %v3605_v8 = vpop.permute.xlu0 %3604  ;;  %v3603_v55 = vpop.permute.xlu1 %3602 }
 0xa13   : > { %v6242_v26 = vpop.f32.mrf.mxu0 }
 0xa15   : > { %v2897_v44 = vpop.f32.mrf.mxu0 }
 0xa16   : > { %6266 = vmatprep.mubr.msk.f32.mxu0 %vm823_vm1, %v2897_v44 }
 0xa17   : > { %6267 = vmatmul.mubr.msk.f32.vlgmr.msra.gmra.mxu0 %vm823_vm1, %v6242_v26 }
 0xa18   : > { %6347 = vmatpush3.msra.mxu0 %v3633_v31 }
 0xa19   : > { %6348 = vmatprep.subr.mxu0 %v3631_v29  ;;  %v6245_v35 = vpop.f32.mrf.mxu0 }
 0xa1a   : > { %6349 = vmatpush3.msra.mxu0 %v3631_v29 }
 0xa1b   : > { %6350 = vmatprep.subr.mxu0 %v3629_v7  ;;  %v2907_v28 = vpop.f32.mrf.mxu0 }
 0xa1c   : > { %6351 = vmatpush3.msra.mxu0 %v3629_v7  ;;  %6269 = vmatprep.mubr.msk.f32.mxu0 %vm823_vm1, %v2907_v28 }
 0xa1d   : > { %6352 = vmatprep.subr.mxu0 %v3627_v25  ;;  %6270 = vmatmul.mubr.msk.f32.gmra.mxu0 %vm823_vm1, %v6245_v35 }
 0xa1e   : > { %6353 = vmatpush3.msra.mxu0 %v3627_v25 }
 0xa1f   : > { %6354 = vmatprep.subr.mxu0 %v3625_v20 }
 0xa20   : > { %6355 = vmatpush3.msra.mxu0 %v3625_v20 }
 0xa21   : > { %6356 = vmatprep.subr.mxu0 %v3623_v15  ;;  %v6248_v42 = vpop.f32.mrf.mxu0 }
 0xa22   : > { %6357 = vmatpush3.msra.mxu0 %v3623_v15 }
 0xa23   : > { %6358 = vmatprep.subr.mxu0 %v3621_v34  ;;  %v2917_v3 = vpop.f32.mrf.mxu0 }
 0xa24   : > { %6359 = vmatpush3.msra.mxu0 %v3621_v34  ;;  %6272 = vmatprep.mubr.msk.f32.mxu0 %vm823_vm1, %v2917_v3 }
 0xa25   : > { %6360 = vmatprep.subr.mxu0 %v3619_v45  ;;  %v6251_v23 = vpop.f32.mrf.mxu0  ;;  %6273 = vmatmul.mubr.msk.f32.gmra.mxu0 %vm823_vm1, %v6248_v42  ;;  %v774_v42 = vld [vmem:[%s9644_s2 + $0x18] sm:$0xff] }
 0xa26   : > { %6361 = vmatpush3.msra.mxu0 %v3619_v45 }
 0xa27   : > { %6362 = vmatprep.subr.mxu0 %v3617_v17  ;;  %v2927_v22 = vpop.f32.mrf.mxu0 }
 0xa28   : > { %6363 = vmatpush3.msra.mxu0 %v3617_v17  ;;  %6275 = vmatprep.mubr.msk.f32.mxu0 %vm823_vm1, %v2927_v22 }
 0xa29   : > { %6364 = vmatprep.subr.mxu0 %v3615_v60  ;;  %6276 = vmatmul.mubr.msk.f32.gmra.mxu0 %vm823_vm1, %v6251_v23 }
 0xa2a   : > { %6365 = vmatpush3.msra.mxu0 %v3615_v60 }
 0xa2b   : > { %6366 = vmatprep.subr.mxu0 %v3613_v19 }
 0xa2c   : > { %6367 = vmatpush3.msra.mxu0 %v3613_v19 }
 0xa2d   : > { %6368 = vmatprep.subr.mxu0 %v3611_v32 }
 0xa2e   : > { %6369 = vmatpush3.msra.mxu0 %v3611_v32 }
 0xa2f   : > { %6370 = vmatprep.subr.mxu0 %v3609_v39 }
 0xa30   : > { %6371 = vmatpush3.msra.mxu0 %v3609_v39 }
 0xa31   : > { %6372 = vmatprep.subr.mxu0 %v3607_v1 }
 0xa32   : > { %6373 = vmatpush3.msra.mxu0 %v3607_v1 }
 0xa33   : > { %6374 = vmatprep.subr.mxu0 %v3605_v8 }
 0xa34   : > { %6375 = vmatpush3.msra.mxu0 %v3605_v8 }
 0xa35   : > { %6376 = vmatprep.subr.mxu0 %v3603_v55 }
 0xa36   : > { %6377 = vmatpush3.msra.mxu0 %v3603_v55 }
 0xa37   : > { %6402 = vmatprep.subr.mxu0 %v774_v42 }
 0xa40   : > { %v3541_v29 = vpop.xlane.xlu0 %3540 }
 0xa41   : > { %v3539_v31 = vpop.xlane.xlu1 %3538 }
 0xa42   : > { %6819 = vrcp.f32 %v3539_v31 }
 0xa43   : > { %6821 = vrcp.f32 %v3541_v29 }
 0xa44   : > { %v3545_v25 = vpop.xlane.xlu0 %3544 }
 0xa45   : > { %v3543_v7 = vpop.xlane.xlu1 %3542 }
 0xa46   : > { %6823 = vrcp.f32 %v3543_v7 }
 0xa47   : > { %6825 = vrcp.f32 %v3545_v25 }
 0xa48   : > { %v3549_v15 = vpop.xlane.xlu0 %3548 }
 0xa49   : > { %v3547_v20 = vpop.xlane.xlu1 %3546 }
 0xa4a   : > { %6827 = vrcp.f32 %v3547_v20 }
 0xa4b   : > { %6829 = vrcp.f32 %v3549_v15 }
 0xa4c   : > { %v3553_v45 = vpop.xlane.xlu0 %3552 }
 0xa4d   : > { %v3551_v35 = vpop.xlane.xlu1 %3550 }
 0xa4e   : > { %6831 = vrcp.f32 %v3551_v35 }
 0xa4f   : > { %v6820_v19 = vpop.eup %6819  ;;  %6833 = vrcp.f32 %v3553_v45 }
 0xa50   : > { %v3557_v3 = vpop.xlane.xlu0 %3556  ;;  %v6822_v1 = vpop.eup %6821  ;;  %v3586_v55 = vmul.f32 %v6820_v19, %v8639_v12 }
 0xa51   : > { %v3555_v17 = vpop.xlane.xlu1 %3554  ;;  %v3587_v7 = vmul.f32 %v6822_v1, %v8637_v62 }
 0xa52   : > { %6835 = vrcp.f32 %v3555_v17 }
 0xa53   : > { %v6824_v31 = vpop.eup %6823  ;;  %6837 = vrcp.f32 %v3557_v3 }
 0xa54   : > { %v3561_v8 = vpop.xlane.xlu0 %3560  ;;  %v6826_v25 = vpop.eup %6825 }
 0xa55   : > { %v3559_v22 = vpop.xlane.xlu1 %3558  ;;  %v3589_v12 = vmul.f32 %v6826_v25, %v8645_v9 }
 0xa56   : > { %6839 = vrcp.f32 %v3559_v22 }
 0xa57   : > { %v6828_v20 = vpop.eup %6827  ;;  %6841 = vrcp.f32 %v3561_v8 }
 0xa58   : > { %v6830_v15 = vpop.eup %6829  ;;  %v3590_v35 = vmul.f32 %v6828_v20, %v8655_v59 }
 0xa59   : > { %v3563_v29 = vpop.xlane.xlu1 %3562  ;;  %v3591_v62 = vmul.f32 %v6830_v15, %v8653_v11  ;;  %v9812_v15 = vld [vmem:[#allocation48_spill] sm:$0xff] }
 0xa5a   : > { %6843 = vrcp.f32 %v3563_v29 }
 0xa5e   : > { %v6254_v26 = vpop.f32.mrf.mxu0 }
 0xa60   : > { %v2937_v44 = vpop.f32.mrf.mxu0 }
 0xa61   : > { %6278 = vmatprep.mubr.msk.f32.mxu0 %vm823_vm1, %v2937_v44  ;;  %v3565_v44 = vpop.xlane.xlu0 %3564 }
 0xa62   : > { %6279 = vmatmul.mubr.msk.f32.gmra.mxu0 %vm823_vm1, %v6254_v26  ;;  %v3588_v26 = vmul.f32 %v6824_v31, %v8647_v10  ;;  %6845 = vrcp.f32 %v3565_v44 }
 0xa65   : > { %v3569_v45 = vpop.xlane.xlu0 %3568 }
 0xa66   : > { %v6257_v34 = vpop.f32.mrf.mxu0 }
 0xa68   : > { %v2947_v28 = vpop.f32.mrf.mxu0 }
 0xa69   : > { %6281 = vmatprep.mubr.msk.f32.mxu0 %vm823_vm1, %v2947_v28  ;;  %v3567_v28 = vpop.xlane.xlu1 %3566 }
 0xa6a   : > { %6282 = vmatmul.mubr.msk.f32.gmra.mxu0 %vm823_vm1, %v6257_v34  ;;  %v6832_v34 = vpop.eup %6831  ;;  %6847 = vrcp.f32 %v3567_v28  ;;  %v9813_v28 = vld [vmem:[#allocation49_spill] sm:$0xff] }
 0xa6b   : > { %v6834_v10 = vpop.eup %6833  ;;  %v3592_v17 = vmul.f32 %v6832_v34, %v8663_v41  ;;  %6849 = vrcp.f32 %v3569_v45 }
 0xa6c   : > { %v3593_v9 = vmul.f32 %v6834_v10, %v8661_v61 }
 0xa6e   : > { %v6260_v60 = vpop.f32.mrf.mxu0 }
 0xa70   : > { %v2957_v23 = vpop.f32.mrf.mxu0 }
 0xa71   : > { %6284 = vmatprep.mubr.msk.f32.mxu0 %vm823_vm1, %v2957_v23 }
 0xa72   : > { %v6263_v32 = vpop.f32.mrf.mxu0  ;;  %6285 = vmatmul.mubr.msk.f32.gmra.mxu0 %vm823_vm1, %v6260_v60 }
 0xa74   : > { %v2967_v39 = vpop.f32.mrf.mxu0 }
 0xa75   : > { %6287 = vmatprep.mubr.msk.f32.mxu0 %vm823_vm1, %v2967_v39 }
 0xa76   : > { %6288 = vmatmul.mubr.msk.f32.gmra.mxu0 %vm823_vm1, %v6263_v32 }
 0xa77   : > { %6378 = vmatprep.mubr.f32.mxu0 %v3586_v55 }
 0xa7a   : > { %6379 = vmatmul.mubr.f32.vlgmr.msra.gmra.mxu0 %v3587_v7 }
 0xa7b   : > { %6381 = vmatprep.mubr.f32.mxu0 %v3588_v26  ;;  %6403 = vmatpush3.msra.mxu0 %v774_v42  ;;  %v6836_v42 = vpop.eup %6835 }
 0xa7c   : > { %v6838_v60 = vpop.eup %6837  ;;  %v3594_v59 = vmul.f32 %v6836_v42, %v8669_v38  ;;  %v9815_v42 = vld [vmem:[#allocation51_spill] sm:$0xff] }
 0xa7d   : > { %v6840_v3 = vpop.eup %6839  ;;  %v3595_v23 = vmul.f32 %v6838_v60, %v8667_v27  ;;  %v9816_v60 = vld [vmem:[#allocation52_spill] sm:$0xff] }
 0xa7e   : > { %6382 = vmatmul.mubr.f32.gmra.mxu0 %v3589_v12  ;;  %v6842_v11 = vpop.eup %6841  ;;  %v3596_v19 = vmul.f32 %v6840_v3, %v8675_v47  ;;  %v2293_v47 = vadd.f32 %v8691_v57, %v8356_v48 }
 0xa7f   : > { %6384 = vmatprep.mubr.f32.mxu0 %v3590_v35  ;;  %v6844_v22 = vpop.eup %6843  ;;  %v3597_v41 = vmul.f32 %v6842_v11, %v8673_v43  ;;  %v2328_v35 = vadd.f32 %v8709_v63, %v9812_v15  ;;  %v2353_v63 = vadd.f32 %v8715_v40, %v9815_v42 }
 0xa80   : > { %v6846_v32 = vpop.eup %6845  ;;  %v3598_v39 = vmul.f32 %v6844_v22, %v8681_v24  ;;  %v2288_v24 = vadd.f32 %v8693_v49, %v8358_v50  ;;  %v2313_v50 = vadd.f32 %v8699_v36, %v8364_v56  ;;  %v2308_v49 = vadd.f32 %v8701_v4, %v8366_v6  ;;  %v9811_v36 = vld [vmem:[#allocation47_spill] sm:$0xff]  ;;  %v9818_v22 = vld [vmem:[#allocation54_spill] sm:$0xff] }
 0xa81   : > { %v6848_v61 = vpop.eup %6847  ;;  %v3599_v38 = vmul.f32 %v6846_v32, %v8679_v21  ;;  %v2303_v21 = vadd.f32 %v8695_v18, %v8360_v51  ;;  %v2323_v51 = vadd.f32 %v8703_v37, %v8368_v5  ;;  %v2333_v6 = vadd.f32 %v8707_v46, %v9811_v36 }
 0xa82   : > { %6385 = vmatmul.mubr.f32.gmra.mxu0 %v3591_v62  ;;  %v6850_v1 = vpop.eup %6849  ;;  %v3600_v8 = vmul.f32 %v6848_v61, %v8687_v2  ;;  %v9814_v62 = vld [vmem:[#allocation50_spill] sm:$0xff] }
 0xa83   : > { %6387 = vmatprep.mubr.f32.mxu0 %v3592_v17  ;;  %v3601_v27 = vmul.f32 %v6850_v1, %v8685_v33  ;;  %v2298_v33 = vadd.f32 %v8697_v30, %v8362_v53  ;;  %v2318_v30 = vadd.f32 %v8705_v52, %v8370_v0  ;;  %v2343_v0 = vadd.f32 %v8711_v14, %v9813_v28  ;;  %v9817_v14 = vld [vmem:[#allocation53_spill] sm:$0xff] }
 0xa84   : > { %v2338_v10 = vadd.f32 %v8713_v13, %v9814_v62  ;;  %v2363_v11 = vadd.f32 %v8719_v58, %v9817_v14  ;;  %v6919_v14 = vld [vmem:[%s7122_s11 + $0x10] sm:$0xff] }
 0xa86   : > { %6388 = vmatmul.mubr.f32.gmra.mxu0 %v3593_v9 }
 0xa87   : > { %6390 = vmatprep.mubr.f32.mxu0 %v3594_v59  ;;  %v2348_v59 = vadd.f32 %v8717_v16, %v9816_v60  ;;  %v6918_v60 = vld [vmem:[%s7122_s11 + $0x18] sm:$0xff] }
 0xa8a   : > { %6391 = vmatmul.mubr.f32.gmra.mxu0 %v3595_v23 }
 0xa8b   : > { %6393 = vmatprep.mubr.f32.mxu0 %v3596_v19 }
 0xa8e   : > { %6394 = vmatmul.mubr.f32.gmra.mxu0 %v3597_v41  ;;  %v2358_v41 = vadd.f32 %v8721_v54, %v9818_v22 }
 0xa8f   : > { %6396 = vmatprep.mubr.f32.mxu0 %v3598_v39 }
 0xa92   : > { %6397 = vmatmul.mubr.f32.gmra.mxu0 %v3599_v38 }
 0xa93   : > { %6399 = vmatprep.mubr.f32.mxu0 %v3600_v8 }
 0xa96   : > { %6400 = vmatmul.mubr.f32.gmra.mxu0 %v3601_v27 }
 0xad7   : > { %v6268_v43 = vpop.f32.mrf.mxu0 }
 0xad8   : > { %v8762_v55 = vadd.f32 %v6268_v43, %v2293_v47 }
 0xad9   : > { %v3090_v31 = vpop.f32.mrf.mxu0 }
 0xada   : > { %v8764_v29 = vadd.f32 %v3090_v31, %v2288_v24 }
 0xadd   : > { %v6271_v2 = vpop.f32.mrf.mxu0 }
 0xade   : > { %v8770_v7 = vadd.f32 %v6271_v2, %v2303_v21 }
 0xadf   : > { %v3100_v25 = vpop.f32.mrf.mxu0 }
 0xae0   : > { %v8772_v48 = vadd.f32 %v3100_v25, %v2298_v33 }
 0xae5   : > { %v6274_v57 = vpop.f32.mrf.mxu0 }
 0xae6   : > { %v8778_v26 = vadd.f32 %v6274_v57, %v2313_v50  ;;  %v9819_v50 = vld [vmem:[#allocation14_spill] sm:$0xff] }
 0xae7   : > { %v3110_v20 = vpop.f32.mrf.mxu0  ;;  %v4006_v57 = vsub.s32 1, %v9819_v50 }
 0xae8   : > { %v8782_v18 = vadd.f32 %v3110_v20, %v2308_v49  ;;  %v8842_v49 = vld [vmem:[%s9647_s5] sm:$0xff] }
 0xae9   : > { %v6277_v53 = vpop.f32.mrf.mxu0  ;;  %v8845_v20 = vrot.slane %v8842_v49, %v4006_v57 }
 0xaea   : > { %v8786_v44 = vadd.f32 %v6277_v53, %v2323_v51 }
 0xaeb   : > { %v3120_v12 = vpop.f32.mrf.mxu0 }
 0xaec   : > { %v8788_v56 = vadd.f32 %v3120_v12, %v2318_v30 }
 0xb22   : > { %v6280_v4 = vpop.f32.mrf.mxu0 }
 0xb23   : > { %v8794_v34 = vadd.f32 %v6280_v4, %v2333_v6  ;;  %v6916_v4 = vld [vmem:[%s7122_s11 + $0x8] sm:$0xff] }
 0xb24   : > { %v3130_v5 = vpop.f32.mrf.mxu0 }
 0xb25   : > { %v8796_v37 = vadd.f32 %v3130_v5, %v2328_v35 }
 0xb2a   : > { %v6283_v52 = vpop.f32.mrf.mxu0 }
 0xb2b   : > { %v8802_v45 = vadd.f32 %v6283_v52, %v2343_v0  ;;  %v6917_v0 = vld [vmem:[%s7122_s11] sm:$0xff] }
 0xb2c   : > { %v3140_v17 = vpop.f32.mrf.mxu0 }
 0xb2d   : > { %v8804_v46 = vadd.f32 %v3140_v17, %v2338_v10 }
 0xb32   : > { %v6286_v9 = vpop.f32.mrf.mxu0 }
 0xb33   : > { %v8810_v3 = vadd.f32 %v6286_v9, %v2353_v63 }
 0xb34   : > { %v3150_v23 = vpop.f32.mrf.mxu0 }
 0xb35   : > { %v8814_v19 = vadd.f32 %v3150_v23, %v2348_v59 }
 0xb36   : > { %v6289_v13 = vpop.f32.mrf.mxu0 }
 0xb37   : > { %v8818_v32 = vadd.f32 %v6289_v13, %v2363_v11 }
 0xb38   : > { %v3160_v39 = vpop.f32.mrf.mxu0 }
 0xb39   : > { %v8820_v40 = vadd.f32 %v3160_v39, %v2358_v41 }
 0xb3a   : > { %v6380_v61 = vpop.f32.mrf.mxu0 }
 0xb3c   : > { %v3716_v38 = vpop.f32.mrf.mxu0 }
 0xb3d   : > { %6404 = vmatprep.mubr.msk.f32.mxu0 %vm823_vm1, %v3716_v38 }
 0xb3e   : > { %v6383_v16 = vpop.f32.mrf.mxu0  ;;  %6405 = vmatmul.mubr.msk.f32.vlgmr.msra.gmra.mxu0 %vm823_vm1, %v6380_v61 }
 0xb40   : > { %v3726_v1 = vpop.f32.mrf.mxu0 }
 0xb41   : > { %6407 = vmatprep.mubr.msk.f32.mxu0 %vm823_vm1, %v3726_v1 }
 0xb42   : > { %v6386_v58 = vpop.f32.mrf.mxu0  ;;  %6408 = vmatmul.mubr.msk.f32.gmra.mxu0 %vm823_vm1, %v6383_v16 }
 0xb44   : > { %v3736_v8 = vpop.f32.mrf.mxu0 }
 0xb45   : > { %6410 = vmatprep.mubr.msk.f32.mxu0 %vm823_vm1, %v3736_v8 }
 0xb46   : > { %v6389_v54 = vpop.f32.mrf.mxu0  ;;  %6411 = vmatmul.mubr.msk.f32.gmra.mxu0 %vm823_vm1, %v6386_v58  ;;  %v6920_v58 = vld [vmem:[%s7122_s11 + $0x28] sm:$0xff] }
 0xb48   : > { %v3746_v27 = vpop.f32.mrf.mxu0 }
 0xb49   : > { %6413 = vmatprep.mubr.msk.f32.mxu0 %vm823_vm1, %v3746_v27 }
 0xb4a   : > { %v6392_v47 = vpop.f32.mrf.mxu0  ;;  %6414 = vmatmul.mubr.msk.f32.gmra.mxu0 %vm823_vm1, %v6389_v54 }
 0xb4c   : > { %v3756_v43 = vpop.f32.mrf.mxu0 }
 0xb4d   : > { %6416 = vmatprep.mubr.msk.f32.mxu0 %vm823_vm1, %v3756_v43 }
 0xb4e   : > { %v6395_v24 = vpop.f32.mrf.mxu0  ;;  %6417 = vmatmul.mubr.msk.f32.gmra.mxu0 %vm823_vm1, %v6392_v47  ;;  %v6921_v47 = vld [vmem:[%s7122_s11 + $0x20] sm:$0xff] }
 0xb50   : > { %v3766_v31 = vpop.f32.mrf.mxu0 }
 0xb51   : > { %6419 = vmatprep.mubr.msk.f32.mxu0 %vm823_vm1, %v3766_v31 }
 0xb52   : > { %v6398_v21 = vpop.f32.mrf.mxu0  ;;  %6420 = vmatmul.mubr.msk.f32.gmra.mxu0 %vm823_vm1, %v6395_v24 }
 0xb54   : > { %v3776_v2 = vpop.f32.mrf.mxu0 }
 0xb55   : > { %6422 = vmatprep.mubr.msk.f32.mxu0 %vm823_vm1, %v3776_v2  ;;  %v4340_v2 = vld [vmem:[%s9645_s3 + $0x18] sm:$0xff] }
 0xb56   : > { %v6401_v33 = vpop.f32.mrf.mxu0  ;;  %6423 = vmatmul.mubr.msk.f32.gmra.mxu0 %vm823_vm1, %v6398_v21  ;;  %6428 = vmatprep.subr.mxu1 %v4340_v2 }
 0xb57   : > { %6429 = vmatpush3.msra.mxu1 %v4340_v2 }
 0xb58   : > { %v3786_v25 = vpop.f32.mrf.mxu0 }
 0xb59   : > { %6425 = vmatprep.mubr.msk.f32.mxu0 %vm823_vm1, %v3786_v25 }
 0xb5a   : > { %6426 = vmatmul.mubr.msk.f32.gmra.mxu0 %vm823_vm1, %v6401_v33  ;;  %vm4566_vm1 = vcmask 523264  }
 0xbfe   : > { %v6406_v51 = vpop.f32.mrf.mxu0 }
 0xbff   : > { %v3989_v53 = vadd.f32 %v6406_v51, %v8762_v55 }
 0xc00   : > { %v3909_v30 = vpop.f32.mrf.mxu0 }
 0xc01   : > { %v4009_v12 = vadd.f32 %v8845_v20, %v3989_v53  ;;  %v3988_v36 = vadd.f32 %v3909_v30, %v8764_v29  ;;  %v6922_v30 = vld [vmem:[%s7122_s11 + $0x38] sm:$0xff] }
 0xc02   : > { %v6409_v6 = vpop.f32.mrf.mxu0 }
 0xc03   : > { %v8851_v15 = vadd.f32 %v6916_v4, %v4009_v12  ;;  %v4008_v35 = vadd.f32 %v8845_v20, %v3988_v36  ;;  %v3991_v5 = vadd.f32 %v6409_v6, %v8770_v7  ;;  %v6923_v4 = vld [vmem:[%s7122_s11 + $0x30] sm:$0xff] }
 0xc04   : > { %v3919_v28 = vpop.f32.mrf.mxu0 }
 0xc05   : > { %v8856_v52 = vadd.f32 %v6917_v0, %v4008_v35  ;;  %v4011_v55 = vadd.f32 %v8845_v20, %v3991_v5  ;;  %v3990_v62 = vadd.f32 %v3919_v28, %v8772_v48  ;;  %v4043_v29 = vsel %vm322_vm0, %v8851_v15, 0.0 }
 0xc06   : > { %4044 = vadd.xlane.f32.xlu1 %v4043_v29  ;;  %v6412_v10 = vpop.f32.mrf.mxu0  ;;  %v4106_v17 = vmul.f32 %v8851_v15, %v8851_v15 }
 0xc07   : > { %v4010_v42 = vadd.f32 %v8845_v20, %v3990_v62  ;;  %v4040_v7 = vsel %vm322_vm0, %v8856_v52, 0.0  ;;  %v4105_v9 = vmul.f32 %v8856_v52, %v8856_v52  ;;  %v8870_v48 = vadd.f32 %v6918_v60, %v4011_v55  ;;  %v6925_v60 = vld [vmem:[%s7122_s11 + $0x40] sm:$0xff] }
 0xc08   : > { %4041 = vadd.xlane.f32.xlu0 %v4040_v7  ;;  %v3929_v63 = vpop.f32.mrf.mxu0  ;;  %v3993_v59 = vadd.f32 %v6412_v10, %v8778_v26  ;;  %v4124_v23 = vsel %vm322_vm0, %v4106_v17, 0.0 }
 0xc09   : > { %v8875_v11 = vadd.f32 %v6919_v14, %v4010_v42  ;;  %v3992_v13 = vadd.f32 %v3929_v63, %v8782_v18  ;;  %v4121_v22 = vsel %vm322_vm0, %v4105_v9, 0.0  ;;  %v4049_v61 = vsel %vm322_vm0, %v8870_v48, 0.0  ;;  %v6924_v42 = vld [vmem:[%s7122_s11 + $0x48] sm:$0xff] }
 0xc0a   : > { %4125 = vadd.xlane.f32.xlu1 %v4124_v23  ;;  %v6415_v41 = vpop.f32.mrf.mxu0  ;;  %v4013_v39 = vadd.f32 %v8845_v20, %v3993_v59  ;;  %v4108_v26 = vmul.f32 %v8870_v48, %v8870_v48 }
 0xc0b   : > { %v4012_v38 = vadd.f32 %v8845_v20, %v3992_v13  ;;  %v4046_v16 = vsel %vm322_vm0, %v8875_v11, 0.0  ;;  %v4107_v18 = vmul.f32 %v8875_v11, %v8875_v11  ;;  %v3995_v54 = vadd.f32 %v6415_v41, %v8786_v44 }
 0xc0c   : > { %4122 = vadd.xlane.f32.xlu0 %v4121_v22  ;;  %v3939_v1 = vpop.f32.mrf.mxu0  ;;  %v8890_v8 = vadd.f32 %v6920_v58, %v4013_v39  ;;  %v4130_v27 = vsel %vm322_vm0, %v4108_v26, 0.0  ;;  %v4339_v58 = vld [vmem:[%s9645_s3 + $0x10] sm:$0xff] }
 0xc0d   : > { %v8895_v43 = vadd.f32 %v6921_v47, %v4012_v38  ;;  %v3994_v24 = vadd.f32 %v3939_v1, %v8788_v56  ;;  %v4127_v31 = vsel %vm322_vm0, %v4107_v18, 0.0  ;;  %v4015_v33 = vadd.f32 %v8845_v20, %v3995_v54  ;;  %v6926_v38 = vld [vmem:[%s7122_s11 + $0x58] sm:$0xff]  ;;  %v4338_v54 = vld [vmem:[%s9645_s3 + $0x8] sm:$0xff]  ;;  %6430 = vmatprep.subr.mxu1 %v4339_v58 }
 0xc0e   : > { %4050 = vadd.xlane.f32.xlu1 %v4049_v61  ;;  %v6418_v21 = vpop.f32.mrf.mxu0  ;;  %v4055_v44 = vsel %vm322_vm0, %v8890_v8, 0.0  ;;  %v4110_v25 = vmul.f32 %v8890_v8, %v8890_v8  ;;  %6431 = vmatpush3.msra.mxu1 %v4339_v58 }
 0xc0f   : > { %v4014_v56 = vadd.f32 %v8845_v20, %v3994_v24  ;;  %v4052_v57 = vsel %vm322_vm0, %v8895_v43, 0.0  ;;  %v4109_v51 = vmul.f32 %v8895_v43, %v8895_v43  ;;  %v8913_v12 = vadd.f32 %v6922_v30, %v4015_v33  ;;  %6432 = vmatprep.subr.mxu1 %v4338_v54 }
 0xc10   : > { %4047 = vadd.xlane.f32.xlu0 %v4046_v16  ;;  %v3949_v53 = vpop.f32.mrf.mxu0  ;;  %v3997_v36 = vadd.f32 %v6418_v21, %v8794_v34  ;;  %v4136_v6 = vsel %vm322_vm0, %v4110_v25, 0.0  ;;  %6433 = vmatpush3.msra.mxu1 %v4338_v54 }
 0xc11   : > { %v8918_v35 = vadd.f32 %v6923_v4, %v4014_v56  ;;  %v3996_v5 = vadd.f32 %v3949_v53, %v8796_v37  ;;  %v4133_v28 = vsel %vm322_vm0, %v4109_v51, 0.0  ;;  %v4061_v62 = vsel %vm322_vm0, %v8913_v12, 0.0  ;;  %v6928_v51 = vld [vmem:[%s7122_s11 + $0x68] sm:$0xff] }
 0xc12   : > { %4131 = vadd.xlane.f32.xlu1 %v4130_v27  ;;  %v6421_v0 = vpop.f32.mrf.mxu0  ;;  %v4017_v55 = vadd.f32 %v8845_v20, %v3997_v36  ;;  %v4112_v34 = vmul.f32 %v8913_v12, %v8913_v12  ;;  %v6927_v27 = vld [vmem:[%s7122_s11 + $0x50] sm:$0xff] }
 0xc13   : > { %v4016_v29 = vadd.f32 %v8845_v20, %v3996_v5  ;;  %v4058_v10 = vsel %vm322_vm0, %v8918_v35, 0.0  ;;  %v4111_v37 = vmul.f32 %v8918_v35, %v8918_v35  ;;  %v3999_v63 = vadd.f32 %v6421_v0, %v8802_v45 }
 0xc14   : > { %4128 = vadd.xlane.f32.xlu0 %v4127_v31  ;;  %v3959_v17 = vpop.f32.mrf.mxu0  ;;  %v8933_v7 = vadd.f32 %v6924_v42, %v4017_v55  ;;  %v4142_v9 = vsel %vm322_vm0, %v4112_v34, 0.0 }
 0xc15   : > { %v8938_v59 = vadd.f32 %v6925_v60, %v4016_v29  ;;  %v3998_v23 = vadd.f32 %v3959_v17, %v8804_v46  ;;  %v4139_v14 = vsel %vm322_vm0, %v4111_v37, 0.0  ;;  %v4019_v22 = vadd.f32 %v8845_v20, %v3999_v63  ;;  %v6930_v29 = vld [vmem:[%s7122_s11 + $0x78] sm:$0xff]  ;;  %v6931_v17 = vld [vmem:[%s7122_s11 + $0x70] sm:$0xff] }
 0xc16   : > { %4056 = vadd.xlane.f32.xlu1 %v4055_v44  ;;  %v6424_v13 = vpop.f32.mrf.mxu0  ;;  %v4067_v41 = vsel %vm322_vm0, %v8933_v7, 0.0  ;;  %v4114_v45 = vmul.f32 %v8933_v7, %v8933_v7 }
 0xc17   : > { %v4018_v39 = vadd.f32 %v8845_v20, %v3998_v23  ;;  %v4064_v61 = vsel %vm322_vm0, %v8938_v59, 0.0  ;;  %v4113_v46 = vmul.f32 %v8938_v59, %v8938_v59  ;;  %v8953_v16 = vadd.f32 %v6926_v38, %v4019_v22  ;;  %v9022_v22 = vld [vmem:[%s9646_s4 + $0x38] sm:$0xff] }
 0xc18   : > { %4053 = vadd.xlane.f32.xlu0 %v4052_v57  ;;  %v3969_v26 = vpop.f32.mrf.mxu0  ;;  %v4001_v18 = vadd.f32 %v6424_v13, %v8810_v3  ;;  %v4148_v1 = vsel %vm322_vm0, %v4114_v45, 0.0  ;;  %6460 = vmatprep.subr.mxu0 %v9022_v22  ;;  %v9035_v45 = vld [vmem:[%s9646_s4 + $0x28] sm:$0xff] }
 0xc19   : > { %v8964_v47 = vadd.f32 %v6927_v27, %v4018_v39  ;;  %v4000_v24 = vadd.f32 %v3969_v26, %v8814_v19  ;;  %v4145_v31 = vsel %vm322_vm0, %v4113_v46, 0.0  ;;  %v4073_v2 = vsel %vm322_vm0, %v8953_v16, 0.0  ;;  %v4337_v19 = vld [vmem:[%s9645_s3] sm:$0xff]  ;;  %6461 = vmatpush3.msra.mxu0 %v9022_v22  ;;  %v9056_v46 = vld [vmem:[%s9646_s4 + $0x10] sm:$0xff]  ;;  %v9063_v26 = vld [vmem:[%s9646_s4 + $0x8] sm:$0xff] }
 0xc1a   : > { %4137 = vadd.xlane.f32.xlu1 %v4136_v6  ;;  %v6427_v3 = vpop.f32.mrf.mxu0  ;;  %v4021_v21 = vadd.f32 %v8845_v20, %v4001_v18  ;;  %v4116_v33 = vmul.f32 %v8953_v16, %v8953_v16  ;;  %6434 = vmatprep.subr.mxu1 %v4337_v19  ;;  %v6929_v6 = vld [vmem:[%s7122_s11 + $0x60] sm:$0xff] }
 0xc1b   : > { %v4020_v44 = vadd.f32 %v8845_v20, %v4000_v24  ;;  %v4070_v25 = vsel %vm322_vm0, %v8964_v47, 0.0  ;;  %v4115_v56 = vmul.f32 %v8964_v47, %v8964_v47  ;;  %6435 = vmatpush3.msra.mxu1 %v4337_v19  ;;  %v4003_v30 = vadd.f32 %v6427_v3, %v8818_v32  ;;  %v9042_v39 = vld [vmem:[%s9646_s4 + $0x20] sm:$0xff] }
 0xc1c   : > { %4134 = vadd.xlane.f32.xlu0 %v4133_v28  ;;  %v3979_v57 = vpop.f32.mrf.mxu0  ;;  %v8982_v53 = vadd.f32 %v6928_v51, %v4021_v21  ;;  %v4154_v36 = vsel %vm322_vm0, %v4116_v33, 0.0  ;;  %6500 = vmatprep.subr.mxu1 %v9022_v22 }
 0xc1d   : > { %v8987_v4 = vadd.f32 %v6929_v6, %v4020_v44  ;;  %v4002_v5 = vadd.f32 %v3979_v57, %v8820_v40  ;;  %v4151_v28 = vsel %vm322_vm0, %v4115_v56, 0.0  ;;  %v4023_v0 = vadd.f32 %v8845_v20, %v4003_v30 }
 0xc1e   : > { %4062 = vadd.xlane.f32.xlu1 %v4061_v62  ;;  %v4079_v55 = vsel %vm322_vm0, %v8982_v53, 0.0  ;;  %v4118_v32 = vmul.f32 %v8982_v53, %v8982_v53 }
 0xc1f   : > { %v4022_v62 = vadd.f32 %v8845_v20, %v4002_v5  ;;  %v4076_v34 = vsel %vm322_vm0, %v8987_v4, 0.0  ;;  %v4117_v40 = vmul.f32 %v8987_v4, %v8987_v4 }
 0xc20   : > { %4059 = vadd.xlane.f32.xlu0 %v4058_v10  ;;  %v9002_v10 = vadd.f32 %v6930_v29, %v4023_v0  ;;  %v4160_v37 = vsel %vm322_vm0, %v4118_v32, 0.0 }
 0xc21   : > { %v9006_v42 = vadd.f32 %v6931_v17, %v4022_v62  ;;  %v4157_v63 = vsel %vm322_vm0, %v4117_v40, 0.0 }
 0xc22   : > { %4143 = vadd.xlane.f32.xlu1 %v4142_v9  ;;  %v4085_v20 = vsel %vm322_vm0, %v9002_v10, 0.0  ;;  %v4120_v9 = vmul.f32 %v9002_v10, %v9002_v10 }
 0xc23   : > { %v4082_v60 = vsel %vm322_vm0, %v9006_v42, 0.0  ;;  %v4119_v23 = vmul.f32 %v9006_v42, %v9006_v42 }
 0xc24   : > { %4140 = vadd.xlane.f32.xlu0 %v4139_v14  ;;  %v4166_v14 = vsel %vm322_vm0, %v4120_v9, 0.0 }
 0xc25   : > { %v4163_v13 = vsel %vm322_vm0, %v4119_v23, 0.0 }
 0xc26   : > { %4068 = vadd.xlane.f32.xlu1 %v4067_v41  ;;  %v9027_v41 = vld [vmem:[%s9646_s4 + $0x30] sm:$0xff] }
 0xc27   : > { %6462 = vmatprep.subr.mxu0 %v9027_v41 }
 0xc28   : > { %4065 = vadd.xlane.f32.xlu0 %v4064_v61  ;;  %6463 = vmatpush3.msra.mxu0 %v9027_v41  ;;  %v9049_v61 = vld [vmem:[%s9646_s4 + $0x18] sm:$0xff] }
 0xc29   : > { %6464 = vmatprep.subr.mxu0 %v9035_v45 }
 0xc2a   : > { %4149 = vadd.xlane.f32.xlu1 %v4148_v1  ;;  %6465 = vmatpush3.msra.mxu0 %v9035_v45 }
 0xc2b   : > { %6466 = vmatprep.subr.mxu0 %v9042_v39 }
 0xc2c   : > { %4146 = vadd.xlane.f32.xlu0 %v4145_v31  ;;  %6467 = vmatpush3.msra.mxu0 %v9042_v39 }
 0xc2d   : > { %6468 = vmatprep.subr.mxu0 %v9049_v61 }
 0xc2e   : > { %4074 = vadd.xlane.f32.xlu1 %v4073_v2  ;;  %6469 = vmatpush3.msra.mxu0 %v9049_v61 }
 0xc2f   : > { %6470 = vmatprep.subr.mxu0 %v9056_v46 }
 0xc30   : > { %4071 = vadd.xlane.f32.xlu0 %v4070_v25  ;;  %6471 = vmatpush3.msra.mxu0 %v9056_v46 }
 0xc31   : > { %6472 = vmatprep.subr.mxu0 %v9063_v26 }
 0xc32   : > { %4155 = vadd.xlane.f32.xlu1 %v4154_v36  ;;  %6473 = vmatpush3.msra.mxu0 %v9063_v26 }
 0xc34   : > { %4152 = vadd.xlane.f32.xlu0 %v4151_v28 }
 0xc36   : > { %4080 = vadd.xlane.f32.xlu1 %v4079_v55 }
 0xc38   : > { %4077 = vadd.xlane.f32.xlu0 %v4076_v34 }
 0xc3a   : > { %4161 = vadd.xlane.f32.xlu1 %v4160_v37 }
 0xc3c   : > { %4158 = vadd.xlane.f32.xlu0 %v4157_v63 }
 0xc3e   : > { %4086 = vadd.xlane.f32.xlu1 %v4085_v20 }
 0xc40   : > { %4083 = vadd.xlane.f32.xlu0 %v4082_v60 }
 0xc42   : > { %4167 = vadd.xlane.f32.xlu1 %v4166_v14 }
 0xc44   : > { %4164 = vadd.xlane.f32.xlu0 %v4163_v13 }
 0xc8f   : > { %v4045_v38 = vpop.xlane.xlu1 %4044 }
 0xc90   : > { %v4090_v18 = vmul.f32 0.03125, %v4045_v38 }
 0xc91   : > { %v4042_v1 = vpop.xlane.xlu0 %4041 }
 0xc92   : > { %v9069_v58 = vmul.f32 0.03125, %v4042_v1  ;;  %v4186_v27 = vmul.f32 %v4090_v18, %v4090_v18  ;;  %v4299_v1 = vsub.s32 2, %v9819_v50 }
 0xc93   : > { %v4126_v54 = vpop.xlane.xlu1 %4125 }
 0xc94   : > { %v4170_v24 = vmul.f32 0.03125, %v4126_v54  ;;  %v4185_v3 = vmul.f32 %v9069_v58, %v9069_v58 }
 0xc95   : > { %v4123_v31 = vpop.xlane.xlu0 %4122 }
 0xc96   : > { %v4202_v21 = vsub.f32 %v4170_v24, %v4186_v27  ;;  %v4169_v2 = vmul.f32 0.03125, %v4123_v31 }
 0xc97   : > { %v4051_v33 = vpop.xlane.xlu1 %4050 }
 0xc98   : > { %v4218_v19 = vmax.f32 %v4202_v21, 0.0  ;;  %v4201_v44 = vsub.f32 %v4169_v2, %v4185_v3  ;;  %v9073_v25 = vmul.f32 0.03125, %v4051_v33  ;;  %v4234_v3 = vsub.f32 %v8851_v15, %v4090_v18 }
 0xc99   : > { %v4048_v56 = vpop.xlane.xlu0 %4047 }
 0xc9a   : > { %v4250_v57 = vadd.f32 1e-05, %v4218_v19  ;;  %v4217_v51 = vmax.f32 %v4201_v44, 0.0  ;;  %v9075_v30 = vmul.f32 0.03125, %v4048_v56  ;;  %v4188_v5 = vmul.f32 %v9073_v25, %v9073_v25 }
 0xc9b   : > { %v4132_v36 = vpop.xlane.xlu1 %4131  ;;  %v9094_v56 = vrot.slane %v8842_v49, %v4299_v1  ;;  %v4236_v1 = vsub.f32 %v8870_v48, %v9073_v25 }
 0xc9c   : > { %6851 = vrsqrt.f32 %v4250_v57  ;;  %v4249_v6 = vadd.f32 1e-05, %v4217_v51  ;;  %v4172_v28 = vmul.f32 0.03125, %v4132_v36  ;;  %v4187_v55 = vmul.f32 %v9075_v30, %v9075_v30 }
 0xc9d   : > { %v4129_v0 = vpop.xlane.xlu0 %4128  ;;  %v4319_v57 = vsub.s32 3, %v9819_v50  ;;  %v4233_v51 = vsub.f32 %v8856_v52, %v9069_v58 }
 0xc9e   : > { %6853 = vrsqrt.f32 %v4249_v6  ;;  %v4204_v32 = vsub.f32 %v4172_v28, %v4188_v5  ;;  %v4171_v62 = vmul.f32 0.03125, %v4129_v0 }
 0xc9f   : > { %v4057_v34 = vpop.xlane.xlu1 %4056  ;;  %v9106_v52 = vrot.slane %v8842_v49, %v4319_v57 }
 0xca0   : > { %v4220_v40 = vmax.f32 %v4204_v32, 0.0  ;;  %v4203_v29 = vsub.f32 %v4171_v62, %v4187_v55  ;;  %v9081_v37 = vmul.f32 0.03125, %v4057_v34 }
 0xca1   : > { %v4054_v17 = vpop.xlane.xlu0 %4053 }
 0xca2   : > { %v4252_v63 = vadd.f32 1e-05, %v4220_v40  ;;  %v4219_v20 = vmax.f32 %v4203_v29, 0.0  ;;  %v9083_v9 = vmul.f32 0.03125, %v4054_v17  ;;  %v4190_v14 = vmul.f32 %v9081_v37, %v9081_v37 }
 0xca3   : > { %v4138_v60 = vpop.xlane.xlu1 %4137 }
 0xca4   : > { %6855 = vrsqrt.f32 %v4252_v63  ;;  %v4251_v23 = vadd.f32 1e-05, %v4219_v20  ;;  %v4174_v13 = vmul.f32 0.03125, %v4138_v60  ;;  %v4189_v54 = vmul.f32 %v9083_v9, %v9083_v9 }
 0xca5   : > { %v4135_v38 = vpop.xlane.xlu0 %4134 }
 0xca6   : > { %6857 = vrsqrt.f32 %v4251_v23  ;;  %v4206_v27 = vsub.f32 %v4174_v13, %v4190_v14  ;;  %v4173_v24 = vmul.f32 0.03125, %v4135_v38 }
 0xca7   : > { %v4063_v31 = vpop.xlane.xlu1 %4062 }
 0xca8   : > { %v4222_v21 = vmax.f32 %v4206_v27, 0.0  ;;  %v4205_v2 = vsub.f32 %v4173_v24, %v4189_v54  ;;  %v9091_v33 = vmul.f32 0.03125, %v4063_v31  ;;  %v4235_v24 = vsub.f32 %v8875_v11, %v9075_v30 }
 0xca9   : > { %v6852_v19 = vpop.eup %6851  ;;  %v4060_v44 = vpop.xlane.xlu0 %4059 }
 0xcaa   : > { %v4282_v36 = vmul.f32 %v6852_v19, %v4234_v3  ;;  %v4254_v6 = vadd.f32 1e-05, %v4222_v21  ;;  %v4221_v5 = vmax.f32 %v4205_v2, 0.0  ;;  %v4192_v15 = vmul.f32 %v9091_v33, %v9091_v33 }
 0xcab   : > { %v6854_v28 = vpop.eup %6853  ;;  %v9101_v18 = vmul.f32 0.03125, %v4060_v44  ;;  %v4144_v0 = vpop.xlane.xlu1 %4143 }
 0xcac   : > { %6859 = vrsqrt.f32 %v4254_v6  ;;  %v4253_v55 = vadd.f32 1e-05, %v4221_v5  ;;  %v4176_v32 = vmul.f32 0.03125, %v4144_v0  ;;  %v4281_v62 = vmul.f32 %v6854_v28, %v4233_v51 }
 0xcad   : > { %v4191_v34 = vmul.f32 %v9101_v18, %v9101_v18  ;;  %v4141_v40 = vpop.xlane.xlu0 %4140  ;;  %v4302_v58 = vmul.f32 %v9094_v56, %v4282_v36 }
 0xcae   : > { %6861 = vrsqrt.f32 %v4253_v55  ;;  %v4208_v29 = vsub.f32 %v4176_v32, %v4192_v15  ;;  %v4175_v17 = vmul.f32 0.03125, %v4141_v40  ;;  %v4301_v63 = vmul.f32 %v9094_v56, %v4281_v62 }
 0xcaf   : > { %v4069_v20 = vpop.xlane.xlu1 %4068  ;;  %v9118_v27 = vadd.f32 %v9106_v52, %v4302_v58 }
 0xcb0   : > { %v4224_v60 = vmax.f32 %v4208_v29, 0.0  ;;  %v4207_v23 = vsub.f32 %v4175_v17, %v4191_v34  ;;  %v9110_v14 = vmul.f32 0.03125, %v4069_v20  ;;  %v9113_v13 = vadd.f32 %v9106_v52, %v4301_v63 }
 0xcb1   : > { %v6856_v38 = vpop.eup %6855  ;;  %v4066_v54 = vpop.xlane.xlu0 %4065  ;;  %v4238_v34 = vsub.f32 %v8890_v8, %v9081_v37 }
 0xcb2   : > { %v4256_v31 = vadd.f32 1e-05, %v4224_v60  ;;  %v4223_v3 = vmax.f32 %v4207_v23, 0.0  ;;  %6436 = vmatprep.mubr.msk.f32.mxu1 %vm322_vm0, %v9113_v13  ;;  %v4194_v2 = vmul.f32 %v9110_v14, %v9110_v14  ;;  %v9126_v19 = vmul.f32 0.03125, %v4066_v54 }
 0xcb3   : > { %v6858_v21 = vpop.eup %6857  ;;  %6437 = vmatmul.mubr.msk.f32.vlgmr.msra.gmra.mxu1 %vm322_vm0, %v9118_v27  ;;  %v4150_v48 = vpop.xlane.xlu1 %4149  ;;  %v4284_v25 = vmul.f32 %v6856_v38, %v4236_v1 }
 0xcb4   : > { %6863 = vrsqrt.f32 %v4256_v31  ;;  %v4255_v44 = vadd.f32 1e-05, %v4223_v3  ;;  %v4178_v57 = vmul.f32 0.03125, %v4150_v48  ;;  %v4283_v11 = vmul.f32 %v6858_v21, %v4235_v24  ;;  %6508 = vmatpush3.msra.mxu1 %v9022_v22 }
 0xcb5   : > { %v4193_v30 = vmul.f32 %v9126_v19, %v9126_v19  ;;  %v4147_v51 = vpop.xlane.xlu0 %4146  ;;  %v4304_v36 = vmul.f32 %v9094_v56, %v4284_v25  ;;  %6501 = vmatprep.subr.mxu1 %v9027_v41  ;;  %v4240_v25 = vsub.f32 %v8913_v12, %v9091_v33 }
 0xcb6   : > { %6865 = vrsqrt.f32 %v4255_v44  ;;  %v4210_v6 = vsub.f32 %v4178_v57, %v4194_v2  ;;  %v4177_v5 = vmul.f32 0.03125, %v4147_v51  ;;  %v4303_v28 = vmul.f32 %v9094_v56, %v4283_v11  ;;  %6509 = vmatpush3.msra.mxu1 %v9027_v41 }
 0xcb7   : > { %v4075_v15 = vpop.xlane.xlu1 %4074  ;;  %6502 = vmatprep.subr.mxu1 %v9035_v45  ;;  %v9147_v58 = vadd.f32 %v9106_v52, %v4304_v36  ;;  %v4237_v41 = vsub.f32 %v8895_v43, %v9083_v9 }
 0xcb8   : > { %v4226_v0 = vmax.f32 %v4210_v6, 0.0  ;;  %v4209_v22 = vsub.f32 %v4177_v5, %v4193_v30  ;;  %v9138_v55 = vmul.f32 0.03125, %v4075_v15  ;;  %v9141_v32 = vadd.f32 %v9106_v52, %v4303_v28  ;;  %6510 = vmatpush3.msra.mxu1 %v9035_v45 }
 0xcb9   : > { %v6860_v62 = vpop.eup %6859  ;;  %v4072_v40 = vpop.xlane.xlu0 %4071  ;;  %6503 = vmatprep.subr.mxu1 %v9042_v39 }
 0xcba   : > { %v4258_v29 = vadd.f32 1e-05, %v4226_v0  ;;  %v4225_v17 = vmax.f32 %v4209_v22, 0.0  ;;  %6439 = vmatprep.mubr.msk.f32.mxu1 %vm322_vm0, %v9141_v32  ;;  %6511 = vmatpush3.msra.mxu1 %v9042_v39  ;;  %v4196_v8 = vmul.f32 %v9138_v55, %v9138_v55  ;;  %v9157_v37 = vmul.f32 0.03125, %v4072_v40 }
 0xcbb   : > { %v6862_v45 = vpop.eup %6861  ;;  %6440 = vmatmul.mubr.msk.f32.gmra.mxu1 %vm322_vm0, %v9147_v58  ;;  %v4156_v63 = vpop.xlane.xlu1 %4155  ;;  %v4286_v20 = vmul.f32 %v6860_v62, %v4238_v34  ;;  %6504 = vmatprep.subr.mxu1 %v9049_v61 }
 0xcbc   : > { %6867 = vrsqrt.f32 %v4258_v29  ;;  %v4257_v43 = vadd.f32 1e-05, %v4225_v17  ;;  %v4180_v9 = vmul.f32 0.03125, %v4156_v63  ;;  %v4285_v60 = vmul.f32 %v6862_v45, %v4237_v41  ;;  %6512 = vmatpush3.msra.mxu1 %v9049_v61 }
 0xcbd   : > { %v4195_v39 = vmul.f32 %v9157_v37, %v9157_v37  ;;  %v4153_v23 = vpop.xlane.xlu0 %4152  ;;  %v4306_v38 = vmul.f32 %v9094_v56, %v4286_v20  ;;  %6505 = vmatprep.subr.mxu1 %v9056_v46 }
 0xcbe   : > { %6869 = vrsqrt.f32 %v4257_v43  ;;  %v4212_v1 = vsub.f32 %v4180_v9, %v4196_v8  ;;  %v4179_v54 = vmul.f32 0.03125, %v4153_v23  ;;  %v4305_v24 = vmul.f32 %v9094_v56, %v4285_v60  ;;  %6513 = vmatpush3.msra.mxu1 %v9056_v46 }
 0xcbf   : > { %v4081_v31 = vpop.xlane.xlu1 %4080  ;;  %6506 = vmatprep.subr.mxu1 %v9063_v26  ;;  %v9179_v57 = vadd.f32 %v9106_v52, %v4306_v38  ;;  %v4239_v46 = vsub.f32 %v8918_v35, %v9101_v18  ;;  %v4242_v8 = vsub.f32 %v8933_v7, %v9110_v14  ;;  %v4241_v43 = vsub.f32 %v8938_v59, %v9126_v19 }
 0xcc0   : > { %v4228_v3 = vmax.f32 %v4212_v1, 0.0  ;;  %v4211_v61 = vsub.f32 %v4179_v54, %v4195_v39  ;;  %v9170_v21 = vmul.f32 0.03125, %v4081_v31  ;;  %v9173_v2 = vadd.f32 %v9106_v52, %v4305_v24  ;;  %6514 = vmatpush3.msra.mxu1 %v9063_v26 }
 0xcc1   : > { %v6864_v48 = vpop.eup %6863  ;;  %v4078_v44 = vpop.xlane.xlu0 %4077 }
 0xcc2   : > { %v4260_v11 = vadd.f32 1e-05, %v4228_v3  ;;  %v4227_v30 = vmax.f32 %v4211_v61, 0.0  ;;  %6442 = vmatprep.mubr.msk.f32.mxu1 %vm322_vm0, %v9173_v2  ;;  %v4198_v26 = vmul.f32 %v9170_v21, %v9170_v21  ;;  %v9187_v36 = vmul.f32 0.03125, %v4078_v44 }
 0xcc3   : > { %v6866_v51 = vpop.eup %6865  ;;  %6443 = vmatmul.mubr.msk.f32.gmra.mxu1 %vm322_vm0, %v9179_v57  ;;  %v4162_v12 = vpop.xlane.xlu1 %4161  ;;  %v4288_v33 = vmul.f32 %v6864_v48, %v4240_v25  ;;  %v4244_v25 = vsub.f32 %v8953_v16, %v9138_v55 }
 0xcc4   : > { %6871 = vrsqrt.f32 %v4260_v11  ;;  %v4259_v6 = vadd.f32 1e-05, %v4227_v30  ;;  %v4182_v5 = vmul.f32 0.03125, %v4162_v12  ;;  %v4287_v35 = vmul.f32 %v6866_v51, %v4239_v46 }
 0xcc5   : > { %v4197_v18 = vmul.f32 %v9187_v36, %v9187_v36  ;;  %v4159_v28 = vpop.xlane.xlu0 %4158  ;;  %v4308_v15 = vmul.f32 %v9094_v56, %v4288_v33 }
 0xcc6   : > { %6873 = vrsqrt.f32 %v4259_v6  ;;  %v4214_v0 = vsub.f32 %v4182_v5, %v4198_v26  ;;  %v4181_v22 = vmul.f32 0.03125, %v4159_v28  ;;  %v4307_v62 = vmul.f32 %v9094_v56, %v4287_v35 }
 0xcc7   : > { %v4087_v34 = vpop.xlane.xlu1 %4086  ;;  %v9203_v20 = vadd.f32 %v9106_v52, %v4308_v15  ;;  %v4243_v26 = vsub.f32 %v8964_v47, %v9157_v37  ;;  %v4246_v47 = vsub.f32 %v8982_v53, %v9170_v21 }
 0xcc8   : > { %v4230_v40 = vmax.f32 %v4214_v0, 0.0  ;;  %v4213_v41 = vsub.f32 %v4181_v22, %v4197_v18  ;;  %v9195_v29 = vmul.f32 0.03125, %v4087_v34  ;;  %v9198_v17 = vadd.f32 %v9106_v52, %v4307_v62 }
 0xcc9   : > { %v6868_v45 = vpop.eup %6867  ;;  %v4084_v63 = vpop.xlane.xlu0 %4083  ;;  %v4245_v0 = vsub.f32 %v8987_v4, %v9187_v36 }
 0xcca   : > { %v4262_v9 = vadd.f32 1e-05, %v4230_v40  ;;  %v4229_v60 = vmax.f32 %v4213_v41, 0.0  ;;  %6445 = vmatprep.mubr.msk.f32.mxu1 %vm322_vm0, %v9198_v17  ;;  %v4200_v23 = vmul.f32 %v9195_v29, %v9195_v29  ;;  %v4103_v38 = vmul.f32 0.03125, %v4084_v63 }
 0xccb   : > { %v6870_v39 = vpop.eup %6869  ;;  %6446 = vmatmul.mubr.msk.f32.gmra.mxu1 %vm322_vm0, %v9203_v20  ;;  %v4168_v7 = vpop.xlane.xlu1 %4167  ;;  %v4290_v14 = vmul.f32 %v6868_v45, %v4242_v8  ;;  %v4248_v40 = vsub.f32 %v9002_v10, %v9195_v29 }
 0xccc   : > { %6875 = vrsqrt.f32 %v4262_v9  ;;  %v4261_v1 = vadd.f32 1e-05, %v4229_v60  ;;  %v4184_v54 = vmul.f32 0.03125, %v4168_v7  ;;  %v4289_v24 = vmul.f32 %v6870_v39, %v4241_v43 }
 0xccd   : > { %v4199_v59 = vmul.f32 %v4103_v38, %v4103_v38  ;;  %v4165_v19 = vpop.xlane.xlu0 %4164  ;;  %v4310_v31 = vmul.f32 %v9094_v56, %v4290_v14  ;;  %v4247_v45 = vsub.f32 %v9006_v42, %v4103_v38  ;;  %v4554_v42 = vld [vmem:[%s9646_s4] sm:$0xff] }
 0xcce   : > { %6877 = vrsqrt.f32 %v4261_v1  ;;  %v4216_v3 = vsub.f32 %v4184_v54, %v4200_v23  ;;  %v4183_v61 = vmul.f32 0.03125, %v4165_v19  ;;  %v4309_v48 = vmul.f32 %v9094_v56, %v4289_v24  ;;  %6474 = vmatprep.subr.mxu0 %v4554_v42  ;;  %6507 = vmatprep.subr.mxu1 %v4554_v42 }
 0xccf   : > { %v9221_v51 = vadd.f32 %v9106_v52, %v4310_v31  ;;  %6475 = vmatpush3.msra.mxu0 %v4554_v42  ;;  %6515 = vmatpush3.msra.mxu1 %v4554_v42 }
 0xcd0   : > { %v4232_v44 = vmax.f32 %v4216_v3, 0.0  ;;  %v4215_v46 = vsub.f32 %v4183_v61, %v4199_v59  ;;  %v9218_v11 = vadd.f32 %v9106_v52, %v4309_v48 }
 0xcd1   : > { %v6872_v30 = vpop.eup %6871 }
 0xcd2   : > { %v4264_v12 = vadd.f32 1e-05, %v4232_v44  ;;  %v4231_v33 = vmax.f32 %v4215_v46, 0.0  ;;  %6448 = vmatprep.mubr.msk.f32.mxu1 %vm322_vm0, %v9218_v11  ;;  %v4292_v6 = vmul.f32 %v6872_v30, %v4244_v25 }
 0xcd3   : > { %v6874_v5 = vpop.eup %6873  ;;  %6449 = vmatmul.mubr.msk.f32.gmra.mxu1 %vm322_vm0, %v9221_v51 }
 0xcd4   : > { %6879 = vrsqrt.f32 %v4264_v12  ;;  %v4263_v16 = vadd.f32 1e-05, %v4231_v33  ;;  %v4291_v55 = vmul.f32 %v6874_v5, %v4243_v26  ;;  %v4312_v35 = vmul.f32 %v9094_v56, %v4292_v6 }
 0xcd6   : > { %6881 = vrsqrt.f32 %v4263_v16  ;;  %v4311_v18 = vmul.f32 %v9094_v56, %v4291_v55  ;;  %v9237_v15 = vadd.f32 %v9106_v52, %v4312_v35 }
 0xcd8   : > { %v9234_v37 = vadd.f32 %v9106_v52, %v4311_v18 }
 0xcd9   : > { %v6876_v28 = vpop.eup %6875 }
 0xcda   : > { %6451 = vmatprep.mubr.msk.f32.mxu1 %vm322_vm0, %v9234_v37  ;;  %v4294_v22 = vmul.f32 %v6876_v28, %v4246_v47 }
 0xcdb   : > { %v6878_v62 = vpop.eup %6877  ;;  %6452 = vmatmul.mubr.msk.f32.gmra.mxu1 %vm322_vm0, %v9237_v15 }
 0xcdc   : > { %v4293_v34 = vmul.f32 %v6878_v62, %v4245_v0  ;;  %v4314_v53 = vmul.f32 %v9094_v56, %v4294_v22 }
 0xcde   : > { %v4313_v21 = vmul.f32 %v9094_v56, %v4293_v34  ;;  %v9253_v36 = vadd.f32 %v9106_v52, %v4314_v53 }
 0xce0   : > { %v9250_v41 = vadd.f32 %v9106_v52, %v4313_v21 }
 0xce1   : > { %v6880_v4 = vpop.eup %6879 }
 0xce2   : > { %6454 = vmatprep.mubr.msk.f32.mxu1 %vm322_vm0, %v9250_v41  ;;  %v4296_v8 = vmul.f32 %v6880_v4, %v4248_v40 }
 0xce3   : > { %v6882_v63 = vpop.eup %6881  ;;  %6455 = vmatmul.mubr.msk.f32.gmra.mxu1 %vm322_vm0, %v9253_v36 }
 0xce4   : > { %v4295_v43 = vmul.f32 %v6882_v63, %v4247_v45  ;;  %v4316_v10 = vmul.f32 %v9094_v56, %v4296_v8 }
 0xce6   : > { %v4315_v29 = vmul.f32 %v9094_v56, %v4295_v43  ;;  %v9266_v60 = vadd.f32 %v9106_v52, %v4316_v10  ;;  %v4343_v56 = vsub.s32 4, %v9819_v50 }
 0xce8   : > { %v9263_v9 = vadd.f32 %v9106_v52, %v4315_v29  ;;  %v4344_v39 = vrot.slane %v8842_v49, %v4343_v56 }
 0xcea   : > { %6457 = vmatprep.mubr.msk.f32.mxu1 %vm322_vm0, %v9263_v9 }
 0xceb   : > { %6458 = vmatmul.mubr.msk.f32.gmra.mxu1 %vm322_vm0, %v9266_v60 }
 0xd73   : > { %v6438_v52 = vpop.f32.mrf.mxu1 }
 0xd74   : > { %v4465_v23 = vadd.f32 %v6438_v52, %v4344_v39 }
 0xd75   : > { %v4459_v38 = vpop.f32.mrf.mxu1 }
 0xd76   : > { %v4460_v7 = vadd.f32 %v4459_v38, %v4344_v39  ;;  %v4539_v1 = vmax.f32 %v4465_v23, 0.0 }
 0xd78   : > { %v4538_v14 = vmax.f32 %v4460_v7, 0.0  ;;  %v4564_v7 = vsub.s32 5, %v9819_v50 }
 0xd7a   : > { %6476 = vmatprep.mubr.msk.f32.mxu0 %vm4566_vm1, %v4538_v14  ;;  %v9295_v14 = vrot.slane %v8842_v49, %v4564_v7 }
 0xd7b   : > { %v6441_v54 = vpop.f32.mrf.mxu1  ;;  %6477 = vmatmul.mubr.msk.f32.vlgmr.msra.gmra.mxu0 %vm4566_vm1, %v4539_v1 }
 0xd7c   : > { %v4475_v24 = vadd.f32 %v6441_v54, %v4344_v39 }
 0xd7d   : > { %v4469_v59 = vpop.f32.mrf.mxu1 }
 0xd7e   : > { %v4470_v19 = vadd.f32 %v4469_v59, %v4344_v39  ;;  %v4541_v3 = vmax.f32 %v4475_v24, 0.0 }
 0xd80   : > { %v4540_v31 = vmax.f32 %v4470_v19, 0.0 }
 0xd82   : > { %6479 = vmatprep.mubr.msk.f32.mxu0 %vm4566_vm1, %v4540_v31 }
 0xd83   : > { %v6444_v61 = vpop.f32.mrf.mxu1  ;;  %6480 = vmatmul.mubr.msk.f32.gmra.mxu0 %vm4566_vm1, %v4541_v3 }
 0xd84   : > { %v4485_v48 = vadd.f32 %v6444_v61, %v4344_v39 }
 0xd85   : > { %v4479_v25 = vpop.f32.mrf.mxu1 }
 0xd86   : > { %v4480_v44 = vadd.f32 %v4479_v25, %v4344_v39  ;;  %v4543_v30 = vmax.f32 %v4485_v48, 0.0 }
 0xd88   : > { %v4542_v46 = vmax.f32 %v4480_v44, 0.0 }
 0xd8a   : > { %6482 = vmatprep.mubr.msk.f32.mxu0 %vm4566_vm1, %v4542_v46 }
 0xd8b   : > { %v6447_v26 = vpop.f32.mrf.mxu1  ;;  %6483 = vmatmul.mubr.msk.f32.gmra.mxu0 %vm4566_vm1, %v4543_v30 }
 0xd8c   : > { %v4495_v12 = vadd.f32 %v6447_v26, %v4344_v39 }
 0xd8d   : > { %v4489_v33 = vpop.f32.mrf.mxu1 }
 0xd8e   : > { %v4490_v6 = vadd.f32 %v4489_v33, %v4344_v39  ;;  %v4545_v16 = vmax.f32 %v4495_v12, 0.0 }
 0xd90   : > { %v4544_v5 = vmax.f32 %v4490_v6, 0.0 }
 0xd92   : > { %6485 = vmatprep.mubr.msk.f32.mxu0 %vm4566_vm1, %v4544_v5 }
 0xd93   : > { %v6450_v55 = vpop.f32.mrf.mxu1  ;;  %6486 = vmatmul.mubr.msk.f32.gmra.mxu0 %vm4566_vm1, %v4545_v16 }
 0xd94   : > { %v4505_v35 = vadd.f32 %v6450_v55, %v4344_v39 }
 0xd95   : > { %v4499_v18 = vpop.f32.mrf.mxu1 }
 0xd96   : > { %v4500_v47 = vadd.f32 %v4499_v18, %v4344_v39  ;;  %v4547_v0 = vmax.f32 %v4505_v35, 0.0 }
 0xd98   : > { %v4546_v28 = vmax.f32 %v4500_v47, 0.0 }
 0xd9a   : > { %6488 = vmatprep.mubr.msk.f32.mxu0 %vm4566_vm1, %v4546_v28 }
 0xd9b   : > { %v6453_v22 = vpop.f32.mrf.mxu1  ;;  %6489 = vmatmul.mubr.msk.f32.gmra.mxu0 %vm4566_vm1, %v4547_v0 }
 0xd9c   : > { %v4515_v62 = vadd.f32 %v6453_v22, %v4344_v39 }
 0xd9d   : > { %v4509_v34 = vpop.f32.mrf.mxu1 }
 0xd9e   : > { %v4510_v53 = vadd.f32 %v4509_v34, %v4344_v39  ;;  %v4549_v40 = vmax.f32 %v4515_v62, 0.0 }
 0xda0   : > { %v4548_v21 = vmax.f32 %v4510_v53, 0.0 }
 0xda2   : > { %6491 = vmatprep.mubr.msk.f32.mxu0 %vm4566_vm1, %v4548_v21 }
 0xda3   : > { %v6456_v4 = vpop.f32.mrf.mxu1  ;;  %6492 = vmatmul.mubr.msk.f32.gmra.mxu0 %vm4566_vm1, %v4549_v40 }
 0xda4   : > { %v4525_v45 = vadd.f32 %v6456_v4, %v4344_v39 }
 0xda5   : > { %v4519_v8 = vpop.f32.mrf.mxu1 }
 0xda6   : > { %v4520_v63 = vadd.f32 %v4519_v8, %v4344_v39  ;;  %v4551_v10 = vmax.f32 %v4525_v45, 0.0 }
 0xda8   : > { %v4550_v43 = vmax.f32 %v4520_v63, 0.0 }
 0xdaa   : > { %6494 = vmatprep.mubr.msk.f32.mxu0 %vm4566_vm1, %v4550_v43 }
 0xdab   : > { %v6459_v29 = vpop.f32.mrf.mxu1  ;;  %6495 = vmatmul.mubr.msk.f32.gmra.mxu0 %vm4566_vm1, %v4551_v10 }
 0xdac   : > { %v4535_v42 = vadd.f32 %v6459_v29, %v4344_v39 }
 0xdad   : > { %v4529_v56 = vpop.f32.mrf.mxu1 }
 0xdae   : > { %v4530_v52 = vadd.f32 %v4529_v56, %v4344_v39  ;;  %v4553_v38 = vmax.f32 %v4535_v42, 0.0 }
 0xdb0   : > { %v4552_v23 = vmax.f32 %v4530_v52, 0.0 }
 0xdb2   : > { %6497 = vmatprep.mubr.msk.f32.mxu1 %vm4566_vm1, %v4552_v23 }
 0xdb3   : > { %6498 = vmatmul.mubr.msk.f32.vlgmr.msra.gmra.mxu1 %vm4566_vm1, %v4553_v38 }
 0xe3b   : > { %v6478_v1 = vpop.f32.mrf.mxu0 }
 0xe3c   : > { %v4687_v54 = vadd.f32 %v6478_v1, %v9295_v14 }
 0xe3d   : > { %v4681_v24 = vpop.f32.mrf.mxu0 }
 0xe3e   : > { %v9299_v59 = vadd.f32 %v4687_v54, %v9118_v27  ;;  %v4682_v39 = vadd.f32 %v4681_v24, %v9295_v14 }
 0xe40   : > { %v9303_v19 = vadd.f32 %v4682_v39, %v9113_v13  ;;  %v4779_v31 = vsel %vm322_vm0, %v9299_v59, 0.0  ;;  %v4841_v3 = vmul.f32 %v9299_v59, %v9299_v59 }
 0xe41   : > { %4780 = vadd.xlane.f32.xlu1 %v4779_v31 }
 0xe42   : > { %v4776_v49 = vsel %vm322_vm0, %v9303_v19, 0.0  ;;  %v4840_v61 = vmul.f32 %v9303_v19, %v9303_v19  ;;  %v4859_v13 = vsel %vm322_vm0, %v4841_v3, 0.0 }
 0xe43   : > { %v6481_v27 = vpop.f32.mrf.mxu0  ;;  %4777 = vadd.xlane.f32.xlu0 %v4776_v49 }
 0xe44   : > { %v4697_v48 = vadd.f32 %v6481_v27, %v9295_v14  ;;  %v4856_v30 = vsel %vm322_vm0, %v4840_v61, 0.0 }
 0xe45   : > { %4860 = vadd.xlane.f32.xlu1 %v4859_v13  ;;  %v4691_v25 = vpop.f32.mrf.mxu0 }
 0xe46   : > { %v9316_v44 = vadd.f32 %v4697_v48, %v9147_v58  ;;  %v4692_v46 = vadd.f32 %v4691_v25, %v9295_v14 }
 0xe47   : > { %4857 = vadd.xlane.f32.xlu0 %v4856_v30 }
 0xe48   : > { %v9321_v26 = vadd.f32 %v4692_v46, %v9141_v32  ;;  %v4785_v12 = vsel %vm322_vm0, %v9316_v44, 0.0  ;;  %v4843_v33 = vmul.f32 %v9316_v44, %v9316_v44 }
 0xe49   : > { %4786 = vadd.xlane.f32.xlu1 %v4785_v12 }
 0xe4a   : > { %v4782_v6 = vsel %vm322_vm0, %v9321_v26, 0.0  ;;  %v4842_v58 = vmul.f32 %v9321_v26, %v9321_v26  ;;  %v4865_v32 = vsel %vm322_vm0, %v4843_v33, 0.0 }
 0xe4b   : > { %v6484_v5 = vpop.f32.mrf.mxu0  ;;  %4783 = vadd.xlane.f32.xlu0 %v4782_v6 }
 0xe4c   : > { %v4707_v16 = vadd.f32 %v6484_v5, %v9295_v14  ;;  %v4862_v47 = vsel %vm322_vm0, %v4842_v58, 0.0 }
 0xe4d   : > { %4866 = vadd.xlane.f32.xlu1 %v4865_v32  ;;  %v4701_v55 = vpop.f32.mrf.mxu0 }
 0xe4e   : > { %v9334_v35 = vadd.f32 %v4707_v16, %v9179_v57  ;;  %v4702_v18 = vadd.f32 %v4701_v55, %v9295_v14 }
 0xe4f   : > { %4863 = vadd.xlane.f32.xlu0 %v4862_v47 }
 0xe50   : > { %v9339_v28 = vadd.f32 %v4702_v18, %v9173_v2  ;;  %v4791_v0 = vsel %vm322_vm0, %v9334_v35, 0.0  ;;  %v4845_v22 = vmul.f32 %v9334_v35, %v9334_v35 }
 0xe51   : > { %4792 = vadd.xlane.f32.xlu1 %v4791_v0 }
 0xe52   : > { %v4788_v62 = vsel %vm322_vm0, %v9339_v28, 0.0  ;;  %v4844_v57 = vmul.f32 %v9339_v28, %v9339_v28  ;;  %v4871_v2 = vsel %vm322_vm0, %v4845_v22, 0.0 }
 0xe53   : > { %v6487_v34 = vpop.f32.mrf.mxu0  ;;  %4789 = vadd.xlane.f32.xlu0 %v4788_v62 }
 0xe54   : > { %v4717_v53 = vadd.f32 %v6487_v34, %v9295_v14  ;;  %v4868_v45 = vsel %vm322_vm0, %v4844_v57, 0.0 }
 0xe55   : > { %4872 = vadd.xlane.f32.xlu1 %v4871_v2  ;;  %v4711_v21 = vpop.f32.mrf.mxu0 }
 0xe56   : > { %v9352_v40 = vadd.f32 %v4717_v53, %v9203_v20  ;;  %v4712_v4 = vadd.f32 %v4711_v21, %v9295_v14 }
 0xe57   : > { %4869 = vadd.xlane.f32.xlu0 %v4868_v45 }
 0xe58   : > { %v9357_v8 = vadd.f32 %v4712_v4, %v9198_v17  ;;  %v4797_v63 = vsel %vm322_vm0, %v9352_v40, 0.0  ;;  %v4847_v43 = vmul.f32 %v9352_v40, %v9352_v40 }
 0xe59   : > { %4798 = vadd.xlane.f32.xlu1 %v4797_v63 }
 0xe5a   : > { %v4794_v10 = vsel %vm322_vm0, %v9357_v8, 0.0  ;;  %v4846_v20 = vmul.f32 %v9357_v8, %v9357_v8  ;;  %v4877_v17 = vsel %vm322_vm0, %v4847_v43, 0.0 }
 0xe5b   : > { %v6490_v29 = vpop.f32.mrf.mxu0  ;;  %4795 = vadd.xlane.f32.xlu0 %v4794_v10 }
 0xe5c   : > { %v4727_v42 = vadd.f32 %v6490_v29, %v9295_v14  ;;  %v4874_v38 = vsel %vm322_vm0, %v4846_v20, 0.0 }
 0xe5d   : > { %4878 = vadd.xlane.f32.xlu1 %v4877_v17  ;;  %v4721_v56 = vpop.f32.mrf.mxu0 }
 0xe5e   : > { %v9370_v52 = vadd.f32 %v4727_v42, %v9221_v51  ;;  %v4722_v23 = vadd.f32 %v4721_v56, %v9295_v14 }
 0xe5f   : > { %4875 = vadd.xlane.f32.xlu0 %v4874_v38 }
 0xe60   : > { %v9375_v7 = vadd.f32 %v4722_v23, %v9218_v11  ;;  %v4803_v1 = vsel %vm322_vm0, %v9370_v52, 0.0  ;;  %v4849_v54 = vmul.f32 %v9370_v52, %v9370_v52 }
 0xe61   : > { %4804 = vadd.xlane.f32.xlu1 %v4803_v1 }
 0xe62   : > { %v4800_v24 = vsel %vm322_vm0, %v9375_v7, 0.0  ;;  %v4848_v51 = vmul.f32 %v9375_v7, %v9375_v7  ;;  %v4883_v11 = vsel %vm322_vm0, %v4849_v54, 0.0 }
 0xe63   : > { %v6493_v39 = vpop.f32.mrf.mxu0  ;;  %4801 = vadd.xlane.f32.xlu0 %v4800_v24 }
 0xe64   : > { %v4737_v31 = vadd.f32 %v6493_v39, %v9295_v14  ;;  %v4880_v27 = vsel %vm322_vm0, %v4848_v51, 0.0 }
 0xe65   : > { %4884 = vadd.xlane.f32.xlu1 %v4883_v11  ;;  %v4731_v3 = vpop.f32.mrf.mxu0 }
 0xe66   : > { %v9388_v49 = vadd.f32 %v4737_v31, %v9237_v15  ;;  %v4732_v61 = vadd.f32 %v4731_v3, %v9295_v14 }
 0xe67   : > { %4881 = vadd.xlane.f32.xlu0 %v4880_v27 }
 0xe68   : > { %v9393_v48 = vadd.f32 %v4732_v61, %v9234_v37  ;;  %v4809_v13 = vsel %vm322_vm0, %v9388_v49, 0.0  ;;  %v4851_v25 = vmul.f32 %v9388_v49, %v9388_v49 }
 0xe69   : > { %4810 = vadd.xlane.f32.xlu1 %v4809_v13 }
 0xe6a   : > { %v4806_v46 = vsel %vm322_vm0, %v9393_v48, 0.0  ;;  %v4850_v15 = vmul.f32 %v9393_v48, %v9393_v48  ;;  %v4889_v37 = vsel %vm322_vm0, %v4851_v25, 0.0 }
 0xe6b   : > { %v6496_v30 = vpop.f32.mrf.mxu0  ;;  %4807 = vadd.xlane.f32.xlu0 %v4806_v46 }
 0xe6c   : > { %v4747_v12 = vadd.f32 %v6496_v30, %v9295_v14  ;;  %v4886_v5 = vsel %vm322_vm0, %v4850_v15, 0.0 }
 0xe6d   : > { %4890 = vadd.xlane.f32.xlu1 %v4889_v37  ;;  %v4741_v33 = vpop.f32.mrf.mxu0 }
 0xe6e   : > { %v9406_v6 = vadd.f32 %v4747_v12, %v9253_v36  ;;  %v4742_v58 = vadd.f32 %v4741_v33, %v9295_v14 }
 0xe6f   : > { %4887 = vadd.xlane.f32.xlu0 %v4886_v5 }
 0xe70   : > { %v9411_v16 = vadd.f32 %v4742_v58, %v9250_v41  ;;  %v4815_v32 = vsel %vm322_vm0, %v9406_v6, 0.0  ;;  %v4853_v55 = vmul.f32 %v9406_v6, %v9406_v6 }
 0xe71   : > { %4816 = vadd.xlane.f32.xlu1 %v4815_v32 }
 0xe72   : > { %v4812_v18 = vsel %vm322_vm0, %v9411_v16, 0.0  ;;  %v4852_v36 = vmul.f32 %v9411_v16, %v9411_v16  ;;  %v4895_v41 = vsel %vm322_vm0, %v4853_v55, 0.0 }
 0xe73   : > { %4813 = vadd.xlane.f32.xlu0 %v4812_v18  ;;  %v6499_v47 = vpop.f32.mrf.mxu1 }
 0xe74   : > { %v4757_v0 = vadd.f32 %v6499_v47, %v9295_v14  ;;  %v4892_v34 = vsel %vm322_vm0, %v4852_v36, 0.0  ;;  %v5034_v36 = vsub.s32 6, %v9819_v50 }
 0xe75   : > { %4896 = vadd.xlane.f32.xlu1 %v4895_v41  ;;  %v4751_v22 = vpop.f32.mrf.mxu1 }
 0xe76   : > { %v9424_v62 = vadd.f32 %v4757_v0, %v9266_v60  ;;  %v4752_v57 = vadd.f32 %v4751_v22, %v9295_v14 }
 0xe77   : > { %4893 = vadd.xlane.f32.xlu0 %v4892_v34  ;;  %v5054_v34 = vsub.s32 7, %v9819_v50 }
 0xe78   : > { %v9429_v53 = vadd.f32 %v4752_v57, %v9263_v9  ;;  %v4821_v2 = vsel %vm322_vm0, %v9424_v62, 0.0  ;;  %v4855_v21 = vmul.f32 %v9424_v62, %v9424_v62 }
 0xe79   : > { %4822 = vadd.xlane.f32.xlu1 %v4821_v2 }
 0xe7a   : > { %v4818_v4 = vsel %vm322_vm0, %v9429_v53, 0.0  ;;  %v4854_v60 = vmul.f32 %v9429_v53, %v9429_v53  ;;  %v4901_v14 = vsel %vm322_vm0, %v4855_v21, 0.0 }
 0xe7b   : > { %4819 = vadd.xlane.f32.xlu0 %v4818_v4 }
 0xe7c   : > { %v4898_v9 = vsel %vm322_vm0, %v4854_v60, 0.0 }
 0xe7d   : > { %4902 = vadd.xlane.f32.xlu1 %v4901_v14 }
 0xe7f   : > { %4899 = vadd.xlane.f32.xlu0 %v4898_v9 }
 0xeca   : > { %v4781_v45 = vpop.xlane.xlu1 %4780 }
 0xecb   : > { %v4825_v63 = vmul.f32 0.03125, %v4781_v45  ;;  %v6932_v45 = vld [vmem:[%s9647_s5] sm:$0xff] }
 0xecc   : > { %v4778_v43 = vpop.xlane.xlu0 %4777  ;;  %v9469_v50 = vrot.slane %v6932_v45, %v5054_v34 }
 0xecd   : > { %v9441_v10 = vmul.f32 0.03125, %v4778_v43  ;;  %v4921_v29 = vmul.f32 %v4825_v63, %v4825_v63  ;;  %v4969_v9 = vsub.f32 %v9299_v59, %v4825_v63  ;;  %v9467_v43 = vrot.slane %v6932_v45, %v5034_v36 }
 0xece   : > { %v4861_v20 = vpop.xlane.xlu1 %4860 }
 0xecf   : > { %v4905_v42 = vmul.f32 0.03125, %v4861_v20  ;;  %v4920_v56 = vmul.f32 %v9441_v10, %v9441_v10 }
 0xed0   : > { %v4858_v17 = vpop.xlane.xlu0 %4857 }
 0xed1   : > { %v4937_v23 = vsub.f32 %v4905_v42, %v4921_v29  ;;  %v4904_v38 = vmul.f32 0.03125, %v4858_v17 }
 0xed2   : > { %v4787_v1 = vpop.xlane.xlu1 %4786 }
 0xed3   : > { %v4953_v54 = vmax.f32 %v4937_v23, 0.0  ;;  %v4936_v24 = vsub.f32 %v4904_v38, %v4920_v56  ;;  %v9445_v51 = vmul.f32 0.03125, %v4787_v1  ;;  %v4968_v23 = vsub.f32 %v9303_v19, %v9441_v10 }
 0xed4   : > { %v4784_v39 = vpop.xlane.xlu0 %4783 }
 0xed5   : > { %v4985_v31 = vadd.f32 1e-05, %v4953_v54  ;;  %v4952_v11 = vmax.f32 %v4936_v24, 0.0  ;;  %v9447_v3 = vmul.f32 0.03125, %v4784_v39  ;;  %v4923_v13 = vmul.f32 %v9445_v51, %v9445_v51 }
 0xed6   : > { %v4867_v61 = vpop.xlane.xlu1 %4866 }
 0xed7   : > { %6883 = vrsqrt.f32 %v4985_v31  ;;  %v4984_v27 = vadd.f32 1e-05, %v4952_v11  ;;  %v4907_v25 = vmul.f32 0.03125, %v4867_v61  ;;  %v4922_v15 = vmul.f32 %v9447_v3, %v9447_v3 }
 0xed8   : > { %v4864_v46 = vpop.xlane.xlu0 %4863  ;;  %v4970_v36 = vsub.f32 %v9321_v26, %v9447_v3 }
 0xed9   : > { %6885 = vrsqrt.f32 %v4984_v27  ;;  %v4939_v30 = vsub.f32 %v4907_v25, %v4923_v13  ;;  %v4906_v12 = vmul.f32 0.03125, %v4864_v46 }
 0xeda   : > { %v4793_v37 = vpop.xlane.xlu1 %4792 }
 0xedb   : > { %v4955_v33 = vmax.f32 %v4939_v30, 0.0  ;;  %v4938_v58 = vsub.f32 %v4906_v12, %v4922_v15  ;;  %v9453_v5 = vmul.f32 0.03125, %v4793_v37  ;;  %v4971_v37 = vsub.f32 %v9316_v44, %v9445_v51 }
 0xedc   : > { %v4790_v32 = vpop.xlane.xlu0 %4789 }
 0xedd   : > { %v4987_v55 = vadd.f32 1e-05, %v4955_v33  ;;  %v4954_v18 = vmax.f32 %v4938_v58, 0.0  ;;  %v9456_v47 = vmul.f32 0.03125, %v4790_v32  ;;  %v4925_v22 = vmul.f32 %v9453_v5, %v9453_v5 }
 0xede   : > { %v4873_v0 = vpop.xlane.xlu1 %4872 }
 0xedf   : > { %6887 = vrsqrt.f32 %v4987_v55  ;;  %v4986_v41 = vadd.f32 1e-05, %v4954_v18  ;;  %v4909_v57 = vmul.f32 0.03125, %v4873_v0  ;;  %v4924_v21 = vmul.f32 %v9456_v47, %v9456_v47 }
 0xee0   : > { %v4870_v2 = vpop.xlane.xlu0 %4869 }
 0xee1   : > { %6889 = vrsqrt.f32 %v4986_v41  ;;  %v4941_v4 = vsub.f32 %v4909_v57, %v4925_v22  ;;  %v4908_v60 = vmul.f32 0.03125, %v4870_v2 }
 0xee2   : > { %v4799_v14 = vpop.xlane.xlu1 %4798 }
 0xee3   : > { %v4957_v20 = vmax.f32 %v4941_v4, 0.0  ;;  %v4940_v29 = vsub.f32 %v4908_v60, %v4924_v21  ;;  %v9471_v17 = vmul.f32 0.03125, %v4799_v14 }
 0xee4   : > { %v6884_v42 = vpop.eup %6883  ;;  %v4796_v56 = vpop.xlane.xlu0 %4795 }
 0xee5   : > { %v5017_v38 = vmul.f32 %v6884_v42, %v4969_v9  ;;  %v4989_v1 = vadd.f32 1e-05, %v4957_v20  ;;  %v4956_v59 = vmax.f32 %v4940_v29, 0.0  ;;  %v9475_v54 = vmul.f32 0.03125, %v4796_v56 }
 0xee6   : > { %v6886_v63 = vpop.eup %6885  ;;  %v4879_v24 = vpop.xlane.xlu1 %4878  ;;  %v4927_v61 = vmul.f32 %v9471_v17, %v9471_v17  ;;  %v4973_v56 = vsub.f32 %v9334_v35, %v9453_v5 }
 0xee7   : > { %v5037_v39 = vmul.f32 %v9467_v43, %v5017_v38  ;;  %v5016_v31 = vmul.f32 %v6886_v63, %v4968_v23  ;;  %6891 = vrsqrt.f32 %v4989_v1  ;;  %v4988_v11 = vadd.f32 1e-05, %v4956_v59 }
 0xee8   : > { %v4926_v27 = vmul.f32 %v9475_v54, %v9475_v54  ;;  %v4911_v19 = vmul.f32 0.03125, %v4879_v24  ;;  %v4876_v10 = vpop.xlane.xlu0 %4875  ;;  %v4972_v24 = vsub.f32 %v9339_v28, %v9456_v47 }
 0xee9   : > { %v5057_v13 = vadd.f32 %v9469_v50, %v5037_v39  ;;  %v5036_v25 = vmul.f32 %v9467_v43, %v5016_v31  ;;  %6893 = vrsqrt.f32 %v4988_v11  ;;  %v4910_v46 = vmul.f32 0.03125, %v4876_v10 }
 0xeea   : > { %v4943_v15 = vsub.f32 %v4911_v19, %v4927_v61  ;;  %v4805_v30 = vpop.xlane.xlu1 %4804 }
 0xeeb   : > { %5073 = vst.msk [vmem:[%s9486_s26 + $0x8] sm:$0xff] %vm322_vm0, %v5057_v13  ;;  %v5056_v12 = vadd.f32 %v9469_v50, %v5036_v25  ;;  %v4942_v33 = vsub.f32 %v4910_v46, %v4926_v27  ;;  %v9493_v58 = vmul.f32 0.03125, %v4805_v30 }
 0xeec   : > { %v6888_v32 = vpop.eup %6887  ;;  %v4959_v55 = vmax.f32 %v4943_v15, 0.0  ;;  %v4802_v18 = vpop.xlane.xlu0 %4801 }
 0xeed   : > { %5072 = vst.msk [vmem:[%s9486_s26] sm:$0xff] %vm322_vm0, %v5056_v12  ;;  %v5019_v0 = vmul.f32 %v6888_v32, %v4971_v37  ;;  %v4958_v41 = vmax.f32 %v4942_v33, 0.0  ;;  %v4929_v34 = vmul.f32 %v9493_v58, %v9493_v58  ;;  %v9501_v44 = vmul.f32 0.03125, %v4802_v18 }
 0xeee   : > { %v6890_v22 = vpop.eup %6889  ;;  %v4991_v57 = vadd.f32 1e-05, %v4959_v55  ;;  %v4885_v51 = vpop.xlane.xlu1 %4884 }
 0xeef   : > { %v5039_v2 = vmul.f32 %v9467_v43, %v5019_v0  ;;  %v5018_v21 = vmul.f32 %v6890_v22, %v4970_v36  ;;  %v4990_v4 = vadd.f32 1e-05, %v4958_v41  ;;  %v4913_v60 = vmul.f32 0.03125, %v4885_v51 }
 0xef0   : > { %6895 = vrsqrt.f32 %v4991_v57  ;;  %v4882_v14 = vpop.xlane.xlu0 %4881  ;;  %v4928_v45 = vmul.f32 %v9501_v44, %v9501_v44  ;;  %v4975_v36 = vsub.f32 %v9352_v40, %v9471_v17  ;;  %v4974_v22 = vsub.f32 %v9357_v8, %v9475_v54 }
 0xef1   : > { %v5059_v26 = vadd.f32 %v9469_v50, %v5039_v2  ;;  %v5038_v3 = vmul.f32 %v9467_v43, %v5018_v21  ;;  %6897 = vrsqrt.f32 %v4990_v4  ;;  %v4945_v9 = vsub.f32 %v4913_v60, %v4929_v34 }
 0xef2   : > { %v4912_v20 = vmul.f32 0.03125, %v4882_v14  ;;  %v4811_v29 = vpop.xlane.xlu1 %4810 }
 0xef3   : > { %5075 = vst.msk [vmem:[%s9486_s26 + $0x18] sm:$0xff] %vm322_vm0, %v5059_v26  ;;  %v5058_v42 = vadd.f32 %v9469_v50, %v5038_v3  ;;  %v4961_v23 = vmax.f32 %v4945_v9, 0.0  ;;  %v9513_v38 = vmul.f32 0.03125, %v4811_v29  ;;  %v4977_v29 = vsub.f32 %v9370_v52, %v9493_v58 }
 0xef4   : > { %v6892_v1 = vpop.eup %6891  ;;  %v4944_v59 = vsub.f32 %v4912_v20, %v4928_v45  ;;  %v4808_v63 = vpop.xlane.xlu0 %4807 }
 0xef5   : > { %5074 = vst.msk [vmem:[%s9486_s26 + $0x10] sm:$0xff] %vm322_vm0, %v5058_v42  ;;  %v5021_v39 = vmul.f32 %v6892_v1, %v4973_v56  ;;  %v4993_v31 = vadd.f32 1e-05, %v4961_v23  ;;  %v4931_v27 = vmul.f32 %v9513_v38, %v9513_v38  ;;  %v9521_v35 = vmul.f32 0.03125, %v4808_v63 }
 0xef6   : > { %v6894_v11 = vpop.eup %6893  ;;  %v4960_v61 = vmax.f32 %v4944_v59, 0.0  ;;  %v4891_v5 = vpop.xlane.xlu1 %4890 }
 0xef7   : > { %v5041_v19 = vmul.f32 %v9467_v43, %v5021_v39  ;;  %v5020_v10 = vmul.f32 %v6894_v11, %v4972_v24  ;;  %6899 = vrsqrt.f32 %v4993_v31  ;;  %v4915_v13 = vmul.f32 0.03125, %v4891_v5 }
 0xef8   : > { %v4992_v25 = vadd.f32 1e-05, %v4960_v61  ;;  %v4930_v28 = vmul.f32 %v9521_v35, %v9521_v35  ;;  %v4888_v47 = vpop.xlane.xlu0 %4887  ;;  %v4976_v61 = vsub.f32 %v9375_v7, %v9501_v44 }
 0xef9   : > { %v5061_v46 = vadd.f32 %v9469_v50, %v5041_v19  ;;  %v5040_v15 = vmul.f32 %v9467_v43, %v5020_v10  ;;  %v4947_v30 = vsub.f32 %v4915_v13, %v4931_v27  ;;  %v4914_v12 = vmul.f32 0.03125, %v4888_v47 }
 0xefa   : > { %6901 = vrsqrt.f32 %v4992_v25  ;;  %v4817_v37 = vpop.xlane.xlu1 %4816 }
 0xefb   : > { %5077 = vst.msk [vmem:[%s9486_s26 + $0x28] sm:$0xff] %vm322_vm0, %v5061_v46  ;;  %v5060_v33 = vadd.f32 %v9469_v50, %v5040_v15  ;;  %v4963_v32 = vmax.f32 %v4947_v30, 0.0  ;;  %v4946_v55 = vsub.f32 %v4914_v12, %v4930_v28  ;;  %v9531_v18 = vmul.f32 0.03125, %v4817_v37 }
 0xefc   : > { %v4814_v0 = vpop.xlane.xlu0 %4813  ;;  %v4979_v30 = vsub.f32 %v9388_v49, %v9513_v38 }
 0xefd   : > { %v6896_v41 = vpop.eup %6895  ;;  %5076 = vst.msk [vmem:[%s9486_s26 + $0x20] sm:$0xff] %vm322_vm0, %v5060_v33  ;;  %v4995_v57 = vadd.f32 1e-05, %v4963_v32  ;;  %v4962_v34 = vmax.f32 %v4946_v55, 0.0  ;;  %v4933_v21 = vmul.f32 %v9531_v18, %v9531_v18  ;;  %v9541_v4 = vmul.f32 0.03125, %v4814_v0 }
 0xefe   : > { %v6898_v51 = vpop.eup %6897  ;;  %v5023_v2 = vmul.f32 %v6896_v41, %v4975_v36  ;;  %v4897_v60 = vpop.xlane.xlu1 %4896  ;;  %v4978_v55 = vsub.f32 %v9393_v48, %v9521_v35  ;;  %v4981_v35 = vsub.f32 %v9406_v6, %v9531_v18 }
 0xeff   : > { %v5022_v14 = vmul.f32 %v6898_v51, %v4974_v22  ;;  %6903 = vrsqrt.f32 %v4995_v57  ;;  %v4994_v40 = vadd.f32 1e-05, %v4962_v34  ;;  %v4917_v17 = vmul.f32 0.03125, %v4897_v60 }
 0xf00   : > { %v5043_v26 = vmul.f32 %v9467_v43, %v5023_v2  ;;  %v4932_v8 = vmul.f32 %v9541_v4, %v9541_v4  ;;  %v4894_v54 = vpop.xlane.xlu0 %4893 }
 0xf01   : > { %v5042_v3 = vmul.f32 %v9467_v43, %v5022_v14  ;;  %6905 = vrsqrt.f32 %v4994_v40  ;;  %v4949_v9 = vsub.f32 %v4917_v17, %v4933_v21  ;;  %v4916_v45 = vmul.f32 0.03125, %v4894_v54 }
 0xf02   : > { %v5063_v20 = vadd.f32 %v9469_v50, %v5043_v26  ;;  %v4823_v42 = vpop.xlane.xlu1 %4822  ;;  %v4980_v21 = vsub.f32 %v9411_v16, %v9541_v4 }
 0xf03   : > { %v5062_v56 = vadd.f32 %v9469_v50, %v5042_v3  ;;  %v4965_v23 = vmax.f32 %v4949_v9, 0.0  ;;  %v4948_v1 = vsub.f32 %v4916_v45, %v4932_v8  ;;  %v9551_v59 = vmul.f32 0.03125, %v4823_v42 }
 0xf04   : > { %v6900_v63 = vpop.eup %6899  ;;  %5079 = vst.msk [vmem:[%s9486_s26 + $0x38] sm:$0xff] %vm322_vm0, %v5063_v20  ;;  %v4820_v24 = vpop.xlane.xlu0 %4819 }
 0xf05   : > { %5078 = vst.msk [vmem:[%s9486_s26 + $0x30] sm:$0xff] %vm322_vm0, %v5062_v56  ;;  %v5025_v39 = vmul.f32 %v6900_v63, %v4977_v29  ;;  %v4997_v31 = vadd.f32 1e-05, %v4965_v23  ;;  %v4964_v11 = vmax.f32 %v4948_v1, 0.0  ;;  %v4935_v52 = vmul.f32 %v9551_v59, %v9551_v59 }
 0xf06   : > { %v4838_v58 = vmul.f32 0.03125, %v4820_v24  ;;  %v4903_v27 = vpop.xlane.xlu1 %4902  ;;  %v4983_v18 = vsub.f32 %v9424_v62, %v9551_v59 }
 0xf07   : > { %v6902_v5 = vpop.eup %6901  ;;  %v5045_v19 = vmul.f32 %v9467_v43, %v5025_v39  ;;  %6907 = vrsqrt.f32 %v4997_v31  ;;  %v4996_v10 = vadd.f32 1e-05, %v4964_v11  ;;  %v4919_v13 = vmul.f32 0.03125, %v4903_v27 }
 0xf08   : > { %v5024_v25 = vmul.f32 %v6902_v5, %v4976_v61  ;;  %v4934_v28 = vmul.f32 %v4838_v58, %v4838_v58  ;;  %v4900_v47 = vpop.xlane.xlu0 %4899  ;;  %v4982_v4 = vsub.f32 %v9429_v53, %v4838_v58 }
 0xf09   : > { %v5065_v46 = vadd.f32 %v9469_v50, %v5045_v19  ;;  %6909 = vrsqrt.f32 %v4996_v10  ;;  %v4951_v7 = vsub.f32 %v4919_v13, %v4935_v52  ;;  %v4918_v44 = vmul.f32 0.03125, %v4900_v47 }
 0xf0a   : > { %v5044_v15 = vmul.f32 %v9467_v43, %v5024_v25 }
 0xf0b   : > { %5081 = vst.msk [vmem:[%s9486_s26 + $0x48] sm:$0xff] %vm322_vm0, %v5065_v46  ;;  %v4967_v12 = vmax.f32 %v4951_v7, 0.0  ;;  %v4950_v37 = vsub.f32 %v4918_v44, %v4934_v28 }
 0xf0c   : > { %v6904_v33 = vpop.eup %6903  ;;  %v5064_v32 = vadd.f32 %v9469_v50, %v5044_v15 }
 0xf0d   : > { %v5027_v36 = vmul.f32 %v6904_v33, %v4979_v30  ;;  %v4999_v0 = vadd.f32 1e-05, %v4967_v12  ;;  %v4966_v41 = vmax.f32 %v4950_v37, 0.0 }
 0xf0e   : > { %v6906_v22 = vpop.eup %6905  ;;  %5080 = vst.msk [vmem:[%s9486_s26 + $0x40] sm:$0xff] %vm322_vm0, %v5064_v32 }
 0xf0f   : > { %v5047_v57 = vmul.f32 %v9467_v43, %v5027_v36  ;;  %v5026_v34 = vmul.f32 %v6906_v22, %v4978_v55  ;;  %6911 = vrsqrt.f32 %v4999_v0  ;;  %v4998_v49 = vadd.f32 1e-05, %v4966_v41 }
 0xf11   : > { %v5067_v38 = vadd.f32 %v9469_v50, %v5047_v57  ;;  %v5046_v51 = vmul.f32 %v9467_v43, %v5026_v34  ;;  %6913 = vrsqrt.f32 %v4998_v49 }
 0xf13   : > { %5083 = vst.msk [vmem:[%s9486_s26 + $0x58] sm:$0xff] %vm322_vm0, %v5067_v38  ;;  %v5066_v48 = vadd.f32 %v9469_v50, %v5046_v51 }
 0xf14   : > { %v6908_v2 = vpop.eup %6907 }
 0xf15   : > { %5082 = vst.msk [vmem:[%s9486_s26 + $0x50] sm:$0xff] %vm322_vm0, %v5066_v48  ;;  %v5029_v60 = vmul.f32 %v6908_v2, %v4981_v35 }
 0xf16   : > { %v6910_v14 = vpop.eup %6909 }
 0xf17   : > { %v5049_v40 = vmul.f32 %v9467_v43, %v5029_v60  ;;  %v5028_v17 = vmul.f32 %v6910_v14, %v4980_v21 }
 0xf19   : > { %v5069_v26 = vadd.f32 %v9469_v50, %v5049_v40  ;;  %v5048_v8 = vmul.f32 %v9467_v43, %v5028_v17 }
 0xf1b   : > { %5085 = vst.msk [vmem:[%s9486_s26 + $0x68] sm:$0xff] %vm322_vm0, %v5069_v26  ;;  %v5068_v6 = vadd.f32 %v9469_v50, %v5048_v8 }
 0xf1c   : > { %v6912_v16 = vpop.eup %6911 }
 0xf1d   : > { %5084 = vst.msk [vmem:[%s9486_s26 + $0x60] sm:$0xff] %vm322_vm0, %v5068_v6  ;;  %v5031_v54 = vmul.f32 %v6912_v16, %v4983_v18 }
 0xf1e   : > { %v6914_v3 = vpop.eup %6913 }
 0xf1f   : > { %v5051_v9 = vmul.f32 %v9467_v43, %v5031_v54  ;;  %v5030_v45 = vmul.f32 %v6914_v3, %v4982_v4 }
 0xf21   : > { %v5071_v20 = vadd.f32 %v9469_v50, %v5051_v9  ;;  %v5050_v29 = vmul.f32 %v9467_v43, %v5030_v45 }
 0xf23   : > { %5087 = vst.msk [vmem:[%s9486_s26 + $0x78] sm:$0xff] %vm322_vm0, %v5071_v20  ;;  %v5070_v42 = vadd.f32 %v9469_v50, %v5050_v29 }
 0xf25   : > { %5086 = vst.msk [vmem:[%s9486_s26 + $0x70] sm:$0xff] %vm322_vm0, %v5070_v42 }
 0xf26   : > { %s5455_s28 = sshll.u32 %s7054_s25, 8  ;;  %s5112_s8 = sshll.u32 %s9486_s26, 4  ;;  %s5113_s8 = int_to_ptr.vmem [resolvable:$true] %s5112_s8 }
 0xf27   : > { %s5101_s13 = scalar_lea.hbm %s9648_s6, %s5455_s28  ;;  %s6991_s14 = smov 256  }
 0xf28   : > { %6525 = sst [smem:[#allocation9]] (%p7081_p9), %s6991_s14  ;;  %s6992_s18 = smov 512  }
 0xf29   : > { %6526 = sst [smem:[#allocation9 + $0x1]] (%p7081_p9), %s6992_s18  ;;  %s6993_s15 = smov 2  }
 0xf2a   : > { %6527 = sst [smem:[#allocation9 + $0x2]] (%p7081_p9), %s6993_s15  ;;  %s6994_s17 = smov 128  }
 0xf2b   : > { %6528 = sst [smem:[#allocation9 + $0x3]] (%p7081_p9), %s6994_s17  ;;  %s6995_s25 = smov 8  }
 0xf2c   : > { %6529 = sst [smem:[#allocation9 + $0x4]] (%p7081_p9), %s6994_s17  ;;  %s6996_s20 = smov 131072  }
 0xf2d   : > { %6530 = sst [smem:[#allocation9 + $0x5]] (%p7081_p9), %s6995_s25  ;;  %s6997_s11 = smov 0  }
 0xf2e   : > { %6531 = dma.general (%p7081_p9), %s5113_s8, 2048, %s5101_s13, %s5089_s30, %s6996_s20, [#allocation9], %s6997_s11, 0  }
 0xf2f PF: > { %s5140_s7 = sand.u32 1, %s6959_s21   ;;  %p6534_p1 = pnand %p5200_p11, %p7085_p10 }
 0xf30   : > { %s5141_s16 = scalar_lea.sflag [#allocation4], %s5140_s7 }
 0xf31   : > { %p6535_p2 = pneg %p6534_p1 }
 0xf33   : > { %6954 = dma.done.wait (%p6535_p2), %s5141_s16, 2048  }
 0xf34   : > { %6956 = vsyncadd (%p6535_p2), %s5141_s16, 4294965248  ;;  %s9820_s19 = sld [smem:[#allocation13_spill]]  ;;  %p19_p3 = scmp.ge.s32.totalorder %s7058_s27, 4  }
 0xf35   : > { %s9821_s21 = smov %s6963_s22  ;;  %s9822_s22 = smov %s6967_s23 }
 0xf36   : > { %s9824_s24 = smov %s7058_s27  ;;  %21 = sbr.rel (!%p19_p3) target bundleno = 5 (0x5), region = 99 }
 0xf3a   : > { %s9823_s23 = smov %s9820_s19 }
 0xf3b   :  { %5146 = vsyncpa [#allocation3], 1 }
 0xf3c   :  { %5148 = vsyncpa [#allocation3 + $0x1], 1 }
 0xf3d   :  { %5149 = vsyncpa [#allocation4], 1 }
 0xf3e   :  { %5151 = vsyncpa [#allocation4 + $0x1], 1 }

</bundles_post_ra>
